<compile_context>
chip_gen: v5e
topology: v5e:2x2
jax: 0.10.0
libtpu: 0.0.40
codegen_flags: <defaults>
</compile_context>

<pallas_src>
import math
import functools

import jax
import jax.numpy as jnp
from jax import lax
from jax.experimental import pallas as pl
from jax.experimental.pallas import tpu as pltpu


# ----------------------------------------------------------------------------
# helpers
# ----------------------------------------------------------------------------

_VMEM_LIMIT = None


def _vmem_limit_bytes():
    """Explicit per-generation VMEM limit (review item), with a safe fallback."""
    global _VMEM_LIMIT
    if _VMEM_LIMIT is None:
        try:
            _VMEM_LIMIT = int(pltpu.get_tpu_info().vmem_capacity_bytes * 3 // 4)
        except Exception:
            _VMEM_LIMIT = 64 * 1024 * 1024
    return _VMEM_LIMIT


def _cp(n_axes):
    return pltpu.CompilerParams(
        dimension_semantics=("parallel",) * n_axes,
        vmem_limit_bytes=_vmem_limit_bytes())


def _layer_norm(x, g, b, eps=1e-5):
    """Value-level LayerNorm over the last dim; statistics in f32."""
    xf = x.astype(jnp.float32)
    mean = jnp.mean(xf, axis=-1, keepdims=True)
    var = jnp.mean((xf - mean) ** 2, axis=-1, keepdims=True)
    return (xf - mean) * lax.rsqrt(var + eps) * g + b


def _time_shift(h, offset):
    """s[t] = h[t + offset] with zero fill outside [0, T).  `offset` is static.
    Implemented as an XLU sublane roll plus an iota row mask (no concat copies)."""
    if offset == 0:
        return h
    T = h.shape[0]
    if abs(offset) >= T:
        return jnp.zeros_like(h)
    rolled = pltpu.roll(h, (-offset) % T, 0)
    rows = lax.broadcasted_iota(jnp.int32, h.shape, 0)
    keep = rows < (T - offset) if offset > 0 else rows >= (-offset)
    return jnp.where(keep, rolled, jnp.zeros_like(rolled))


# ----------------------------------------------------------------------------
# fused module kernels
# ----------------------------------------------------------------------------

def ff_module(x, p, alpha, out_dtype):
    """out = x + alpha * FF(x);  FF = LN -> Conv1d(D,F,K) -> Swish -> Conv1d(F,D,K)."""
    B, T, D = x.shape
    K, _, F = p["w1"].shape
    pad = (K - 1) // 2

    w1 = p["w1"].astype(jnp.bfloat16)
    w2 = p["w2"].astype(jnp.bfloat16)
    g = p["ln_g"].reshape(1, D)
    b = p["ln_b"].reshape(1, D)
    b1 = p["b1"].reshape(1, F)
    b2 = p["b2"].reshape(1, D)

    def kernel(x_ref, g_ref, b_ref, w1_ref, b1_ref, w2_ref, b2_ref, o_ref):
        xb = x_ref[0].astype(jnp.float32)                       # (T, D)
        h = _layer_norm(xb, g_ref[...], b_ref[...])
        # Conv1d(D -> F, 'same'): shift the (T,D) input, K bf16 matmuls, f32 acc.
        acc = jnp.zeros((T, F), jnp.float32)
        for k in range(K):
            acc += jnp.dot(_time_shift(h, k - pad).astype(jnp.bfloat16),
                           w1_ref[k], preferred_element_type=jnp.float32)
        acc += b1_ref[...]
        a = (acc * jax.nn.sigmoid(acc)).astype(jnp.bfloat16)    # Swish, (T, F)
        # Conv1d(F -> D, 'same'): matmul-then-shift so shifted copies are (T, D).
        acc2 = jnp.zeros((T, D), jnp.float32)
        for k in range(K):
            pk = jnp.dot(a, w2_ref[k], preferred_element_type=jnp.float32)
            acc2 += _time_shift(pk, k - pad)
        acc2 += b2_ref[...]
        o_ref[0] = (xb + alpha * acc2).astype(o_ref.dtype)      # fused residual

    vec = pl.BlockSpec((1, D), lambda bi: (0, 0))
    return pl.pallas_call(
        kernel,
        out_shape=jax.ShapeDtypeStruct((B, T, D), out_dtype),
        grid=(B,),
        in_specs=[pl.BlockSpec((1, T, D), lambda bi: (bi, 0, 0)),
                  vec, vec,
                  pl.BlockSpec((K, D, F), lambda bi: (0, 0, 0)),
                  pl.BlockSpec((1, F), lambda bi: (0, 0)),
                  pl.BlockSpec((K, F, D), lambda bi: (0, 0, 0)),
                  vec],
        out_specs=pl.BlockSpec((1, T, D), lambda bi: (bi, 0, 0)),
        compiler_params=_cp(1),
    )(x, g, b, w1, b1, w2, b2)


def norm_conv_module(x, norm_g, norm_b, p, out_dtype):
    """xn = LN_outer(x); out = xn + ConvModule(xn); fully fused per batch element."""
    B, T, D = x.shape
    Kd = p["dw_w"].shape[0]
    pad = (Kd - 1) // 2

    args = [x,
            norm_g.reshape(1, D), norm_b.reshape(1, D),
            p["ln_g"].reshape(1, D), p["ln_b"].reshape(1, D),
            p["pw1_w"].astype(jnp.bfloat16), p["pw1_b"].reshape(1, 2 * D),
            p["dw_w"], p["dw_b"].reshape(1, D),
            p["bn_scale"].reshape(1, D), p["bn_shift"].reshape(1, D),
            p["pw2_w"].astype(jnp.bfloat16), p["pw2_b"].reshape(1, D)]

    def kernel(x_ref, ng_ref, nb_ref, lg_ref, lb_ref, w1_ref, b1_ref,
               dw_ref, db_ref, s_ref, t_ref, w2_ref, b2_ref, o_ref):
        xb = x_ref[0].astype(jnp.float32)
        xn = _layer_norm(xb, ng_ref[...], nb_ref[...])           # outer LayerNorm
        h = _layer_norm(xn, lg_ref[...], lb_ref[...]).astype(jnp.bfloat16)
        # fused pointwise-1 (D -> 2D) + GLU on channel halves
        h2 = jnp.dot(h, w1_ref[...], preferred_element_type=jnp.float32) + b1_ref[...]
        gl = h2[:, :D] * jax.nn.sigmoid(h2[:, D:])
        # depthwise conv over time (VPU), roll+mask shifts (XLU)
        acc = jnp.zeros((T, D), jnp.float32)
        for k in range(Kd):
            acc += _time_shift(gl, k - pad) * dw_ref[k:k + 1, :]
        acc += db_ref[...]
        acc = acc * s_ref[...] + t_ref[...]                      # folded eval BatchNorm
        acc = acc * jax.nn.sigmoid(acc)                          # Swish
        out = jnp.dot(acc.astype(jnp.bfloat16), w2_ref[...],
                      preferred_element_type=jnp.float32) + b2_ref[...]
        o_ref[0] = (xn + out).astype(o_ref.dtype)                # fused residual

    vec = pl.BlockSpec((1, D), lambda bi: (0, 0))
    in_specs = [pl.BlockSpec((1, T, D), lambda bi: (bi, 0, 0)),
                vec, vec, vec, vec,
                pl.BlockSpec((D, 2 * D), lambda bi: (0, 0)),
                pl.BlockSpec((1, 2 * D), lambda bi: (0, 0)),
                pl.BlockSpec((Kd, D), lambda bi: (0, 0)),
                vec, vec, vec,
                pl.BlockSpec((D, D), lambda bi: (0, 0)),
                vec]
    return pl.pallas_call(
        kernel,
        out_shape=jax.ShapeDtypeStruct((B, T, D), out_dtype),
        grid=(B,),
        in_specs=in_specs,
        out_specs=pl.BlockSpec((1, T, D), lambda bi: (bi, 0, 0)),
        compiler_params=_cp(1),
    )(*args)


def qkv_project(x, p, out_dtype):
    """Fused Q/K/V projection: one (D, 3D) matmul, single bf16 (B,T,3D) output."""
    B, T, D = x.shape
    w = jnp.concatenate([p["wq"], p["wk"], p["wv"]], axis=1).astype(jnp.bfloat16)
    b = jnp.concatenate([p["bq"], p["bk"], p["bv"]]).reshape(1, 3 * D)

    def kernel(x_ref, w_ref, b_ref, o_ref):
        xb = x_ref[0].astype(jnp.bfloat16)
        o_ref[0] = (jnp.dot(xb, w_ref[...], preferred_element_type=jnp.float32)
                    + b_ref[...]).astype(o_ref.dtype)

    return pl.pallas_call(
        kernel,
        out_shape=jax.ShapeDtypeStruct((B, T, 3 * D), out_dtype),
        grid=(B,),
        in_specs=[pl.BlockSpec((1, T, D), lambda bi: (bi, 0, 0)),
                  pl.BlockSpec((D, 3 * D), lambda bi: (0, 0)),
                  pl.BlockSpec((1, 3 * D), lambda bi: (0, 0))],
        out_specs=pl.BlockSpec((1, T, 3 * D), lambda bi: (bi, 0, 0)),
        compiler_params=_cp(1),
    )(x, w, b)


def attention_module(qkv, pe_roll, mask, p, heads, res, scale, out_dtype, attn_dtype):
    """Relative MHA + output projection + residual fused per batch element.

    Per head: scores_ac = (q+bu) k^T, scores_bd = strided-roll((q+bv) pproj^T),
    masked softmax (f32, pl.reciprocal), ctx = attn @ v.  All heads are assembled
    in VMEM, projected by Wo and added to the residual without any HBM round trip.
    """
    B, T, D3 = qkv.shape
    D = D3 // 3
    dh = D // heads
    P_pad = pe_roll.shape[1]

    wpos = p["wpos"].astype(jnp.bfloat16)
    wo = p["wo"].astype(jnp.bfloat16)
    bo = p["bo"].reshape(1, D)
    bu = p["pos_bias_u"].reshape(1, D)
    bv = p["pos_bias_v"].reshape(1, D)

    def kernel(qkv_ref, pe_ref, wpos_ref, bu_ref, bv_ref, m_ref,
               wo_ref, bo_ref, res_ref, o_ref, attn_ref):
        x3 = qkv_ref[0]                                          # (T, 3D) bf16
        # pos_project folded in: pe @ Wpos stays VMEM resident.
        ppj = jnp.dot(pe_ref[0], wpos_ref[...],
                      preferred_element_type=jnp.float32).astype(jnp.bfloat16)
        # key mask folded additively once (no where / attn*mask on the (T,T) tile).
        mbias = jnp.where(m_ref[0] > 0, 0.0, -1e9).astype(jnp.float32)   # (1, T)
        bu_all = bu_ref[...]
        bv_all = bv_ref[...]
        ctx_parts = []
        for h in range(heads):
            lo, hi = h * dh, (h + 1) * dh
            q = x3[:, lo:hi].astype(jnp.float32)                 # (T, dh)
            k = x3[:, D + lo:D + hi]                             # (T, dh) bf16
            v = x3[:, 2 * D + lo:2 * D + hi]                     # (T, dh) bf16
            qu = (q + bu_all[:, lo:hi]).astype(jnp.bfloat16)
            qv = (q + bv_all[:, lo:hi]).astype(jnp.bfloat16)
            ac = lax.dot_general(qu, k, (((1,), (1,)), ((), ())),
                                 preferred_element_type=jnp.float32)      # (T, T)
            bd_pre = lax.dot_general(qv, ppj[:, lo:hi], (((1,), (1,)), ((), ())),
                                     preferred_element_type=jnp.float32)  # (T, P_pad)
            # Transformer-XL rel-shift on the in-VMEM tile: pe was pre-rotated by
            # (P_pad - T) in the wrapper, so query row i needs a roll of i + 1.
            bd = pltpu.roll(bd_pre, 1, 1, stride=1, stride_axis=0)[:, :T]
            s = (ac + bd) * scale + mbias
            smax = jnp.max(s, axis=-1, keepdims=True)
            e = jnp.exp(s - smax)
            probs = e * pl.reciprocal(jnp.sum(e, axis=-1, keepdims=True), approx=True)
            attn_ref[0, h] = probs.astype(attn_ref.dtype)
            ctx_parts.append(jnp.dot(probs.astype(jnp.bfloat16), v,
                                     preferred_element_type=jnp.float32))
        ctx = jnp.concatenate(ctx_parts, axis=-1)                # (T, D) f32
        out = jnp.dot(ctx.astype(jnp.bfloat16), wo_ref[...],
                      preferred_element_type=jnp.float32) + bo_ref[...]
        o_ref[0] = (res_ref[0].astype(jnp.float32) + out).astype(o_ref.dtype)

    vec = pl.BlockSpec((1, D), lambda bi: (0, 0))
    mat = pl.BlockSpec((D, D), lambda bi: (0, 0))
    return pl.pallas_call(
        kernel,
        out_shape=(jax.ShapeDtypeStruct((B, T, D), out_dtype),
                   jax.ShapeDtypeStruct((B, heads, T, T), attn_dtype)),
        grid=(B,),
        in_specs=[pl.BlockSpec((1, T, 3 * D), lambda bi: (bi, 0, 0)),
                  pl.BlockSpec((1, P_pad, D), lambda bi: (0, 0, 0)),
                  mat, vec, vec,
                  pl.BlockSpec((1, 1, T), lambda bi: (bi, 0, 0)),
                  mat, vec,
                  pl.BlockSpec((1, T, D), lambda bi: (bi, 0, 0))],
        out_specs=(pl.BlockSpec((1, T, D), lambda bi: (bi, 0, 0)),
                   pl.BlockSpec((1, heads, T, T), lambda bi: (bi, 0, 0, 0))),
        compiler_params=_cp(1),
    )(qkv, pe_roll, wpos, bu, bv, mask, wo, bo, res)


# ----------------------------------------------------------------------------
# module composition
# ----------------------------------------------------------------------------

def conformer_encoder_layer(x, pe, mask, params, heads):
    B, T, D = x.shape
    in_dtype = x.dtype
    act = jnp.bfloat16          # inter-kernel activations in bf16 (HBM bandwidth)
    dh = D // heads

    # x = x + 0.5 * ff_1(x)                                 (residual fused in-kernel)
    x1 = ff_module(x, params["ff1"], 0.5, out_dtype=act)
    # x = norm(x); x = x + conv_module(x)                   (single fused kernel)
    xc = norm_conv_module(x1, params["norm_g"], params["norm_b"], params["conv"],
                          out_dtype=act)
    # fused Q/K/V projection (one (D,3D) matmul)
    qkv = qkv_project(xc, params["attn"], out_dtype=act)
    # relative PE: pad the position axis to a lane multiple and pre-rotate so the
    # in-kernel rel-shift is a single strided pltpu.roll (amount i+1 for row i).
    P = pe.shape[1]
    P_pad = max(((P + 127) // 128) * 128, 128)
    pe_pad = jnp.pad(pe, ((0, 0), (0, P_pad - P), (0, 0)))
    pe_roll = jnp.roll(pe_pad, P_pad - T, axis=1).astype(act)
    # x, attn = attn(x, x, x, pe, mask); x = res + x        (rel-bias, softmax, Wo
    #                                                         and residual all fused)
    x2, attn = attention_module(qkv, pe_roll, mask, params["attn"], heads,
                                res=x1, scale=1.0 / math.sqrt(dh),
                                out_dtype=act, attn_dtype=act)
    # multi_speaker = False branch skipped; dropout = identity (inference)
    # x = x + ff_2(x)                                       (residual fused in-kernel)
    out = ff_module(x2, params["ff2"], 1.0, out_dtype=in_dtype)
    return out, attn


# ----------------------------------------------------------------------------
# deterministic parameter initialization
# ----------------------------------------------------------------------------

def init_params(key, D, heads, d_ff, K, Kd):
    keys = iter(jax.random.split(key, 64))

    def w(shape, scale=0.05):
        return jax.random.normal(next(keys), shape, jnp.float32) * scale

    def ff_params():
        return dict(ln_g=jnp.ones((D,), jnp.float32), ln_b=jnp.zeros((D,), jnp.float32),
                    w1=w((K, D, d_ff)), b1=w((d_ff,), 0.01),
                    w2=w((K, d_ff, D)), b2=w((D,), 0.01))

    # Conv module (BatchNorm folded into scale/shift, eval mode)
    bn_gamma = 1.0 + w((D,), 0.02)
    bn_beta = w((D,), 0.02)
    bn_mean = w((D,), 0.02)
    bn_var = 1.0 + jnp.abs(w((D,), 0.02))
    bn_scale = bn_gamma / jnp.sqrt(bn_var + 1e-5)
    bn_shift = bn_beta - bn_mean * bn_scale
    conv = dict(ln_g=jnp.ones((D,), jnp.float32), ln_b=jnp.zeros((D,), jnp.float32),
                pw1_w=w((D, 2 * D)), pw1_b=w((2 * D,), 0.01),
                dw_w=w((Kd, D)), dw_b=w((D,), 0.01),
                bn_scale=bn_scale, bn_shift=bn_shift,
                pw2_w=w((D, D)), pw2_b=w((D,), 0.01))

    dh = D // heads
    attn = dict(wq=w((D, D)), bq=w((D,), 0.01),
                wk=w((D, D)), bk=w((D,), 0.01),
                wv=w((D, D)), bv=w((D,), 0.01),
                wpos=w((D, D)),
                wo=w((D, D)), bo=w((D,), 0.01),
                pos_bias_u=w((heads, dh)), pos_bias_v=w((heads, dh)))

    return dict(ff1=ff_params(), ff2=ff_params(),
                norm_g=jnp.ones((D,), jnp.float32),
                norm_b=jnp.zeros((D,), jnp.float32),
                conv=conv, attn=attn)


# ----------------------------------------------------------------------------
# main
# ----------------------------------------------------------------------------

if __name__ == "__main__":
    B, T, D, H = 2, 8, 32, 4
    K, Kd = 3, 7
    d_ff = 2 * D

    key = jax.random.PRNGKey(0)
    k_x, k_pe, k_p = jax.random.split(key, 3)
    x = jax.random.normal(k_x, (B, T, D), jnp.float32)
    pe = jax.random.normal(k_pe, (1, 2 * T - 1, D), jnp.float32)   # relative PE
    mask = jnp.ones((B, 1, T), jnp.float32)                        # all positions valid
    params = init_params(k_p, D, H, d_ff, K, Kd)

    fwd = jax.jit(functools.partial(conformer_encoder_layer, heads=H))
    out, attn = fwd(x, pe, mask, params)
    jax.block_until_ready((out, attn))
    assert out.shape == (B, T, D), out.shape
    assert attn.shape == (B, H, T, T), attn.shape
    assert out.dtype == x.dtype
    assert bool(jnp.all(jnp.isfinite(out)))
    assert bool(jnp.all(jnp.isfinite(attn.astype(jnp.float32))))
    print("KERNEL_OK")
</pallas_src>

<mosaic_0001>
module attributes {stable_mosaic.version = 11 : i64} {
  func.func @kernel(%arg0: i32, %arg1: memref<1x8x32xf32, #tpu.memory_space<vmem>>, %arg2: memref<1x32xf32, #tpu.memory_space<vmem>>, %arg3: memref<1x32xf32, #tpu.memory_space<vmem>>, %arg4: memref<3x32x64xbf16, #tpu.memory_space<vmem>>, %arg5: memref<1x64xf32, #tpu.memory_space<vmem>>, %arg6: memref<3x64x32xbf16, #tpu.memory_space<vmem>>, %arg7: memref<1x32xf32, #tpu.memory_space<vmem>>, %arg8: memref<1x8x32xbf16, #tpu.memory_space<vmem>>) attributes {dimension_semantics = [#tpu.dimension_semantics<parallel>], iteration_bounds = array<i64: 2>, scalar_prefetch = 0 : i64, scratch_operands = 0 : i64, tpu.core_type = #tpu.core_type<tc>, window_params = [{transform_indices = @transform_0, window_bounds = array<i64: 1, 8, 32>}, {pipeline_mode = #tpu.pipeline_mode<synchronous>, transform_indices = @transform_1, window_bounds = array<i64: 1, 32>}, {pipeline_mode = #tpu.pipeline_mode<synchronous>, transform_indices = @transform_2, window_bounds = array<i64: 1, 32>}, {pipeline_mode = #tpu.pipeline_mode<synchronous>, transform_indices = @transform_3, window_bounds = array<i64: 3, 32, 64>}, {pipeline_mode = #tpu.pipeline_mode<synchronous>, transform_indices = @transform_4, window_bounds = array<i64: 1, 64>}, {pipeline_mode = #tpu.pipeline_mode<synchronous>, transform_indices = @transform_5, window_bounds = array<i64: 3, 64, 32>}, {pipeline_mode = #tpu.pipeline_mode<synchronous>, transform_indices = @transform_6, window_bounds = array<i64: 1, 32>}, {transform_indices = @transform_7, window_bounds = array<i64: 1, 8, 32>}]} {
    %c0 = arith.constant 0 : index
    %c0_0 = arith.constant 0 : index
    %c0_1 = arith.constant 0 : index
    %0 = vector.load %arg1[%c0, %c0_0, %c0_1] : memref<1x8x32xf32, #tpu.memory_space<vmem>>, vector<1x8x32xf32>
    %1 = vector.shape_cast %0 : vector<1x8x32xf32> to vector<8x32xf32>
    %c0_2 = arith.constant 0 : index
    %c0_3 = arith.constant 0 : index
    %2 = vector.load %arg2[%c0_2, %c0_3] : memref<1x32xf32, #tpu.memory_space<vmem>>, vector<1x32xf32>
    %c0_4 = arith.constant 0 : index
    %c0_5 = arith.constant 0 : index
    %3 = vector.load %arg3[%c0_4, %c0_5] : memref<1x32xf32, #tpu.memory_space<vmem>>, vector<1x32xf32>
    %cst = arith.constant dense<0.000000e+00> : vector<8xf32>
    %4 = vector.multi_reduction <add>, %1, %cst [1] : vector<8x32xf32> to vector<8xf32>
    %5 = vector.shape_cast %4 : vector<8xf32> to vector<8x1xf32>
    %cst_6 = arith.constant 3.200000e+01 : f32
    %6 = vector.broadcast %cst_6 : f32 to vector<8x1xf32>
    %7 = arith.divf %5, %6 : vector<8x1xf32>
    %8 = vector.broadcast %7 : vector<8x1xf32> to vector<8x32xf32>
    %9 = arith.subf %1, %8 : vector<8x32xf32>
    %10 = arith.mulf %9, %9 : vector<8x32xf32>
    %cst_7 = arith.constant dense<0.000000e+00> : vector<8xf32>
    %11 = vector.multi_reduction <add>, %10, %cst_7 [1] : vector<8x32xf32> to vector<8xf32>
    %12 = vector.shape_cast %11 : vector<8xf32> to vector<8x1xf32>
    %cst_8 = arith.constant 3.200000e+01 : f32
    %13 = vector.broadcast %cst_8 : f32 to vector<8x1xf32>
    %14 = arith.divf %12, %13 : vector<8x1xf32>
    %15 = vector.broadcast %7 : vector<8x1xf32> to vector<8x32xf32>
    %16 = arith.subf %1, %15 : vector<8x32xf32>
    %cst_9 = arith.constant 9.99999974E-6 : f32
    %17 = vector.broadcast %cst_9 : f32 to vector<8x1xf32>
    %18 = arith.addf %14, %17 : vector<8x1xf32>
    %19 = math.rsqrt %18 : vector<8x1xf32>
    %20 = vector.broadcast %19 : vector<8x1xf32> to vector<8x32xf32>
    %21 = arith.mulf %16, %20 : vector<8x32xf32>
    %22 = vector.broadcast %2 : vector<1x32xf32> to vector<8x32xf32>
    %23 = arith.mulf %21, %22 : vector<8x32xf32>
    %24 = vector.broadcast %3 : vector<1x32xf32> to vector<8x32xf32>
    %25 = arith.addf %23, %24 : vector<8x32xf32>
    %cst_10 = arith.constant 0.000000e+00 : f32
    %26 = vector.broadcast %cst_10 : f32 to vector<8x64xf32>
    %c1_i32 = arith.constant 1 : i32
    %27 = tpu.dynamic_rotate %25 by %c1_i32 dim 0 : vector<8x32xf32>, i32 -> vector<8x32xf32>
    %28 = tpu.iota {dimensions = array<i32: 0>} : vector<8x32xi32>
    %c1_i32_11 = arith.constant 1 : i32
    %29 = vector.broadcast %c1_i32_11 : i32 to vector<8x32xi32>
    %30 = arith.cmpi sge, %28, %29 : vector<8x32xi32>
    %cst_12 = arith.constant 0.000000e+00 : f32
    %31 = vector.broadcast %cst_12 : f32 to vector<8x32xf32>
    %32 = arith.select %30, %27, %31 : vector<8x32xi1>, vector<8x32xf32>
    %33 = arith.truncf %32 : vector<8x32xf32> to vector<8x32xbf16>
    %c0_13 = arith.constant 0 : index
    %c0_14 = arith.constant 0 : index
    %c0_15 = arith.constant 0 : index
    %34 = vector.load %arg4[%c0_13, %c0_14, %c0_15] : memref<3x32x64xbf16, #tpu.memory_space<vmem>>, vector<1x32x64xbf16>
    %35 = vector.shape_cast %34 : vector<1x32x64xbf16> to vector<32x64xbf16>
    %cst_16 = arith.constant dense<0.000000e+00> : vector<8x64xf32>
    %36 = tpu.matmul %33, %35, %cst_16 {dimension_numbers = #tpu.dot_dimension_numbers<[1], [0], [0], [1], [0, 0, 1, 1], [], []>} : vector<8x32xbf16>, vector<32x64xbf16>, vector<8x64xf32> -> vector<8x64xf32>
    %37 = arith.addf %26, %36 : vector<8x64xf32>
    %38 = arith.truncf %25 : vector<8x32xf32> to vector<8x32xbf16>
    %c1 = arith.constant 1 : index
    %c0_17 = arith.constant 0 : index
    %c0_18 = arith.constant 0 : index
    %39 = vector.load %arg4[%c1, %c0_17, %c0_18] : memref<3x32x64xbf16, #tpu.memory_space<vmem>>, vector<1x32x64xbf16>
    %40 = vector.shape_cast %39 : vector<1x32x64xbf16> to vector<32x64xbf16>
    %cst_19 = arith.constant dense<0.000000e+00> : vector<8x64xf32>
    %41 = tpu.matmul %38, %40, %cst_19 {dimension_numbers = #tpu.dot_dimension_numbers<[1], [0], [0], [1], [0, 0, 1, 1], [], []>} : vector<8x32xbf16>, vector<32x64xbf16>, vector<8x64xf32> -> vector<8x64xf32>
    %42 = arith.addf %37, %41 : vector<8x64xf32>
    %c7_i32 = arith.constant 7 : i32
    %43 = tpu.dynamic_rotate %25 by %c7_i32 dim 0 : vector<8x32xf32>, i32 -> vector<8x32xf32>
    %44 = tpu.iota {dimensions = array<i32: 0>} : vector<8x32xi32>
    %c7_i32_20 = arith.constant 7 : i32
    %45 = vector.broadcast %c7_i32_20 : i32 to vector<8x32xi32>
    %46 = arith.cmpi slt, %44, %45 : vector<8x32xi32>
    %cst_21 = arith.constant 0.000000e+00 : f32
    %47 = vector.broadcast %cst_21 : f32 to vector<8x32xf32>
    %48 = arith.select %46, %43, %47 : vector<8x32xi1>, vector<8x32xf32>
    %49 = arith.truncf %48 : vector<8x32xf32> to vector<8x32xbf16>
    %c2 = arith.constant 2 : index
    %c0_22 = arith.constant 0 : index
    %c0_23 = arith.constant 0 : index
    %50 = vector.load %arg4[%c2, %c0_22, %c0_23] : memref<3x32x64xbf16, #tpu.memory_space<vmem>>, vector<1x32x64xbf16>
    %51 = vector.shape_cast %50 : vector<1x32x64xbf16> to vector<32x64xbf16>
    %cst_24 = arith.constant dense<0.000000e+00> : vector<8x64xf32>
    %52 = tpu.matmul %49, %51, %cst_24 {dimension_numbers = #tpu.dot_dimension_numbers<[1], [0], [0], [1], [0, 0, 1, 1], [], []>} : vector<8x32xbf16>, vector<32x64xbf16>, vector<8x64xf32> -> vector<8x64xf32>
    %53 = arith.addf %42, %52 : vector<8x64xf32>
    %c0_25 = arith.constant 0 : index
    %c0_26 = arith.constant 0 : index
    %54 = vector.load %arg5[%c0_25, %c0_26] : memref<1x64xf32, #tpu.memory_space<vmem>>, vector<1x64xf32>
    %55 = vector.broadcast %54 : vector<1x64xf32> to vector<8x64xf32>
    %56 = arith.addf %53, %55 : vector<8x64xf32>
    %57 = arith.negf %56 : vector<8x64xf32>
    %58 = math.exp %57 : vector<8x64xf32>
    %cst_27 = arith.constant 1.000000e+00 : f32
    %59 = vector.broadcast %cst_27 : f32 to vector<8x64xf32>
    %60 = arith.addf %59, %58 : vector<8x64xf32>
    %61 = arith.divf %59, %60 : vector<8x64xf32>
    %62 = arith.mulf %56, %61 : vector<8x64xf32>
    %63 = arith.truncf %62 : vector<8x64xf32> to vector<8x64xbf16>
    %cst_28 = arith.constant 0.000000e+00 : f32
    %64 = vector.broadcast %cst_28 : f32 to vector<8x32xf32>
    %c0_29 = arith.constant 0 : index
    %c0_30 = arith.constant 0 : index
    %c0_31 = arith.constant 0 : index
    %65 = vector.load %arg6[%c0_29, %c0_30, %c0_31] : memref<3x64x32xbf16, #tpu.memory_space<vmem>>, vector<1x64x32xbf16>
    %66 = vector.shape_cast %65 : vector<1x64x32xbf16> to vector<64x32xbf16>
    %cst_32 = arith.constant dense<0.000000e+00> : vector<8x32xf32>
    %67 = tpu.matmul %63, %66, %cst_32 {dimension_numbers = #tpu.dot_dimension_numbers<[1], [0], [0], [1], [0, 0, 1, 1], [], []>} : vector<8x64xbf16>, vector<64x32xbf16>, vector<8x32xf32> -> vector<8x32xf32>
    %c1_i32_33 = arith.constant 1 : i32
    %68 = tpu.dynamic_rotate %67 by %c1_i32_33 dim 0 : vector<8x32xf32>, i32 -> vector<8x32xf32>
    %69 = tpu.iota {dimensions = array<i32: 0>} : vector<8x32xi32>
    %c1_i32_34 = arith.constant 1 : i32
    %70 = vector.broadcast %c1_i32_34 : i32 to vector<8x32xi32>
    %71 = arith.cmpi sge, %69, %70 : vector<8x32xi32>
    %cst_35 = arith.constant 0.000000e+00 : f32
    %72 = vector.broadcast %cst_35 : f32 to vector<8x32xf32>
    %73 = arith.select %71, %68, %72 : vector<8x32xi1>, vector<8x32xf32>
    %74 = arith.addf %64, %73 : vector<8x32xf32>
    %c1_36 = arith.constant 1 : index
    %c0_37 = arith.constant 0 : index
    %c0_38 = arith.constant 0 : index
    %75 = vector.load %arg6[%c1_36, %c0_37, %c0_38] : memref<3x64x32xbf16, #tpu.memory_space<vmem>>, vector<1x64x32xbf16>
    %76 = vector.shape_cast %75 : vector<1x64x32xbf16> to vector<64x32xbf16>
    %cst_39 = arith.constant dense<0.000000e+00> : vector<8x32xf32>
    %77 = tpu.matmul %63, %76, %cst_39 {dimension_numbers = #tpu.dot_dimension_numbers<[1], [0], [0], [1], [0, 0, 1, 1], [], []>} : vector<8x64xbf16>, vector<64x32xbf16>, vector<8x32xf32> -> vector<8x32xf32>
    %78 = arith.addf %74, %77 : vector<8x32xf32>
    %c2_40 = arith.constant 2 : index
    %c0_41 = arith.constant 0 : index
    %c0_42 = arith.constant 0 : index
    %79 = vector.load %arg6[%c2_40, %c0_41, %c0_42] : memref<3x64x32xbf16, #tpu.memory_space<vmem>>, vector<1x64x32xbf16>
    %80 = vector.shape_cast %79 : vector<1x64x32xbf16> to vector<64x32xbf16>
    %cst_43 = arith.constant dense<0.000000e+00> : vector<8x32xf32>
    %81 = tpu.matmul %63, %80, %cst_43 {dimension_numbers = #tpu.dot_dimension_numbers<[1], [0], [0], [1], [0, 0, 1, 1], [], []>} : vector<8x64xbf16>, vector<64x32xbf16>, vector<8x32xf32> -> vector<8x32xf32>
    %c7_i32_44 = arith.constant 7 : i32
    %82 = tpu.dynamic_rotate %81 by %c7_i32_44 dim 0 : vector<8x32xf32>, i32 -> vector<8x32xf32>
    %83 = tpu.iota {dimensions = array<i32: 0>} : vector<8x32xi32>
    %c7_i32_45 = arith.constant 7 : i32
    %84 = vector.broadcast %c7_i32_45 : i32 to vector<8x32xi32>
    %85 = arith.cmpi slt, %83, %84 : vector<8x32xi32>
    %cst_46 = arith.constant 0.000000e+00 : f32
    %86 = vector.broadcast %cst_46 : f32 to vector<8x32xf32>
    %87 = arith.select %85, %82, %86 : vector<8x32xi1>, vector<8x32xf32>
    %88 = arith.addf %78, %87 : vector<8x32xf32>
    %c0_47 = arith.constant 0 : index
    %c0_48 = arith.constant 0 : index
    %89 = vector.load %arg7[%c0_47, %c0_48] : memref<1x32xf32, #tpu.memory_space<vmem>>, vector<1x32xf32>
    %90 = vector.broadcast %89 : vector<1x32xf32> to vector<8x32xf32>
    %91 = arith.addf %88, %90 : vector<8x32xf32>
    %cst_49 = arith.constant 5.000000e-01 : f32
    %92 = vector.broadcast %cst_49 : f32 to vector<8x32xf32>
    %93 = arith.mulf %92, %91 : vector<8x32xf32>
    %94 = arith.addf %1, %93 : vector<8x32xf32>
    %95 = arith.truncf %94 : vector<8x32xf32> to vector<8x32xbf16>
    %c0_50 = arith.constant 0 : index
    %c0_51 = arith.constant 0 : index
    %c0_52 = arith.constant 0 : index
    %96 = vector.load %arg8[%c0_50, %c0_51, %c0_52] : memref<1x8x32xbf16, #tpu.memory_space<vmem>>, vector<1x8x32xbf16>
    %97 = vector.shape_cast %96 : vector<1x8x32xbf16> to vector<8x32xbf16>
    %98 = vector.shape_cast %95 : vector<8x32xbf16> to vector<1x8x32xbf16>
    tpu.vector_store %arg8[%c0_50, %c0_51, %c0_52], %98 {strides = array<i32>} : memref<1x8x32xbf16, #tpu.memory_space<vmem>>, vector<1x8x32xbf16>,
    return
  }
  func.func @transform_0(%arg0: i32) -> (i32, i32, i32) {
    %c0_i32 = arith.constant 0 : i32
    %c0_i32_0 = arith.constant 0 : i32
    %c0_i32_1 = arith.constant 0 : i32
    return %arg0, %c0_i32, %c0_i32_0 : i32, i32, i32
  }
  func.func @transform_1(%arg0: i32) -> (i32, i32) {
    %c0_i32 = arith.constant 0 : i32
    %c0_i32_0 = arith.constant 0 : i32
    %c0_i32_1 = arith.constant 0 : i32
    return %c0_i32, %c0_i32_0 : i32, i32
  }
  func.func @transform_2(%arg0: i32) -> (i32, i32) {
    %c0_i32 = arith.constant 0 : i32
    %c0_i32_0 = arith.constant 0 : i32
    %c0_i32_1 = arith.constant 0 : i32
    return %c0_i32, %c0_i32_0 : i32, i32
  }
  func.func @transform_3(%arg0: i32) -> (i32, i32, i32) {
    %c0_i32 = arith.constant 0 : i32
    %c0_i32_0 = arith.constant 0 : i32
    %c0_i32_1 = arith.constant 0 : i32
    %c0_i32_2 = arith.constant 0 : i32
    return %c0_i32, %c0_i32_0, %c0_i32_1 : i32, i32, i32
  }
  func.func @transform_4(%arg0: i32) -> (i32, i32) {
    %c0_i32 = arith.constant 0 : i32
    %c0_i32_0 = arith.constant 0 : i32
    %c0_i32_1 = arith.constant 0 : i32
    return %c0_i32, %c0_i32_0 : i32, i32
  }
  func.func @transform_5(%arg0: i32) -> (i32, i32, i32) {
    %c0_i32 = arith.constant 0 : i32
    %c0_i32_0 = arith.constant 0 : i32
    %c0_i32_1 = arith.constant 0 : i32
    %c0_i32_2 = arith.constant 0 : i32
    return %c0_i32, %c0_i32_0, %c0_i32_1 : i32, i32, i32
  }
  func.func @transform_6(%arg0: i32) -> (i32, i32) {
    %c0_i32 = arith.constant 0 : i32
    %c0_i32_0 = arith.constant 0 : i32
    %c0_i32_1 = arith.constant 0 : i32
    return %c0_i32, %c0_i32_0 : i32, i32
  }
  func.func @transform_7(%arg0: i32) -> (i32, i32, i32) {
    %c0_i32 = arith.constant 0 : i32
    %c0_i32_0 = arith.constant 0 : i32
    %c0_i32_1 = arith.constant 0 : i32
    return %arg0, %c0_i32, %c0_i32_0 : i32, i32, i32
  }
}

module attributes {stable_mosaic.version = 11 : i64} {
  func.func @kernel(%arg0: i32, %arg1: memref<1x8x32xbf16, #tpu.memory_space<vmem>>, %arg2: memref<1x32xf32, #tpu.memory_space<vmem>>, %arg3: memref<1x32xf32, #tpu.memory_space<vmem>>, %arg4: memref<1x32xf32, #tpu.memory_space<vmem>>, %arg5: memref<1x32xf32, #tpu.memory_space<vmem>>, %arg6: memref<32x64xbf16, #tpu.memory_space<vmem>>, %arg7: memref<1x64xf32, #tpu.memory_space<vmem>>, %arg8: memref<7x32xf32, #tpu.memory_space<vmem>>, %arg9: memref<1x32xf32, #tpu.memory_space<vmem>>, %arg10: memref<1x32xf32, #tpu.memory_space<vmem>>, %arg11: memref<1x32xf32, #tpu.memory_space<vmem>>, %arg12: memref<32x32xbf16, #tpu.memory_space<vmem>>, %arg13: memref<1x32xf32, #tpu.memory_space<vmem>>, %arg14: memref<1x8x32xbf16, #tpu.memory_space<vmem>>) attributes {dimension_semantics = [#tpu.dimension_semantics<parallel>], iteration_bounds = array<i64: 2>, scalar_prefetch = 0 : i64, scratch_operands = 0 : i64, tpu.core_type = #tpu.core_type<tc>, window_params = [{transform_indices = @transform_0, window_bounds = array<i64: 1, 8, 32>}, {pipeline_mode = #tpu.pipeline_mode<synchronous>, transform_indices = @transform_1, window_bounds = array<i64: 1, 32>}, {pipeline_mode = #tpu.pipeline_mode<synchronous>, transform_indices = @transform_2, window_bounds = array<i64: 1, 32>}, {pipeline_mode = #tpu.pipeline_mode<synchronous>, transform_indices = @transform_3, window_bounds = array<i64: 1, 32>}, {pipeline_mode = #tpu.pipeline_mode<synchronous>, transform_indices = @transform_4, window_bounds = array<i64: 1, 32>}, {pipeline_mode = #tpu.pipeline_mode<synchronous>, transform_indices = @transform_5, window_bounds = array<i64: 32, 64>}, {pipeline_mode = #tpu.pipeline_mode<synchronous>, transform_indices = @transform_6, window_bounds = array<i64: 1, 64>}, {pipeline_mode = #tpu.pipeline_mode<synchronous>, transform_indices = @transform_7, window_bounds = array<i64: 7, 32>}, {pipeline_mode = #tpu.pipeline_mode<synchronous>, transform_indices = @transform_8, window_bounds = array<i64: 1, 32>}, {pipeline_mode = #tpu.pipeline_mode<synchronous>, transform_indices = @transform_9, window_bounds = array<i64: 1, 32>}, {pipeline_mode = #tpu.pipeline_mode<synchronous>, transform_indices = @transform_10, window_bounds = array<i64: 1, 32>}, {pipeline_mode = #tpu.pipeline_mode<synchronous>, transform_indices = @transform_11, window_bounds = array<i64: 32, 32>}, {pipeline_mode = #tpu.pipeline_mode<synchronous>, transform_indices = @transform_12, window_bounds = array<i64: 1, 32>}, {transform_indices = @transform_13, window_bounds = array<i64: 1, 8, 32>}]} {
    %c0 = arith.constant 0 : index
    %c0_0 = arith.constant 0 : index
    %c0_1 = arith.constant 0 : index
    %0 = vector.load %arg1[%c0, %c0_0, %c0_1] : memref<1x8x32xbf16, #tpu.memory_space<vmem>>, vector<1x8x32xbf16>
    %1 = vector.shape_cast %0 : vector<1x8x32xbf16> to vector<8x32xbf16>
    %2 = arith.extf %1 : vector<8x32xbf16> to vector<8x32xf32>
    %c0_2 = arith.constant 0 : index
    %c0_3 = arith.constant 0 : index
    %3 = vector.load %arg2[%c0_2, %c0_3] : memref<1x32xf32, #tpu.memory_space<vmem>>, vector<1x32xf32>
    %c0_4 = arith.constant 0 : index
    %c0_5 = arith.constant 0 : index
    %4 = vector.load %arg3[%c0_4, %c0_5] : memref<1x32xf32, #tpu.memory_space<vmem>>, vector<1x32xf32>
    %cst = arith.constant dense<0.000000e+00> : vector<8xf32>
    %5 = vector.multi_reduction <add>, %2, %cst [1] : vector<8x32xf32> to vector<8xf32>
    %6 = vector.shape_cast %5 : vector<8xf32> to vector<8x1xf32>
    %cst_6 = arith.constant 3.200000e+01 : f32
    %7 = vector.broadcast %cst_6 : f32 to vector<8x1xf32>
    %8 = arith.divf %6, %7 : vector<8x1xf32>
    %9 = vector.broadcast %8 : vector<8x1xf32> to vector<8x32xf32>
    %10 = arith.subf %2, %9 : vector<8x32xf32>
    %11 = arith.mulf %10, %10 : vector<8x32xf32>
    %cst_7 = arith.constant dense<0.000000e+00> : vector<8xf32>
    %12 = vector.multi_reduction <add>, %11, %cst_7 [1] : vector<8x32xf32> to vector<8xf32>
    %13 = vector.shape_cast %12 : vector<8xf32> to vector<8x1xf32>
    %cst_8 = arith.constant 3.200000e+01 : f32
    %14 = vector.broadcast %cst_8 : f32 to vector<8x1xf32>
    %15 = arith.divf %13, %14 : vector<8x1xf32>
    %16 = vector.broadcast %8 : vector<8x1xf32> to vector<8x32xf32>
    %17 = arith.subf %2, %16 : vector<8x32xf32>
    %cst_9 = arith.constant 9.99999974E-6 : f32
    %18 = vector.broadcast %cst_9 : f32 to vector<8x1xf32>
    %19 = arith.addf %15, %18 : vector<8x1xf32>
    %20 = math.rsqrt %19 : vector<8x1xf32>
    %21 = vector.broadcast %20 : vector<8x1xf32> to vector<8x32xf32>
    %22 = arith.mulf %17, %21 : vector<8x32xf32>
    %23 = vector.broadcast %3 : vector<1x32xf32> to vector<8x32xf32>
    %24 = arith.mulf %22, %23 : vector<8x32xf32>
    %25 = vector.broadcast %4 : vector<1x32xf32> to vector<8x32xf32>
    %26 = arith.addf %24, %25 : vector<8x32xf32>
    %c0_10 = arith.constant 0 : index
    %c0_11 = arith.constant 0 : index
    %27 = vector.load %arg4[%c0_10, %c0_11] : memref<1x32xf32, #tpu.memory_space<vmem>>, vector<1x32xf32>
    %c0_12 = arith.constant 0 : index
    %c0_13 = arith.constant 0 : index
    %28 = vector.load %arg5[%c0_12, %c0_13] : memref<1x32xf32, #tpu.memory_space<vmem>>, vector<1x32xf32>
    %cst_14 = arith.constant dense<0.000000e+00> : vector<8xf32>
    %29 = vector.multi_reduction <add>, %26, %cst_14 [1] : vector<8x32xf32> to vector<8xf32>
    %30 = vector.shape_cast %29 : vector<8xf32> to vector<8x1xf32>
    %cst_15 = arith.constant 3.200000e+01 : f32
    %31 = vector.broadcast %cst_15 : f32 to vector<8x1xf32>
    %32 = arith.divf %30, %31 : vector<8x1xf32>
    %33 = vector.broadcast %32 : vector<8x1xf32> to vector<8x32xf32>
    %34 = arith.subf %26, %33 : vector<8x32xf32>
    %35 = arith.mulf %34, %34 : vector<8x32xf32>
    %cst_16 = arith.constant dense<0.000000e+00> : vector<8xf32>
    %36 = vector.multi_reduction <add>, %35, %cst_16 [1] : vector<8x32xf32> to vector<8xf32>
    %37 = vector.shape_cast %36 : vector<8xf32> to vector<8x1xf32>
    %cst_17 = arith.constant 3.200000e+01 : f32
    %38 = vector.broadcast %cst_17 : f32 to vector<8x1xf32>
    %39 = arith.divf %37, %38 : vector<8x1xf32>
    %40 = vector.broadcast %32 : vector<8x1xf32> to vector<8x32xf32>
    %41 = arith.subf %26, %40 : vector<8x32xf32>
    %cst_18 = arith.constant 9.99999974E-6 : f32
    %42 = vector.broadcast %cst_18 : f32 to vector<8x1xf32>
    %43 = arith.addf %39, %42 : vector<8x1xf32>
    %44 = math.rsqrt %43 : vector<8x1xf32>
    %45 = vector.broadcast %44 : vector<8x1xf32> to vector<8x32xf32>
    %46 = arith.mulf %41, %45 : vector<8x32xf32>
    %47 = vector.broadcast %27 : vector<1x32xf32> to vector<8x32xf32>
    %48 = arith.mulf %46, %47 : vector<8x32xf32>
    %49 = vector.broadcast %28 : vector<1x32xf32> to vector<8x32xf32>
    %50 = arith.addf %48, %49 : vector<8x32xf32>
    %51 = arith.truncf %50 : vector<8x32xf32> to vector<8x32xbf16>
    %c0_19 = arith.constant 0 : index
    %c0_20 = arith.constant 0 : index
    %52 = vector.load %arg6[%c0_19, %c0_20] : memref<32x64xbf16, #tpu.memory_space<vmem>>, vector<32x64xbf16>
    %cst_21 = arith.constant dense<0.000000e+00> : vector<8x64xf32>
    %53 = tpu.matmul %51, %52, %cst_21 {dimension_numbers = #tpu.dot_dimension_numbers<[1], [0], [0], [1], [0, 0, 1, 1], [], []>} : vector<8x32xbf16>, vector<32x64xbf16>, vector<8x64xf32> -> vector<8x64xf32>
    %c0_22 = arith.constant 0 : index
    %c0_23 = arith.constant 0 : index
    %54 = vector.load %arg7[%c0_22, %c0_23] : memref<1x64xf32, #tpu.memory_space<vmem>>, vector<1x64xf32>
    %55 = vector.broadcast %54 : vector<1x64xf32> to vector<8x64xf32>
    %56 = arith.addf %53, %55 : vector<8x64xf32>
    %57 = vector.extract_strided_slice %56 {offsets = [0, 0], sizes = [8, 32], strides = [1, 1]} : vector<8x64xf32> to vector<8x32xf32>
    %58 = vector.extract_strided_slice %56 {offsets = [0, 32], sizes = [8, 32], strides = [1, 1]} : vector<8x64xf32> to vector<8x32xf32>
    %59 = arith.negf %58 : vector<8x32xf32>
    %60 = math.exp %59 : vector<8x32xf32>
    %cst_24 = arith.constant 1.000000e+00 : f32
    %61 = vector.broadcast %cst_24 : f32 to vector<8x32xf32>
    %62 = arith.addf %61, %60 : vector<8x32xf32>
    %63 = arith.divf %61, %62 : vector<8x32xf32>
    %64 = arith.mulf %57, %63 : vector<8x32xf32>
    %cst_25 = arith.constant 0.000000e+00 : f32
    %65 = vector.broadcast %cst_25 : f32 to vector<8x32xf32>
    %c3_i32 = arith.constant 3 : i32
    %66 = tpu.dynamic_rotate %64 by %c3_i32 dim 0 : vector<8x32xf32>, i32 -> vector<8x32xf32>
    %67 = tpu.iota {dimensions = array<i32: 0>} : vector<8x32xi32>
    %c3_i32_26 = arith.constant 3 : i32
    %68 = vector.broadcast %c3_i32_26 : i32 to vector<8x32xi32>
    %69 = arith.cmpi sge, %67, %68 : vector<8x32xi32>
    %cst_27 = arith.constant 0.000000e+00 : f32
    %70 = vector.broadcast %cst_27 : f32 to vector<8x32xf32>
    %71 = arith.select %69, %66, %70 : vector<8x32xi1>, vector<8x32xf32>
    %c0_28 = arith.constant 0 : index
    %c0_29 = arith.constant 0 : index
    %72 = vector.load %arg8[%c0_28, %c0_29] : memref<7x32xf32, #tpu.memory_space<vmem>>, vector<1x32xf32>
    %73 = vector.broadcast %72 : vector<1x32xf32> to vector<8x32xf32>
    %74 = arith.mulf %71, %73 : vector<8x32xf32>
    %75 = arith.addf %65, %74 : vector<8x32xf32>
    %c2_i32 = arith.constant 2 : i32
    %76 = tpu.dynamic_rotate %64 by %c2_i32 dim 0 : vector<8x32xf32>, i32 -> vector<8x32xf32>
    %77 = tpu.iota {dimensions = array<i32: 0>} : vector<8x32xi32>
    %c2_i32_30 = arith.constant 2 : i32
    %78 = vector.broadcast %c2_i32_30 : i32 to vector<8x32xi32>
    %79 = arith.cmpi sge, %77, %78 : vector<8x32xi32>
    %cst_31 = arith.constant 0.000000e+00 : f32
    %80 = vector.broadcast %cst_31 : f32 to vector<8x32xf32>
    %81 = arith.select %79, %76, %80 : vector<8x32xi1>, vector<8x32xf32>
    %c1 = arith.constant 1 : index
    %c0_32 = arith.constant 0 : index
    %82 = vector.load %arg8[%c1, %c0_32] : memref<7x32xf32, #tpu.memory_space<vmem>>, vector<1x32xf32>
    %83 = vector.broadcast %82 : vector<1x32xf32> to vector<8x32xf32>
    %84 = arith.mulf %81, %83 : vector<8x32xf32>
    %85 = arith.addf %75, %84 : vector<8x32xf32>
    %c1_i32 = arith.constant 1 : i32
    %86 = tpu.dynamic_rotate %64 by %c1_i32 dim 0 : vector<8x32xf32>, i32 -> vector<8x32xf32>
    %87 = tpu.iota {dimensions = array<i32: 0>} : vector<8x32xi32>
    %c1_i32_33 = arith.constant 1 : i32
    %88 = vector.broadcast %c1_i32_33 : i32 to vector<8x32xi32>
    %89 = arith.cmpi sge, %87, %88 : vector<8x32xi32>
    %cst_34 = arith.constant 0.000000e+00 : f32
    %90 = vector.broadcast %cst_34 : f32 to vector<8x32xf32>
    %91 = arith.select %89, %86, %90 : vector<8x32xi1>, vector<8x32xf32>
    %c2 = arith.constant 2 : index
    %c0_35 = arith.constant 0 : index
    %92 = vector.load %arg8[%c2, %c0_35] : memref<7x32xf32, #tpu.memory_space<vmem>>, vector<1x32xf32>
    %93 = vector.broadcast %92 : vector<1x32xf32> to vector<8x32xf32>
    %94 = arith.mulf %91, %93 : vector<8x32xf32>
    %95 = arith.addf %85, %94 : vector<8x32xf32>
    %c3 = arith.constant 3 : index
    %c0_36 = arith.constant 0 : index
    %96 = vector.load %arg8[%c3, %c0_36] : memref<7x32xf32, #tpu.memory_space<vmem>>, vector<1x32xf32>
    %97 = vector.broadcast %96 : vector<1x32xf32> to vector<8x32xf32>
    %98 = arith.mulf %64, %97 : vector<8x32xf32>
    %99 = arith.addf %95, %98 : vector<8x32xf32>
    %c7_i32 = arith.constant 7 : i32
    %100 = tpu.dynamic_rotate %64 by %c7_i32 dim 0 : vector<8x32xf32>, i32 -> vector<8x32xf32>
    %101 = tpu.iota {dimensions = array<i32: 0>} : vector<8x32xi32>
    %c7_i32_37 = arith.constant 7 : i32
    %102 = vector.broadcast %c7_i32_37 : i32 to vector<8x32xi32>
    %103 = arith.cmpi slt, %101, %102 : vector<8x32xi32>
    %cst_38 = arith.constant 0.000000e+00 : f32
    %104 = vector.broadcast %cst_38 : f32 to vector<8x32xf32>
    %105 = arith.select %103, %100, %104 : vector<8x32xi1>, vector<8x32xf32>
    %c4 = arith.constant 4 : index
    %c0_39 = arith.constant 0 : index
    %106 = vector.load %arg8[%c4, %c0_39] : memref<7x32xf32, #tpu.memory_space<vmem>>, vector<1x32xf32>
    %107 = vector.broadcast %106 : vector<1x32xf32> to vector<8x32xf32>
    %108 = arith.mulf %105, %107 : vector<8x32xf32>
    %109 = arith.addf %99, %108 : vector<8x32xf32>
    %c6_i32 = arith.constant 6 : i32
    %110 = tpu.dynamic_rotate %64 by %c6_i32 dim 0 : vector<8x32xf32>, i32 -> vector<8x32xf32>
    %111 = tpu.iota {dimensions = array<i32: 0>} : vector<8x32xi32>
    %c6_i32_40 = arith.constant 6 : i32
    %112 = vector.broadcast %c6_i32_40 : i32 to vector<8x32xi32>
    %113 = arith.cmpi slt, %111, %112 : vector<8x32xi32>
    %cst_41 = arith.constant 0.000000e+00 : f32
    %114 = vector.broadcast %cst_41 : f32 to vector<8x32xf32>
    %115 = arith.select %113, %110, %114 : vector<8x32xi1>, vector<8x32xf32>
    %c5 = arith.constant 5 : index
    %c0_42 = arith.constant 0 : index
    %116 = vector.load %arg8[%c5, %c0_42] : memref<7x32xf32, #tpu.memory_space<vmem>>, vector<1x32xf32>
    %117 = vector.broadcast %116 : vector<1x32xf32> to vector<8x32xf32>
    %118 = arith.mulf %115, %117 : vector<8x32xf32>
    %119 = arith.addf %109, %118 : vector<8x32xf32>
    %c5_i32 = arith.constant 5 : i32
    %120 = tpu.dynamic_rotate %64 by %c5_i32 dim 0 : vector<8x32xf32>, i32 -> vector<8x32xf32>
    %121 = tpu.iota {dimensions = array<i32: 0>} : vector<8x32xi32>
    %c5_i32_43 = arith.constant 5 : i32
    %122 = vector.broadcast %c5_i32_43 : i32 to vector<8x32xi32>
    %123 = arith.cmpi slt, %121, %122 : vector<8x32xi32>
    %cst_44 = arith.constant 0.000000e+00 : f32
    %124 = vector.broadcast %cst_44 : f32 to vector<8x32xf32>
    %125 = arith.select %123, %120, %124 : vector<8x32xi1>, vector<8x32xf32>
    %c6 = arith.constant 6 : index
    %c0_45 = arith.constant 0 : index
    %126 = vector.load %arg8[%c6, %c0_45] : memref<7x32xf32, #tpu.memory_space<vmem>>, vector<1x32xf32>
    %127 = vector.broadcast %126 : vector<1x32xf32> to vector<8x32xf32>
    %128 = arith.mulf %125, %127 : vector<8x32xf32>
    %129 = arith.addf %119, %128 : vector<8x32xf32>
    %c0_46 = arith.constant 0 : index
    %c0_47 = arith.constant 0 : index
    %130 = vector.load %arg9[%c0_46, %c0_47] : memref<1x32xf32, #tpu.memory_space<vmem>>, vector<1x32xf32>
    %131 = vector.broadcast %130 : vector<1x32xf32> to vector<8x32xf32>
    %132 = arith.addf %129, %131 : vector<8x32xf32>
    %c0_48 = arith.constant 0 : index
    %c0_49 = arith.constant 0 : index
    %133 = vector.load %arg10[%c0_48, %c0_49] : memref<1x32xf32, #tpu.memory_space<vmem>>, vector<1x32xf32>
    %134 = vector.broadcast %133 : vector<1x32xf32> to vector<8x32xf32>
    %135 = arith.mulf %132, %134 : vector<8x32xf32>
    %c0_50 = arith.constant 0 : index
    %c0_51 = arith.constant 0 : index
    %136 = vector.load %arg11[%c0_50, %c0_51] : memref<1x32xf32, #tpu.memory_space<vmem>>, vector<1x32xf32>
    %137 = vector.broadcast %136 : vector<1x32xf32> to vector<8x32xf32>
    %138 = arith.addf %135, %137 : vector<8x32xf32>
    %139 = arith.negf %138 : vector<8x32xf32>
    %140 = math.exp %139 : vector<8x32xf32>
    %cst_52 = arith.constant 1.000000e+00 : f32
    %141 = vector.broadcast %cst_52 : f32 to vector<8x32xf32>
    %142 = arith.addf %141, %140 : vector<8x32xf32>
    %143 = arith.divf %141, %142 : vector<8x32xf32>
    %144 = arith.mulf %138, %143 : vector<8x32xf32>
    %145 = arith.truncf %144 : vector<8x32xf32> to vector<8x32xbf16>
    %c0_53 = arith.constant 0 : index
    %c0_54 = arith.constant 0 : index
    %146 = vector.load %arg12[%c0_53, %c0_54] : memref<32x32xbf16, #tpu.memory_space<vmem>>, vector<32x32xbf16>
    %cst_55 = arith.constant dense<0.000000e+00> : vector<8x32xf32>
    %147 = tpu.matmul %145, %146, %cst_55 {dimension_numbers = #tpu.dot_dimension_numbers<[1], [0], [0], [1], [0, 0, 1, 1], [], []>} : vector<8x32xbf16>, vector<32x32xbf16>, vector<8x32xf32> -> vector<8x32xf32>
    %c0_56 = arith.constant 0 : index
    %c0_57 = arith.constant 0 : index
    %148 = vector.load %arg13[%c0_56, %c0_57] : memref<1x32xf32, #tpu.memory_space<vmem>>, vector<1x32xf32>
    %149 = vector.broadcast %148 : vector<1x32xf32> to vector<8x32xf32>
    %150 = arith.addf %147, %149 : vector<8x32xf32>
    %151 = arith.addf %26, %150 : vector<8x32xf32>
    %152 = arith.truncf %151 : vector<8x32xf32> to vector<8x32xbf16>
    %c0_58 = arith.constant 0 : index
    %c0_59 = arith.constant 0 : index
    %c0_60 = arith.constant 0 : index
    %153 = vector.load %arg14[%c0_58, %c0_59, %c0_60] : memref<1x8x32xbf16, #tpu.memory_space<vmem>>, vector<1x8x32xbf16>
    %154 = vector.shape_cast %153 : vector<1x8x32xbf16> to vector<8x32xbf16>
    %155 = vector.shape_cast %152 : vector<8x32xbf16> to vector<1x8x32xbf16>
    tpu.vector_store %arg14[%c0_58, %c0_59, %c0_60], %155 {strides = array<i32>} : memref<1x8x32xbf16, #tpu.memory_space<vmem>>, vector<1x8x32xbf16>,
    return
  }
  func.func @transform_0(%arg0: i32) -> (i32, i32, i32) {
    %c0_i32 = arith.constant 0 : i32
    %c0_i32_0 = arith.constant 0 : i32
    %c0_i32_1 = arith.constant 0 : i32
    return %arg0, %c0_i32, %c0_i32_0 : i32, i32, i32
  }
  func.func @transform_1(%arg0: i32) -> (i32, i32) {
    %c0_i32 = arith.constant 0 : i32
    %c0_i32_0 = arith.constant 0 : i32
    %c0_i32_1 = arith.constant 0 : i32
    return %c0_i32, %c0_i32_0 : i32, i32
  }
  func.func @transform_2(%arg0: i32) -> (i32, i32) {
    %c0_i32 = arith.constant 0 : i32
    %c0_i32_0 = arith.constant 0 : i32
    %c0_i32_1 = arith.constant 0 : i32
    return %c0_i32, %c0_i32_0 : i32, i32
  }
  func.func @transform_3(%arg0: i32) -> (i32, i32) {
    %c0_i32 = arith.constant 0 : i32
    %c0_i32_0 = arith.constant 0 : i32
    %c0_i32_1 = arith.constant 0 : i32
    return %c0_i32, %c0_i32_0 : i32, i32
  }
  func.func @transform_4(%arg0: i32) -> (i32, i32) {
    %c0_i32 = arith.constant 0 : i32
    %c0_i32_0 = arith.constant 0 : i32
    %c0_i32_1 = arith.constant 0 : i32
    return %c0_i32, %c0_i32_0 : i32, i32
  }
  func.func @transform_5(%arg0: i32) -> (i32, i32) {
    %c0_i32 = arith.constant 0 : i32
    %c0_i32_0 = arith.constant 0 : i32
    %c0_i32_1 = arith.constant 0 : i32
    return %c0_i32, %c0_i32_0 : i32, i32
  }
  func.func @transform_6(%arg0: i32) -> (i32, i32) {
    %c0_i32 = arith.constant 0 : i32
    %c0_i32_0 = arith.constant 0 : i32
    %c0_i32_1 = arith.constant 0 : i32
    return %c0_i32, %c0_i32_0 : i32, i32
  }
  func.func @transform_7(%arg0: i32) -> (i32, i32) {
    %c0_i32 = arith.constant 0 : i32
    %c0_i32_0 = arith.constant 0 : i32
    %c0_i32_1 = arith.constant 0 : i32
    return %c0_i32, %c0_i32_0 : i32, i32
  }
  func.func @transform_8(%arg0: i32) -> (i32, i32) {
    %c0_i32 = arith.constant 0 : i32
    %c0_i32_0 = arith.constant 0 : i32
    %c0_i32_1 = arith.constant 0 : i32
    return %c0_i32, %c0_i32_0 : i32, i32
  }
  func.func @transform_9(%arg0: i32) -> (i32, i32) {
    %c0_i32 = arith.constant 0 : i32
    %c0_i32_0 = arith.constant 0 : i32
    %c0_i32_1 = arith.constant 0 : i32
    return %c0_i32, %c0_i32_0 : i32, i32
  }
  func.func @transform_10(%arg0: i32) -> (i32, i32) {
    %c0_i32 = arith.constant 0 : i32
    %c0_i32_0 = arith.constant 0 : i32
    %c0_i32_1 = arith.constant 0 : i32
    return %c0_i32, %c0_i32_0 : i32, i32
  }
  func.func @transform_11(%arg0: i32) -> (i32, i32) {
    %c0_i32 = arith.constant 0 : i32
    %c0_i32_0 = arith.constant 0 : i32
    %c0_i32_1 = arith.constant 0 : i32
    return %c0_i32, %c0_i32_0 : i32, i32
  }
  func.func @transform_12(%arg0: i32) -> (i32, i32) {
    %c0_i32 = arith.constant 0 : i32
    %c0_i32_0 = arith.constant 0 : i32
    %c0_i32_1 = arith.constant 0 : i32
    return %c0_i32, %c0_i32_0 : i32, i32
  }
  func.func @transform_13(%arg0: i32) -> (i32, i32, i32) {
    %c0_i32 = arith.constant 0 : i32
    %c0_i32_0 = arith.constant 0 : i32
    %c0_i32_1 = arith.constant 0 : i32
    return %arg0, %c0_i32, %c0_i32_0 : i32, i32, i32
  }
}

module attributes {stable_mosaic.version = 11 : i64} {
  func.func @kernel(%arg0: i32, %arg1: memref<1x8x32xbf16, #tpu.memory_space<vmem>>, %arg2: memref<32x96xbf16, #tpu.memory_space<vmem>>, %arg3: memref<1x96xf32, #tpu.memory_space<vmem>>, %arg4: memref<1x8x96xbf16, #tpu.memory_space<vmem>>) attributes {dimension_semantics = [#tpu.dimension_semantics<parallel>], iteration_bounds = array<i64: 2>, scalar_prefetch = 0 : i64, scratch_operands = 0 : i64, tpu.core_type = #tpu.core_type<tc>, window_params = [{transform_indices = @transform_0, window_bounds = array<i64: 1, 8, 32>}, {pipeline_mode = #tpu.pipeline_mode<synchronous>, transform_indices = @transform_1, window_bounds = array<i64: 32, 96>}, {pipeline_mode = #tpu.pipeline_mode<synchronous>, transform_indices = @transform_2, window_bounds = array<i64: 1, 96>}, {transform_indices = @transform_3, window_bounds = array<i64: 1, 8, 96>}]} {
    %c0 = arith.constant 0 : index
    %c0_0 = arith.constant 0 : index
    %c0_1 = arith.constant 0 : index
    %0 = vector.load %arg1[%c0, %c0_0, %c0_1] : memref<1x8x32xbf16, #tpu.memory_space<vmem>>, vector<1x8x32xbf16>
    %1 = vector.shape_cast %0 : vector<1x8x32xbf16> to vector<8x32xbf16>
    %c0_2 = arith.constant 0 : index
    %c0_3 = arith.constant 0 : index
    %2 = vector.load %arg2[%c0_2, %c0_3] : memref<32x96xbf16, #tpu.memory_space<vmem>>, vector<32x96xbf16>
    %cst = arith.constant dense<0.000000e+00> : vector<8x96xf32>
    %3 = tpu.matmul %1, %2, %cst {dimension_numbers = #tpu.dot_dimension_numbers<[1], [0], [0], [1], [0, 0, 1, 1], [], []>} : vector<8x32xbf16>, vector<32x96xbf16>, vector<8x96xf32> -> vector<8x96xf32>
    %c0_4 = arith.constant 0 : index
    %c0_5 = arith.constant 0 : index
    %4 = vector.load %arg3[%c0_4, %c0_5] : memref<1x96xf32, #tpu.memory_space<vmem>>, vector<1x96xf32>
    %5 = vector.broadcast %4 : vector<1x96xf32> to vector<8x96xf32>
    %6 = arith.addf %3, %5 : vector<8x96xf32>
    %7 = arith.truncf %6 : vector<8x96xf32> to vector<8x96xbf16>
    %c0_6 = arith.constant 0 : index
    %c0_7 = arith.constant 0 : index
    %c0_8 = arith.constant 0 : index
    %8 = vector.load %arg4[%c0_6, %c0_7, %c0_8] : memref<1x8x96xbf16, #tpu.memory_space<vmem>>, vector<1x8x96xbf16>
    %9 = vector.shape_cast %8 : vector<1x8x96xbf16> to vector<8x96xbf16>
    %10 = vector.shape_cast %7 : vector<8x96xbf16> to vector<1x8x96xbf16>
    tpu.vector_store %arg4[%c0_6, %c0_7, %c0_8], %10 {strides = array<i32>} : memref<1x8x96xbf16, #tpu.memory_space<vmem>>, vector<1x8x96xbf16>,
    return
  }
  func.func @transform_0(%arg0: i32) -> (i32, i32, i32) {
    %c0_i32 = arith.constant 0 : i32
    %c0_i32_0 = arith.constant 0 : i32
    %c0_i32_1 = arith.constant 0 : i32
    return %arg0, %c0_i32, %c0_i32_0 : i32, i32, i32
  }
  func.func @transform_1(%arg0: i32) -> (i32, i32) {
    %c0_i32 = arith.constant 0 : i32
    %c0_i32_0 = arith.constant 0 : i32
    %c0_i32_1 = arith.constant 0 : i32
    return %c0_i32, %c0_i32_0 : i32, i32
  }
  func.func @transform_2(%arg0: i32) -> (i32, i32) {
    %c0_i32 = arith.constant 0 : i32
    %c0_i32_0 = arith.constant 0 : i32
    %c0_i32_1 = arith.constant 0 : i32
    return %c0_i32, %c0_i32_0 : i32, i32
  }
  func.func @transform_3(%arg0: i32) -> (i32, i32, i32) {
    %c0_i32 = arith.constant 0 : i32
    %c0_i32_0 = arith.constant 0 : i32
    %c0_i32_1 = arith.constant 0 : i32
    return %arg0, %c0_i32, %c0_i32_0 : i32, i32, i32
  }
}

module attributes {stable_mosaic.version = 11 : i64} {
  func.func @kernel(%arg0: i32, %arg1: memref<1x8x96xbf16, #tpu.memory_space<vmem>>, %arg2: memref<1x128x32xbf16, #tpu.memory_space<vmem>>, %arg3: memref<32x32xbf16, #tpu.memory_space<vmem>>, %arg4: memref<1x32xf32, #tpu.memory_space<vmem>>, %arg5: memref<1x32xf32, #tpu.memory_space<vmem>>, %arg6: memref<1x1x8xf32, #tpu.memory_space<vmem>>, %arg7: memref<32x32xbf16, #tpu.memory_space<vmem>>, %arg8: memref<1x32xf32, #tpu.memory_space<vmem>>, %arg9: memref<1x8x32xbf16, #tpu.memory_space<vmem>>, %arg10: memref<1x8x32xbf16, #tpu.memory_space<vmem>>, %arg11: memref<1x4x8x8xbf16, #tpu.memory_space<vmem>>) attributes {dimension_semantics = [#tpu.dimension_semantics<parallel>], iteration_bounds = array<i64: 2>, scalar_prefetch = 0 : i64, scratch_operands = 0 : i64, tpu.core_type = #tpu.core_type<tc>, window_params = [{transform_indices = @transform_0, window_bounds = array<i64: 1, 8, 96>}, {pipeline_mode = #tpu.pipeline_mode<synchronous>, transform_indices = @transform_1, window_bounds = array<i64: 1, 128, 32>}, {pipeline_mode = #tpu.pipeline_mode<synchronous>, transform_indices = @transform_2, window_bounds = array<i64: 32, 32>}, {pipeline_mode = #tpu.pipeline_mode<synchronous>, transform_indices = @transform_3, window_bounds = array<i64: 1, 32>}, {pipeline_mode = #tpu.pipeline_mode<synchronous>, transform_indices = @transform_4, window_bounds = array<i64: 1, 32>}, {transform_indices = @transform_5, window_bounds = array<i64: 1, 1, 8>}, {pipeline_mode = #tpu.pipeline_mode<synchronous>, transform_indices = @transform_6, window_bounds = array<i64: 32, 32>}, {pipeline_mode = #tpu.pipeline_mode<synchronous>, transform_indices = @transform_7, window_bounds = array<i64: 1, 32>}, {transform_indices = @transform_8, window_bounds = array<i64: 1, 8, 32>}, {transform_indices = @transform_9, window_bounds = array<i64: 1, 8, 32>}, {transform_indices = @transform_10, window_bounds = array<i64: 1, 4, 8, 8>}]} {
    %c0 = arith.constant 0 : index
    %c0_0 = arith.constant 0 : index
    %c0_1 = arith.constant 0 : index
    %0 = vector.load %arg1[%c0, %c0_0, %c0_1] : memref<1x8x96xbf16, #tpu.memory_space<vmem>>, vector<1x8x96xbf16>
    %1 = vector.shape_cast %0 : vector<1x8x96xbf16> to vector<8x96xbf16>
    %c0_2 = arith.constant 0 : index
    %c0_3 = arith.constant 0 : index
    %c0_4 = arith.constant 0 : index
    %2 = vector.load %arg2[%c0_2, %c0_3, %c0_4] : memref<1x128x32xbf16, #tpu.memory_space<vmem>>, vector<1x128x32xbf16>
    %3 = vector.shape_cast %2 : vector<1x128x32xbf16> to vector<128x32xbf16>
    %c0_5 = arith.constant 0 : index
    %c0_6 = arith.constant 0 : index
    %4 = vector.load %arg3[%c0_5, %c0_6] : memref<32x32xbf16, #tpu.memory_space<vmem>>, vector<32x32xbf16>
    %cst = arith.constant dense<0.000000e+00> : vector<128x32xf32>
    %5 = tpu.matmul %3, %4, %cst {dimension_numbers = #tpu.dot_dimension_numbers<[1], [0], [0], [1], [0, 0, 1, 1], [], []>} : vector<128x32xbf16>, vector<32x32xbf16>, vector<128x32xf32> -> vector<128x32xf32>
    %6 = arith.truncf %5 : vector<128x32xf32> to vector<128x32xbf16>
    %c0_7 = arith.constant 0 : index
    %c0_8 = arith.constant 0 : index
    %c0_9 = arith.constant 0 : index
    %7 = vector.load %arg6[%c0_7, %c0_8, %c0_9] : memref<1x1x8xf32, #tpu.memory_space<vmem>>, vector<1x1x8xf32>
    %8 = vector.shape_cast %7 : vector<1x1x8xf32> to vector<1x8xf32>
    %cst_10 = arith.constant 0.000000e+00 : f32
    %9 = vector.broadcast %cst_10 : f32 to vector<1x8xf32>
    %10 = arith.cmpf ogt, %8, %9 : vector<1x8xf32>
    %cst_11 = arith.constant 0.000000e+00 : f32
    %cst_12 = arith.constant -1.000000e+09 : f32
    %11 = vector.broadcast %cst_11 : f32 to vector<1x8xf32>
    %12 = vector.broadcast %cst_12 : f32 to vector<1x8xf32>
    %13 = arith.select %10, %11, %12 : vector<1x8xi1>, vector<1x8xf32>
    %c0_13 = arith.constant 0 : index
    %c0_14 = arith.constant 0 : index
    %14 = vector.load %arg4[%c0_13, %c0_14] : memref<1x32xf32, #tpu.memory_space<vmem>>, vector<1x32xf32>
    %c0_15 = arith.constant 0 : index
    %c0_16 = arith.constant 0 : index
    %15 = vector.load %arg5[%c0_15, %c0_16] : memref<1x32xf32, #tpu.memory_space<vmem>>, vector<1x32xf32>
    %16 = vector.extract_strided_slice %1 {offsets = [0, 0], sizes = [8, 8], strides = [1, 1]} : vector<8x96xbf16> to vector<8x8xbf16>
    %17 = arith.extf %16 : vector<8x8xbf16> to vector<8x8xf32>
    %18 = vector.extract_strided_slice %1 {offsets = [0, 32], sizes = [8, 8], strides = [1, 1]} : vector<8x96xbf16> to vector<8x8xbf16>
    %19 = vector.extract_strided_slice %1 {offsets = [0, 64], sizes = [8, 8], strides = [1, 1]} : vector<8x96xbf16> to vector<8x8xbf16>
    %20 = vector.extract_strided_slice %14 {offsets = [0, 0], sizes = [1, 8], strides = [1, 1]} : vector<1x32xf32> to vector<1x8xf32>
    %21 = vector.broadcast %20 : vector<1x8xf32> to vector<8x8xf32>
    %22 = arith.addf %17, %21 : vector<8x8xf32>
    %23 = arith.truncf %22 : vector<8x8xf32> to vector<8x8xbf16>
    %24 = vector.extract_strided_slice %15 {offsets = [0, 0], sizes = [1, 8], strides = [1, 1]} : vector<1x32xf32> to vector<1x8xf32>
    %25 = vector.broadcast %24 : vector<1x8xf32> to vector<8x8xf32>
    %26 = arith.addf %17, %25 : vector<8x8xf32>
    %27 = arith.truncf %26 : vector<8x8xf32> to vector<8x8xbf16>
    %cst_17 = arith.constant dense<0.000000e+00> : vector<8x8xf32>
    %28 = tpu.matmul %23, %18, %cst_17 {dimension_numbers = #tpu.dot_dimension_numbers<[1], [1], [0], [0], [0, 0, 1, 0], [], []>} : vector<8x8xbf16>, vector<8x8xbf16>, vector<8x8xf32> -> vector<8x8xf32>
    %29 = vector.extract_strided_slice %6 {offsets = [0, 0], sizes = [128, 8], strides = [1, 1]} : vector<128x32xbf16> to vector<128x8xbf16>
    %cst_18 = arith.constant dense<0.000000e+00> : vector<8x128xf32>
    %30 = tpu.matmul %27, %29, %cst_18 {dimension_numbers = #tpu.dot_dimension_numbers<[1], [1], [0], [0], [0, 0, 1, 0], [], []>} : vector<8x8xbf16>, vector<128x8xbf16>, vector<8x128xf32> -> vector<8x128xf32>
    %c1_i32 = arith.constant 1 : i32
    %31 = tpu.dynamic_rotate %30 by %c1_i32 dim 1 {stride = 1 : si32, stride_dimension = 0 : si32} : vector<8x128xf32>, i32 -> vector<8x128xf32>
    %32 = vector.extract_strided_slice %31 {offsets = [0, 0], sizes = [8, 8], strides = [1, 1]} : vector<8x128xf32> to vector<8x8xf32>
    %33 = arith.addf %28, %32 : vector<8x8xf32>
    %cst_19 = arith.constant 0.353553385 : f32
    %34 = vector.broadcast %cst_19 : f32 to vector<8x8xf32>
    %35 = arith.mulf %33, %34 : vector<8x8xf32>
    %36 = vector.broadcast %13 : vector<1x8xf32> to vector<8x8xf32>
    %37 = arith.addf %35, %36 : vector<8x8xf32>
    %cst_20 = arith.constant dense<0xFF800000> : vector<8xf32>
    %38 = vector.multi_reduction <maximumf>, %37, %cst_20 [1] : vector<8x8xf32> to vector<8xf32>
    %39 = vector.shape_cast %38 : vector<8xf32> to vector<8x1xf32>
    %40 = vector.broadcast %39 : vector<8x1xf32> to vector<8x8xf32>
    %41 = arith.subf %37, %40 : vector<8x8xf32>
    %42 = math.exp %41 : vector<8x8xf32>
    %cst_21 = arith.constant dense<0.000000e+00> : vector<8xf32>
    %43 = vector.multi_reduction <add>, %42, %cst_21 [1] : vector<8x8xf32> to vector<8xf32>
    %44 = vector.shape_cast %43 : vector<8xf32> to vector<8x1xf32>
    %45 = tpu.reciprocal %44 {approx = true} : vector<8x1xf32> -> vector<8x1xf32>
    %46 = vector.broadcast %45 : vector<8x1xf32> to vector<8x8xf32>
    %47 = arith.mulf %42, %46 : vector<8x8xf32>
    %48 = arith.truncf %47 : vector<8x8xf32> to vector<8x8xbf16>
    %c0_22 = arith.constant 0 : index
    %c0_23 = arith.constant 0 : index
    %c0_24 = arith.constant 0 : index
    %c0_25 = arith.constant 0 : index
    %49 = vector.load %arg11[%c0_22, %c0_23, %c0_24, %c0_25] : memref<1x4x8x8xbf16, #tpu.memory_space<vmem>>, vector<1x1x8x8xbf16>
    %50 = vector.shape_cast %49 : vector<1x1x8x8xbf16> to vector<8x8xbf16>
    %51 = vector.shape_cast %48 : vector<8x8xbf16> to vector<1x1x8x8xbf16>
    tpu.vector_store %arg11[%c0_22, %c0_23, %c0_24, %c0_25], %51 {strides = array<i32>} : memref<1x4x8x8xbf16, #tpu.memory_space<vmem>>, vector<1x1x8x8xbf16>,
    %52 = arith.truncf %47 : vector<8x8xf32> to vector<8x8xbf16>
    %cst_26 = arith.constant dense<0.000000e+00> : vector<8x8xf32>
    %53 = tpu.matmul %52, %19, %cst_26 {dimension_numbers = #tpu.dot_dimension_numbers<[1], [0], [0], [1], [0, 0, 1, 1], [], []>} : vector<8x8xbf16>, vector<8x8xbf16>, vector<8x8xf32> -> vector<8x8xf32>
    %54 = vector.extract_strided_slice %1 {offsets = [0, 8], sizes = [8, 8], strides = [1, 1]} : vector<8x96xbf16> to vector<8x8xbf16>
    %55 = arith.extf %54 : vector<8x8xbf16> to vector<8x8xf32>
    %56 = vector.extract_strided_slice %1 {offsets = [0, 40], sizes = [8, 8], strides = [1, 1]} : vector<8x96xbf16> to vector<8x8xbf16>
    %57 = vector.extract_strided_slice %1 {offsets = [0, 72], sizes = [8, 8], strides = [1, 1]} : vector<8x96xbf16> to vector<8x8xbf16>
    %58 = vector.extract_strided_slice %14 {offsets = [0, 8], sizes = [1, 8], strides = [1, 1]} : vector<1x32xf32> to vector<1x8xf32>
    %59 = vector.broadcast %58 : vector<1x8xf32> to vector<8x8xf32>
    %60 = arith.addf %55, %59 : vector<8x8xf32>
    %61 = arith.truncf %60 : vector<8x8xf32> to vector<8x8xbf16>
    %62 = vector.extract_strided_slice %15 {offsets = [0, 8], sizes = [1, 8], strides = [1, 1]} : vector<1x32xf32> to vector<1x8xf32>
    %63 = vector.broadcast %62 : vector<1x8xf32> to vector<8x8xf32>
    %64 = arith.addf %55, %63 : vector<8x8xf32>
    %65 = arith.truncf %64 : vector<8x8xf32> to vector<8x8xbf16>
    %cst_27 = arith.constant dense<0.000000e+00> : vector<8x8xf32>
    %66 = tpu.matmul %61, %56, %cst_27 {dimension_numbers = #tpu.dot_dimension_numbers<[1], [1], [0], [0], [0, 0, 1, 0], [], []>} : vector<8x8xbf16>, vector<8x8xbf16>, vector<8x8xf32> -> vector<8x8xf32>
    %67 = vector.extract_strided_slice %6 {offsets = [0, 8], sizes = [128, 8], strides = [1, 1]} : vector<128x32xbf16> to vector<128x8xbf16>
    %cst_28 = arith.constant dense<0.000000e+00> : vector<8x128xf32>
    %68 = tpu.matmul %65, %67, %cst_28 {dimension_numbers = #tpu.dot_dimension_numbers<[1], [1], [0], [0], [0, 0, 1, 0], [], []>} : vector<8x8xbf16>, vector<128x8xbf16>, vector<8x128xf32> -> vector<8x128xf32>
    %c1_i32_29 = arith.constant 1 : i32
    %69 = tpu.dynamic_rotate %68 by %c1_i32_29 dim 1 {stride = 1 : si32, stride_dimension = 0 : si32} : vector<8x128xf32>, i32 -> vector<8x128xf32>
    %70 = vector.extract_strided_slice %69 {offsets = [0, 0], sizes = [8, 8], strides = [1, 1]} : vector<8x128xf32> to vector<8x8xf32>
    %71 = arith.addf %66, %70 : vector<8x8xf32>
    %cst_30 = arith.constant 0.353553385 : f32
    %72 = vector.broadcast %cst_30 : f32 to vector<8x8xf32>
    %73 = arith.mulf %71, %72 : vector<8x8xf32>
    %74 = vector.broadcast %13 : vector<1x8xf32> to vector<8x8xf32>
    %75 = arith.addf %73, %74 : vector<8x8xf32>
    %cst_31 = arith.constant dense<0xFF800000> : vector<8xf32>
    %76 = vector.multi_reduction <maximumf>, %75, %cst_31 [1] : vector<8x8xf32> to vector<8xf32>
    %77 = vector.shape_cast %76 : vector<8xf32> to vector<8x1xf32>
    %78 = vector.broadcast %77 : vector<8x1xf32> to vector<8x8xf32>
    %79 = arith.subf %75, %78 : vector<8x8xf32>
    %80 = math.exp %79 : vector<8x8xf32>
    %cst_32 = arith.constant dense<0.000000e+00> : vector<8xf32>
    %81 = vector.multi_reduction <add>, %80, %cst_32 [1] : vector<8x8xf32> to vector<8xf32>
    %82 = vector.shape_cast %81 : vector<8xf32> to vector<8x1xf32>
    %83 = tpu.reciprocal %82 {approx = true} : vector<8x1xf32> -> vector<8x1xf32>
    %84 = vector.broadcast %83 : vector<8x1xf32> to vector<8x8xf32>
    %85 = arith.mulf %80, %84 : vector<8x8xf32>
    %86 = arith.truncf %85 : vector<8x8xf32> to vector<8x8xbf16>
    %c0_33 = arith.constant 0 : index
    %c1 = arith.constant 1 : index
    %c0_34 = arith.constant 0 : index
    %c0_35 = arith.constant 0 : index
    %87 = vector.load %arg11[%c0_33, %c1, %c0_34, %c0_35] : memref<1x4x8x8xbf16, #tpu.memory_space<vmem>>, vector<1x1x8x8xbf16>
    %88 = vector.shape_cast %87 : vector<1x1x8x8xbf16> to vector<8x8xbf16>
    %89 = vector.shape_cast %86 : vector<8x8xbf16> to vector<1x1x8x8xbf16>
    tpu.vector_store %arg11[%c0_33, %c1, %c0_34, %c0_35], %89 {strides = array<i32>} : memref<1x4x8x8xbf16, #tpu.memory_space<vmem>>, vector<1x1x8x8xbf16>,
    %90 = arith.truncf %85 : vector<8x8xf32> to vector<8x8xbf16>
    %cst_36 = arith.constant dense<0.000000e+00> : vector<8x8xf32>
    %91 = tpu.matmul %90, %57, %cst_36 {dimension_numbers = #tpu.dot_dimension_numbers<[1], [0], [0], [1], [0, 0, 1, 1], [], []>} : vector<8x8xbf16>, vector<8x8xbf16>, vector<8x8xf32> -> vector<8x8xf32>
    %92 = vector.extract_strided_slice %1 {offsets = [0, 16], sizes = [8, 8], strides = [1, 1]} : vector<8x96xbf16> to vector<8x8xbf16>
    %93 = arith.extf %92 : vector<8x8xbf16> to vector<8x8xf32>
    %94 = vector.extract_strided_slice %1 {offsets = [0, 48], sizes = [8, 8], strides = [1, 1]} : vector<8x96xbf16> to vector<8x8xbf16>
    %95 = vector.extract_strided_slice %1 {offsets = [0, 80], sizes = [8, 8], strides = [1, 1]} : vector<8x96xbf16> to vector<8x8xbf16>
    %96 = vector.extract_strided_slice %14 {offsets = [0, 16], sizes = [1, 8], strides = [1, 1]} : vector<1x32xf32> to vector<1x8xf32>
    %97 = vector.broadcast %96 : vector<1x8xf32> to vector<8x8xf32>
    %98 = arith.addf %93, %97 : vector<8x8xf32>
    %99 = arith.truncf %98 : vector<8x8xf32> to vector<8x8xbf16>
    %100 = vector.extract_strided_slice %15 {offsets = [0, 16], sizes = [1, 8], strides = [1, 1]} : vector<1x32xf32> to vector<1x8xf32>
    %101 = vector.broadcast %100 : vector<1x8xf32> to vector<8x8xf32>
    %102 = arith.addf %93, %101 : vector<8x8xf32>
    %103 = arith.truncf %102 : vector<8x8xf32> to vector<8x8xbf16>
    %cst_37 = arith.constant dense<0.000000e+00> : vector<8x8xf32>
    %104 = tpu.matmul %99, %94, %cst_37 {dimension_numbers = #tpu.dot_dimension_numbers<[1], [1], [0], [0], [0, 0, 1, 0], [], []>} : vector<8x8xbf16>, vector<8x8xbf16>, vector<8x8xf32> -> vector<8x8xf32>
    %105 = vector.extract_strided_slice %6 {offsets = [0, 16], sizes = [128, 8], strides = [1, 1]} : vector<128x32xbf16> to vector<128x8xbf16>
    %cst_38 = arith.constant dense<0.000000e+00> : vector<8x128xf32>
    %106 = tpu.matmul %103, %105, %cst_38 {dimension_numbers = #tpu.dot_dimension_numbers<[1], [1], [0], [0], [0, 0, 1, 0], [], []>} : vector<8x8xbf16>, vector<128x8xbf16>, vector<8x128xf32> -> vector<8x128xf32>
    %c1_i32_39 = arith.constant 1 : i32
    %107 = tpu.dynamic_rotate %106 by %c1_i32_39 dim 1 {stride = 1 : si32, stride_dimension = 0 : si32} : vector<8x128xf32>, i32 -> vector<8x128xf32>
    %108 = vector.extract_strided_slice %107 {offsets = [0, 0], sizes = [8, 8], strides = [1, 1]} : vector<8x128xf32> to vector<8x8xf32>
    %109 = arith.addf %104, %108 : vector<8x8xf32>
    %cst_40 = arith.constant 0.353553385 : f32
    %110 = vector.broadcast %cst_40 : f32 to vector<8x8xf32>
    %111 = arith.mulf %109, %110 : vector<8x8xf32>
    %112 = vector.broadcast %13 : vector<1x8xf32> to vector<8x8xf32>
    %113 = arith.addf %111, %112 : vector<8x8xf32>
    %cst_41 = arith.constant dense<0xFF800000> : vector<8xf32>
    %114 = vector.multi_reduction <maximumf>, %113, %cst_41 [1] : vector<8x8xf32> to vector<8xf32>
    %115 = vector.shape_cast %114 : vector<8xf32> to vector<8x1xf32>
    %116 = vector.broadcast %115 : vector<8x1xf32> to vector<8x8xf32>
    %117 = arith.subf %113, %116 : vector<8x8xf32>
    %118 = math.exp %117 : vector<8x8xf32>
    %cst_42 = arith.constant dense<0.000000e+00> : vector<8xf32>
    %119 = vector.multi_reduction <add>, %118, %cst_42 [1] : vector<8x8xf32> to vector<8xf32>
    %120 = vector.shape_cast %119 : vector<8xf32> to vector<8x1xf32>
    %121 = tpu.reciprocal %120 {approx = true} : vector<8x1xf32> -> vector<8x1xf32>
    %122 = vector.broadcast %121 : vector<8x1xf32> to vector<8x8xf32>
    %123 = arith.mulf %118, %122 : vector<8x8xf32>
    %124 = arith.truncf %123 : vector<8x8xf32> to vector<8x8xbf16>
    %c0_43 = arith.constant 0 : index
    %c2 = arith.constant 2 : index
    %c0_44 = arith.constant 0 : index
    %c0_45 = arith.constant 0 : index
    %125 = vector.load %arg11[%c0_43, %c2, %c0_44, %c0_45] : memref<1x4x8x8xbf16, #tpu.memory_space<vmem>>, vector<1x1x8x8xbf16>
    %126 = vector.shape_cast %125 : vector<1x1x8x8xbf16> to vector<8x8xbf16>
    %127 = vector.shape_cast %124 : vector<8x8xbf16> to vector<1x1x8x8xbf16>
    tpu.vector_store %arg11[%c0_43, %c2, %c0_44, %c0_45], %127 {strides = array<i32>} : memref<1x4x8x8xbf16, #tpu.memory_space<vmem>>, vector<1x1x8x8xbf16>,
    %128 = arith.truncf %123 : vector<8x8xf32> to vector<8x8xbf16>
    %cst_46 = arith.constant dense<0.000000e+00> : vector<8x8xf32>
    %129 = tpu.matmul %128, %95, %cst_46 {dimension_numbers = #tpu.dot_dimension_numbers<[1], [0], [0], [1], [0, 0, 1, 1], [], []>} : vector<8x8xbf16>, vector<8x8xbf16>, vector<8x8xf32> -> vector<8x8xf32>
    %130 = vector.extract_strided_slice %1 {offsets = [0, 24], sizes = [8, 8], strides = [1, 1]} : vector<8x96xbf16> to vector<8x8xbf16>
    %131 = arith.extf %130 : vector<8x8xbf16> to vector<8x8xf32>
    %132 = vector.extract_strided_slice %1 {offsets = [0, 56], sizes = [8, 8], strides = [1, 1]} : vector<8x96xbf16> to vector<8x8xbf16>
    %133 = vector.extract_strided_slice %1 {offsets = [0, 88], sizes = [8, 8], strides = [1, 1]} : vector<8x96xbf16> to vector<8x8xbf16>
    %134 = vector.extract_strided_slice %14 {offsets = [0, 24], sizes = [1, 8], strides = [1, 1]} : vector<1x32xf32> to vector<1x8xf32>
    %135 = vector.broadcast %134 : vector<1x8xf32> to vector<8x8xf32>
    %136 = arith.addf %131, %135 : vector<8x8xf32>
    %137 = arith.truncf %136 : vector<8x8xf32> to vector<8x8xbf16>
    %138 = vector.extract_strided_slice %15 {offsets = [0, 24], sizes = [1, 8], strides = [1, 1]} : vector<1x32xf32> to vector<1x8xf32>
    %139 = vector.broadcast %138 : vector<1x8xf32> to vector<8x8xf32>
    %140 = arith.addf %131, %139 : vector<8x8xf32>
    %141 = arith.truncf %140 : vector<8x8xf32> to vector<8x8xbf16>
    %cst_47 = arith.constant dense<0.000000e+00> : vector<8x8xf32>
    %142 = tpu.matmul %137, %132, %cst_47 {dimension_numbers = #tpu.dot_dimension_numbers<[1], [1], [0], [0], [0, 0, 1, 0], [], []>} : vector<8x8xbf16>, vector<8x8xbf16>, vector<8x8xf32> -> vector<8x8xf32>
    %143 = vector.extract_strided_slice %6 {offsets = [0, 24], sizes = [128, 8], strides = [1, 1]} : vector<128x32xbf16> to vector<128x8xbf16>
    %cst_48 = arith.constant dense<0.000000e+00> : vector<8x128xf32>
    %144 = tpu.matmul %141, %143, %cst_48 {dimension_numbers = #tpu.dot_dimension_numbers<[1], [1], [0], [0], [0, 0, 1, 0], [], []>} : vector<8x8xbf16>, vector<128x8xbf16>, vector<8x128xf32> -> vector<8x128xf32>
    %c1_i32_49 = arith.constant 1 : i32
    %145 = tpu.dynamic_rotate %144 by %c1_i32_49 dim 1 {stride = 1 : si32, stride_dimension = 0 : si32} : vector<8x128xf32>, i32 -> vector<8x128xf32>
    %146 = vector.extract_strided_slice %145 {offsets = [0, 0], sizes = [8, 8], strides = [1, 1]} : vector<8x128xf32> to vector<8x8xf32>
    %147 = arith.addf %142, %146 : vector<8x8xf32>
    %cst_50 = arith.constant 0.353553385 : f32
    %148 = vector.broadcast %cst_50 : f32 to vector<8x8xf32>
    %149 = arith.mulf %147, %148 : vector<8x8xf32>
    %150 = vector.broadcast %13 : vector<1x8xf32> to vector<8x8xf32>
    %151 = arith.addf %149, %150 : vector<8x8xf32>
    %cst_51 = arith.constant dense<0xFF800000> : vector<8xf32>
    %152 = vector.multi_reduction <maximumf>, %151, %cst_51 [1] : vector<8x8xf32> to vector<8xf32>
    %153 = vector.shape_cast %152 : vector<8xf32> to vector<8x1xf32>
    %154 = vector.broadcast %153 : vector<8x1xf32> to vector<8x8xf32>
    %155 = arith.subf %151, %154 : vector<8x8xf32>
    %156 = math.exp %155 : vector<8x8xf32>
    %cst_52 = arith.constant dense<0.000000e+00> : vector<8xf32>
    %157 = vector.multi_reduction <add>, %156, %cst_52 [1] : vector<8x8xf32> to vector<8xf32>
    %158 = vector.shape_cast %157 : vector<8xf32> to vector<8x1xf32>
    %159 = tpu.reciprocal %158 {approx = true} : vector<8x1xf32> -> vector<8x1xf32>
    %160 = vector.broadcast %159 : vector<8x1xf32> to vector<8x8xf32>
    %161 = arith.mulf %156, %160 : vector<8x8xf32>
    %162 = arith.truncf %161 : vector<8x8xf32> to vector<8x8xbf16>
    %c0_53 = arith.constant 0 : index
    %c3 = arith.constant 3 : index
    %c0_54 = arith.constant 0 : index
    %c0_55 = arith.constant 0 : index
    %163 = vector.load %arg11[%c0_53, %c3, %c0_54, %c0_55] : memref<1x4x8x8xbf16, #tpu.memory_space<vmem>>, vector<1x1x8x8xbf16>
    %164 = vector.shape_cast %163 : vector<1x1x8x8xbf16> to vector<8x8xbf16>
    %165 = vector.shape_cast %162 : vector<8x8xbf16> to vector<1x1x8x8xbf16>
    tpu.vector_store %arg11[%c0_53, %c3, %c0_54, %c0_55], %165 {strides = array<i32>} : memref<1x4x8x8xbf16, #tpu.memory_space<vmem>>, vector<1x1x8x8xbf16>,
    %166 = arith.truncf %161 : vector<8x8xf32> to vector<8x8xbf16>
    %cst_56 = arith.constant dense<0.000000e+00> : vector<8x8xf32>
    %167 = tpu.matmul %166, %133, %cst_56 {dimension_numbers = #tpu.dot_dimension_numbers<[1], [0], [0], [1], [0, 0, 1, 1], [], []>} : vector<8x8xbf16>, vector<8x8xbf16>, vector<8x8xf32> -> vector<8x8xf32>
    %168 = tpu.concatenate %53, %91, %129, %167 in 1 : vector<8x8xf32>, vector<8x8xf32>, vector<8x8xf32>, vector<8x8xf32> -> vector<8x32xf32>
    %169 = arith.truncf %168 : vector<8x32xf32> to vector<8x32xbf16>
    %c0_57 = arith.constant 0 : index
    %c0_58 = arith.constant 0 : index
    %170 = vector.load %arg7[%c0_57, %c0_58] : memref<32x32xbf16, #tpu.memory_space<vmem>>, vector<32x32xbf16>
    %cst_59 = arith.constant dense<0.000000e+00> : vector<8x32xf32>
    %171 = tpu.matmul %169, %170, %cst_59 {dimension_numbers = #tpu.dot_dimension_numbers<[1], [0], [0], [1], [0, 0, 1, 1], [], []>} : vector<8x32xbf16>, vector<32x32xbf16>, vector<8x32xf32> -> vector<8x32xf32>
    %c0_60 = arith.constant 0 : index
    %c0_61 = arith.constant 0 : index
    %172 = vector.load %arg8[%c0_60, %c0_61] : memref<1x32xf32, #tpu.memory_space<vmem>>, vector<1x32xf32>
    %173 = vector.broadcast %172 : vector<1x32xf32> to vector<8x32xf32>
    %174 = arith.addf %171, %173 : vector<8x32xf32>
    %c0_62 = arith.constant 0 : index
    %c0_63 = arith.constant 0 : index
    %c0_64 = arith.constant 0 : index
    %175 = vector.load %arg9[%c0_62, %c0_63, %c0_64] : memref<1x8x32xbf16, #tpu.memory_space<vmem>>, vector<1x8x32xbf16>
    %176 = vector.shape_cast %175 : vector<1x8x32xbf16> to vector<8x32xbf16>
    %177 = arith.extf %176 : vector<8x32xbf16> to vector<8x32xf32>
    %178 = arith.addf %177, %174 : vector<8x32xf32>
    %179 = arith.truncf %178 : vector<8x32xf32> to vector<8x32xbf16>
    %c0_65 = arith.constant 0 : index
    %c0_66 = arith.constant 0 : index
    %c0_67 = arith.constant 0 : index
    %180 = vector.load %arg10[%c0_65, %c0_66, %c0_67] : memref<1x8x32xbf16, #tpu.memory_space<vmem>>, vector<1x8x32xbf16>
    %181 = vector.shape_cast %180 : vector<1x8x32xbf16> to vector<8x32xbf16>
    %182 = vector.shape_cast %179 : vector<8x32xbf16> to vector<1x8x32xbf16>
    tpu.vector_store %arg10[%c0_65, %c0_66, %c0_67], %182 {strides = array<i32>} : memref<1x8x32xbf16, #tpu.memory_space<vmem>>, vector<1x8x32xbf16>,
    return
  }
  func.func @transform_0(%arg0: i32) -> (i32, i32, i32) {
    %c0_i32 = arith.constant 0 : i32
    %c0_i32_0 = arith.constant 0 : i32
    %c0_i32_1 = arith.constant 0 : i32
    return %arg0, %c0_i32, %c0_i32_0 : i32, i32, i32
  }
  func.func @transform_1(%arg0: i32) -> (i32, i32, i32) {
    %c0_i32 = arith.constant 0 : i32
    %c0_i32_0 = arith.constant 0 : i32
    %c0_i32_1 = arith.constant 0 : i32
    %c0_i32_2 = arith.constant 0 : i32
    return %c0_i32, %c0_i32_0, %c0_i32_1 : i32, i32, i32
  }
  func.func @transform_2(%arg0: i32) -> (i32, i32) {
    %c0_i32 = arith.constant 0 : i32
    %c0_i32_0 = arith.constant 0 : i32
    %c0_i32_1 = arith.constant 0 : i32
    return %c0_i32, %c0_i32_0 : i32, i32
  }
  func.func @transform_3(%arg0: i32) -> (i32, i32) {
    %c0_i32 = arith.constant 0 : i32
    %c0_i32_0 = arith.constant 0 : i32
    %c0_i32_1 = arith.constant 0 : i32
    return %c0_i32, %c0_i32_0 : i32, i32
  }
  func.func @transform_4(%arg0: i32) -> (i32, i32) {
    %c0_i32 = arith.constant 0 : i32
    %c0_i32_0 = arith.constant 0 : i32
    %c0_i32_1 = arith.constant 0 : i32
    return %c0_i32, %c0_i32_0 : i32, i32
  }
  func.func @transform_5(%arg0: i32) -> (i32, i32, i32) {
    %c0_i32 = arith.constant 0 : i32
    %c0_i32_0 = arith.constant 0 : i32
    %c0_i32_1 = arith.constant 0 : i32
    return %arg0, %c0_i32, %c0_i32_0 : i32, i32, i32
  }
  func.func @transform_6(%arg0: i32) -> (i32, i32) {
    %c0_i32 = arith.constant 0 : i32
    %c0_i32_0 = arith.constant 0 : i32
    %c0_i32_1 = arith.constant 0 : i32
    return %c0_i32, %c0_i32_0 : i32, i32
  }
  func.func @transform_7(%arg0: i32) -> (i32, i32) {
    %c0_i32 = arith.constant 0 : i32
    %c0_i32_0 = arith.constant 0 : i32
    %c0_i32_1 = arith.constant 0 : i32
    return %c0_i32, %c0_i32_0 : i32, i32
  }
  func.func @transform_8(%arg0: i32) -> (i32, i32, i32) {
    %c0_i32 = arith.constant 0 : i32
    %c0_i32_0 = arith.constant 0 : i32
    %c0_i32_1 = arith.constant 0 : i32
    return %arg0, %c0_i32, %c0_i32_0 : i32, i32, i32
  }
  func.func @transform_9(%arg0: i32) -> (i32, i32, i32) {
    %c0_i32 = arith.constant 0 : i32
    %c0_i32_0 = arith.constant 0 : i32
    %c0_i32_1 = arith.constant 0 : i32
    return %arg0, %c0_i32, %c0_i32_0 : i32, i32, i32
  }
  func.func @transform_10(%arg0: i32) -> (i32, i32, i32, i32) {
    %c0_i32 = arith.constant 0 : i32
    %c0_i32_0 = arith.constant 0 : i32
    %c0_i32_1 = arith.constant 0 : i32
    %c0_i32_2 = arith.constant 0 : i32
    return %arg0, %c0_i32, %c0_i32_0, %c0_i32_1 : i32, i32, i32, i32
  }
}

module attributes {stable_mosaic.version = 11 : i64} {
  func.func @kernel(%arg0: i32, %arg1: memref<1x8x32xbf16, #tpu.memory_space<vmem>>, %arg2: memref<1x32xf32, #tpu.memory_space<vmem>>, %arg3: memref<1x32xf32, #tpu.memory_space<vmem>>, %arg4: memref<3x32x64xbf16, #tpu.memory_space<vmem>>, %arg5: memref<1x64xf32, #tpu.memory_space<vmem>>, %arg6: memref<3x64x32xbf16, #tpu.memory_space<vmem>>, %arg7: memref<1x32xf32, #tpu.memory_space<vmem>>, %arg8: memref<1x8x32xf32, #tpu.memory_space<vmem>>) attributes {dimension_semantics = [#tpu.dimension_semantics<parallel>], iteration_bounds = array<i64: 2>, scalar_prefetch = 0 : i64, scratch_operands = 0 : i64, tpu.core_type = #tpu.core_type<tc>, window_params = [{transform_indices = @transform_0, window_bounds = array<i64: 1, 8, 32>}, {pipeline_mode = #tpu.pipeline_mode<synchronous>, transform_indices = @transform_1, window_bounds = array<i64: 1, 32>}, {pipeline_mode = #tpu.pipeline_mode<synchronous>, transform_indices = @transform_2, window_bounds = array<i64: 1, 32>}, {pipeline_mode = #tpu.pipeline_mode<synchronous>, transform_indices = @transform_3, window_bounds = array<i64: 3, 32, 64>}, {pipeline_mode = #tpu.pipeline_mode<synchronous>, transform_indices = @transform_4, window_bounds = array<i64: 1, 64>}, {pipeline_mode = #tpu.pipeline_mode<synchronous>, transform_indices = @transform_5, window_bounds = array<i64: 3, 64, 32>}, {pipeline_mode = #tpu.pipeline_mode<synchronous>, transform_indices = @transform_6, window_bounds = array<i64: 1, 32>}, {transform_indices = @transform_7, window_bounds = array<i64: 1, 8, 32>}]} {
    %c0 = arith.constant 0 : index
    %c0_0 = arith.constant 0 : index
    %c0_1 = arith.constant 0 : index
    %0 = vector.load %arg1[%c0, %c0_0, %c0_1] : memref<1x8x32xbf16, #tpu.memory_space<vmem>>, vector<1x8x32xbf16>
    %1 = vector.shape_cast %0 : vector<1x8x32xbf16> to vector<8x32xbf16>
    %2 = arith.extf %1 : vector<8x32xbf16> to vector<8x32xf32>
    %c0_2 = arith.constant 0 : index
    %c0_3 = arith.constant 0 : index
    %3 = vector.load %arg2[%c0_2, %c0_3] : memref<1x32xf32, #tpu.memory_space<vmem>>, vector<1x32xf32>
    %c0_4 = arith.constant 0 : index
    %c0_5 = arith.constant 0 : index
    %4 = vector.load %arg3[%c0_4, %c0_5] : memref<1x32xf32, #tpu.memory_space<vmem>>, vector<1x32xf32>
    %cst = arith.constant dense<0.000000e+00> : vector<8xf32>
    %5 = vector.multi_reduction <add>, %2, %cst [1] : vector<8x32xf32> to vector<8xf32>
    %6 = vector.shape_cast %5 : vector<8xf32> to vector<8x1xf32>
    %cst_6 = arith.constant 3.200000e+01 : f32
    %7 = vector.broadcast %cst_6 : f32 to vector<8x1xf32>
    %8 = arith.divf %6, %7 : vector<8x1xf32>
    %9 = vector.broadcast %8 : vector<8x1xf32> to vector<8x32xf32>
    %10 = arith.subf %2, %9 : vector<8x32xf32>
    %11 = arith.mulf %10, %10 : vector<8x32xf32>
    %cst_7 = arith.constant dense<0.000000e+00> : vector<8xf32>
    %12 = vector.multi_reduction <add>, %11, %cst_7 [1] : vector<8x32xf32> to vector<8xf32>
    %13 = vector.shape_cast %12 : vector<8xf32> to vector<8x1xf32>
    %cst_8 = arith.constant 3.200000e+01 : f32
    %14 = vector.broadcast %cst_8 : f32 to vector<8x1xf32>
    %15 = arith.divf %13, %14 : vector<8x1xf32>
    %16 = vector.broadcast %8 : vector<8x1xf32> to vector<8x32xf32>
    %17 = arith.subf %2, %16 : vector<8x32xf32>
    %cst_9 = arith.constant 9.99999974E-6 : f32
    %18 = vector.broadcast %cst_9 : f32 to vector<8x1xf32>
    %19 = arith.addf %15, %18 : vector<8x1xf32>
    %20 = math.rsqrt %19 : vector<8x1xf32>
    %21 = vector.broadcast %20 : vector<8x1xf32> to vector<8x32xf32>
    %22 = arith.mulf %17, %21 : vector<8x32xf32>
    %23 = vector.broadcast %3 : vector<1x32xf32> to vector<8x32xf32>
    %24 = arith.mulf %22, %23 : vector<8x32xf32>
    %25 = vector.broadcast %4 : vector<1x32xf32> to vector<8x32xf32>
    %26 = arith.addf %24, %25 : vector<8x32xf32>
    %cst_10 = arith.constant 0.000000e+00 : f32
    %27 = vector.broadcast %cst_10 : f32 to vector<8x64xf32>
    %c1_i32 = arith.constant 1 : i32
    %28 = tpu.dynamic_rotate %26 by %c1_i32 dim 0 : vector<8x32xf32>, i32 -> vector<8x32xf32>
    %29 = tpu.iota {dimensions = array<i32: 0>} : vector<8x32xi32>
    %c1_i32_11 = arith.constant 1 : i32
    %30 = vector.broadcast %c1_i32_11 : i32 to vector<8x32xi32>
    %31 = arith.cmpi sge, %29, %30 : vector<8x32xi32>
    %cst_12 = arith.constant 0.000000e+00 : f32
    %32 = vector.broadcast %cst_12 : f32 to vector<8x32xf32>
    %33 = arith.select %31, %28, %32 : vector<8x32xi1>, vector<8x32xf32>
    %34 = arith.truncf %33 : vector<8x32xf32> to vector<8x32xbf16>
    %c0_13 = arith.constant 0 : index
    %c0_14 = arith.constant 0 : index
    %c0_15 = arith.constant 0 : index
    %35 = vector.load %arg4[%c0_13, %c0_14, %c0_15] : memref<3x32x64xbf16, #tpu.memory_space<vmem>>, vector<1x32x64xbf16>
    %36 = vector.shape_cast %35 : vector<1x32x64xbf16> to vector<32x64xbf16>
    %cst_16 = arith.constant dense<0.000000e+00> : vector<8x64xf32>
    %37 = tpu.matmul %34, %36, %cst_16 {dimension_numbers = #tpu.dot_dimension_numbers<[1], [0], [0], [1], [0, 0, 1, 1], [], []>} : vector<8x32xbf16>, vector<32x64xbf16>, vector<8x64xf32> -> vector<8x64xf32>
    %38 = arith.addf %27, %37 : vector<8x64xf32>
    %39 = arith.truncf %26 : vector<8x32xf32> to vector<8x32xbf16>
    %c1 = arith.constant 1 : index
    %c0_17 = arith.constant 0 : index
    %c0_18 = arith.constant 0 : index
    %40 = vector.load %arg4[%c1, %c0_17, %c0_18] : memref<3x32x64xbf16, #tpu.memory_space<vmem>>, vector<1x32x64xbf16>
    %41 = vector.shape_cast %40 : vector<1x32x64xbf16> to vector<32x64xbf16>
    %cst_19 = arith.constant dense<0.000000e+00> : vector<8x64xf32>
    %42 = tpu.matmul %39, %41, %cst_19 {dimension_numbers = #tpu.dot_dimension_numbers<[1], [0], [0], [1], [0, 0, 1, 1], [], []>} : vector<8x32xbf16>, vector<32x64xbf16>, vector<8x64xf32> -> vector<8x64xf32>
    %43 = arith.addf %38, %42 : vector<8x64xf32>
    %c7_i32 = arith.constant 7 : i32
    %44 = tpu.dynamic_rotate %26 by %c7_i32 dim 0 : vector<8x32xf32>, i32 -> vector<8x32xf32>
    %45 = tpu.iota {dimensions = array<i32: 0>} : vector<8x32xi32>
    %c7_i32_20 = arith.constant 7 : i32
    %46 = vector.broadcast %c7_i32_20 : i32 to vector<8x32xi32>
    %47 = arith.cmpi slt, %45, %46 : vector<8x32xi32>
    %cst_21 = arith.constant 0.000000e+00 : f32
    %48 = vector.broadcast %cst_21 : f32 to vector<8x32xf32>
    %49 = arith.select %47, %44, %48 : vector<8x32xi1>, vector<8x32xf32>
    %50 = arith.truncf %49 : vector<8x32xf32> to vector<8x32xbf16>
    %c2 = arith.constant 2 : index
    %c0_22 = arith.constant 0 : index
    %c0_23 = arith.constant 0 : index
    %51 = vector.load %arg4[%c2, %c0_22, %c0_23] : memref<3x32x64xbf16, #tpu.memory_space<vmem>>, vector<1x32x64xbf16>
    %52 = vector.shape_cast %51 : vector<1x32x64xbf16> to vector<32x64xbf16>
    %cst_24 = arith.constant dense<0.000000e+00> : vector<8x64xf32>
    %53 = tpu.matmul %50, %52, %cst_24 {dimension_numbers = #tpu.dot_dimension_numbers<[1], [0], [0], [1], [0, 0, 1, 1], [], []>} : vector<8x32xbf16>, vector<32x64xbf16>, vector<8x64xf32> -> vector<8x64xf32>
    %54 = arith.addf %43, %53 : vector<8x64xf32>
    %c0_25 = arith.constant 0 : index
    %c0_26 = arith.constant 0 : index
    %55 = vector.load %arg5[%c0_25, %c0_26] : memref<1x64xf32, #tpu.memory_space<vmem>>, vector<1x64xf32>
    %56 = vector.broadcast %55 : vector<1x64xf32> to vector<8x64xf32>
    %57 = arith.addf %54, %56 : vector<8x64xf32>
    %58 = arith.negf %57 : vector<8x64xf32>
    %59 = math.exp %58 : vector<8x64xf32>
    %cst_27 = arith.constant 1.000000e+00 : f32
    %60 = vector.broadcast %cst_27 : f32 to vector<8x64xf32>
    %61 = arith.addf %60, %59 : vector<8x64xf32>
    %62 = arith.divf %60, %61 : vector<8x64xf32>
    %63 = arith.mulf %57, %62 : vector<8x64xf32>
    %64 = arith.truncf %63 : vector<8x64xf32> to vector<8x64xbf16>
    %cst_28 = arith.constant 0.000000e+00 : f32
    %65 = vector.broadcast %cst_28 : f32 to vector<8x32xf32>
    %c0_29 = arith.constant 0 : index
    %c0_30 = arith.constant 0 : index
    %c0_31 = arith.constant 0 : index
    %66 = vector.load %arg6[%c0_29, %c0_30, %c0_31] : memref<3x64x32xbf16, #tpu.memory_space<vmem>>, vector<1x64x32xbf16>
    %67 = vector.shape_cast %66 : vector<1x64x32xbf16> to vector<64x32xbf16>
    %cst_32 = arith.constant dense<0.000000e+00> : vector<8x32xf32>
    %68 = tpu.matmul %64, %67, %cst_32 {dimension_numbers = #tpu.dot_dimension_numbers<[1], [0], [0], [1], [0, 0, 1, 1], [], []>} : vector<8x64xbf16>, vector<64x32xbf16>, vector<8x32xf32> -> vector<8x32xf32>
    %c1_i32_33 = arith.constant 1 : i32
    %69 = tpu.dynamic_rotate %68 by %c1_i32_33 dim 0 : vector<8x32xf32>, i32 -> vector<8x32xf32>
    %70 = tpu.iota {dimensions = array<i32: 0>} : vector<8x32xi32>
    %c1_i32_34 = arith.constant 1 : i32
    %71 = vector.broadcast %c1_i32_34 : i32 to vector<8x32xi32>
    %72 = arith.cmpi sge, %70, %71 : vector<8x32xi32>
    %cst_35 = arith.constant 0.000000e+00 : f32
    %73 = vector.broadcast %cst_35 : f32 to vector<8x32xf32>
    %74 = arith.select %72, %69, %73 : vector<8x32xi1>, vector<8x32xf32>
    %75 = arith.addf %65, %74 : vector<8x32xf32>
    %c1_36 = arith.constant 1 : index
    %c0_37 = arith.constant 0 : index
    %c0_38 = arith.constant 0 : index
    %76 = vector.load %arg6[%c1_36, %c0_37, %c0_38] : memref<3x64x32xbf16, #tpu.memory_space<vmem>>, vector<1x64x32xbf16>
    %77 = vector.shape_cast %76 : vector<1x64x32xbf16> to vector<64x32xbf16>
    %cst_39 = arith.constant dense<0.000000e+00> : vector<8x32xf32>
    %78 = tpu.matmul %64, %77, %cst_39 {dimension_numbers = #tpu.dot_dimension_numbers<[1], [0], [0], [1], [0, 0, 1, 1], [], []>} : vector<8x64xbf16>, vector<64x32xbf16>, vector<8x32xf32> -> vector<8x32xf32>
    %79 = arith.addf %75, %78 : vector<8x32xf32>
    %c2_40 = arith.constant 2 : index
    %c0_41 = arith.constant 0 : index
    %c0_42 = arith.constant 0 : index
    %80 = vector.load %arg6[%c2_40, %c0_41, %c0_42] : memref<3x64x32xbf16, #tpu.memory_space<vmem>>, vector<1x64x32xbf16>
    %81 = vector.shape_cast %80 : vector<1x64x32xbf16> to vector<64x32xbf16>
    %cst_43 = arith.constant dense<0.000000e+00> : vector<8x32xf32>
    %82 = tpu.matmul %64, %81, %cst_43 {dimension_numbers = #tpu.dot_dimension_numbers<[1], [0], [0], [1], [0, 0, 1, 1], [], []>} : vector<8x64xbf16>, vector<64x32xbf16>, vector<8x32xf32> -> vector<8x32xf32>
    %c7_i32_44 = arith.constant 7 : i32
    %83 = tpu.dynamic_rotate %82 by %c7_i32_44 dim 0 : vector<8x32xf32>, i32 -> vector<8x32xf32>
    %84 = tpu.iota {dimensions = array<i32: 0>} : vector<8x32xi32>
    %c7_i32_45 = arith.constant 7 : i32
    %85 = vector.broadcast %c7_i32_45 : i32 to vector<8x32xi32>
    %86 = arith.cmpi slt, %84, %85 : vector<8x32xi32>
    %cst_46 = arith.constant 0.000000e+00 : f32
    %87 = vector.broadcast %cst_46 : f32 to vector<8x32xf32>
    %88 = arith.select %86, %83, %87 : vector<8x32xi1>, vector<8x32xf32>
    %89 = arith.addf %79, %88 : vector<8x32xf32>
    %c0_47 = arith.constant 0 : index
    %c0_48 = arith.constant 0 : index
    %90 = vector.load %arg7[%c0_47, %c0_48] : memref<1x32xf32, #tpu.memory_space<vmem>>, vector<1x32xf32>
    %91 = vector.broadcast %90 : vector<1x32xf32> to vector<8x32xf32>
    %92 = arith.addf %89, %91 : vector<8x32xf32>
    %cst_49 = arith.constant 1.000000e+00 : f32
    %93 = vector.broadcast %cst_49 : f32 to vector<8x32xf32>
    %94 = arith.mulf %93, %92 : vector<8x32xf32>
    %95 = arith.addf %2, %94 : vector<8x32xf32>
    %c0_50 = arith.constant 0 : index
    %c0_51 = arith.constant 0 : index
    %c0_52 = arith.constant 0 : index
    %96 = vector.load %arg8[%c0_50, %c0_51, %c0_52] : memref<1x8x32xf32, #tpu.memory_space<vmem>>, vector<1x8x32xf32>
    %97 = vector.shape_cast %96 : vector<1x8x32xf32> to vector<8x32xf32>
    %98 = vector.shape_cast %95 : vector<8x32xf32> to vector<1x8x32xf32>
    tpu.vector_store %arg8[%c0_50, %c0_51, %c0_52], %98 {strides = array<i32>} : memref<1x8x32xf32, #tpu.memory_space<vmem>>, vector<1x8x32xf32>,
    return
  }
  func.func @transform_0(%arg0: i32) -> (i32, i32, i32) {
    %c0_i32 = arith.constant 0 : i32
    %c0_i32_0 = arith.constant 0 : i32
    %c0_i32_1 = arith.constant 0 : i32
    return %arg0, %c0_i32, %c0_i32_0 : i32, i32, i32
  }
  func.func @transform_1(%arg0: i32) -> (i32, i32) {
    %c0_i32 = arith.constant 0 : i32
    %c0_i32_0 = arith.constant 0 : i32
    %c0_i32_1 = arith.constant 0 : i32
    return %c0_i32, %c0_i32_0 : i32, i32
  }
  func.func @transform_2(%arg0: i32) -> (i32, i32) {
    %c0_i32 = arith.constant 0 : i32
    %c0_i32_0 = arith.constant 0 : i32
    %c0_i32_1 = arith.constant 0 : i32
    return %c0_i32, %c0_i32_0 : i32, i32
  }
  func.func @transform_3(%arg0: i32) -> (i32, i32, i32) {
    %c0_i32 = arith.constant 0 : i32
    %c0_i32_0 = arith.constant 0 : i32
    %c0_i32_1 = arith.constant 0 : i32
    %c0_i32_2 = arith.constant 0 : i32
    return %c0_i32, %c0_i32_0, %c0_i32_1 : i32, i32, i32
  }
  func.func @transform_4(%arg0: i32) -> (i32, i32) {
    %c0_i32 = arith.constant 0 : i32
    %c0_i32_0 = arith.constant 0 : i32
    %c0_i32_1 = arith.constant 0 : i32
    return %c0_i32, %c0_i32_0 : i32, i32
  }
  func.func @transform_5(%arg0: i32) -> (i32, i32, i32) {
    %c0_i32 = arith.constant 0 : i32
    %c0_i32_0 = arith.constant 0 : i32
    %c0_i32_1 = arith.constant 0 : i32
    %c0_i32_2 = arith.constant 0 : i32
    return %c0_i32, %c0_i32_0, %c0_i32_1 : i32, i32, i32
  }
  func.func @transform_6(%arg0: i32) -> (i32, i32) {
    %c0_i32 = arith.constant 0 : i32
    %c0_i32_0 = arith.constant 0 : i32
    %c0_i32_1 = arith.constant 0 : i32
    return %c0_i32, %c0_i32_0 : i32, i32
  }
  func.func @transform_7(%arg0: i32) -> (i32, i32, i32) {
    %c0_i32 = arith.constant 0 : i32
    %c0_i32_0 = arith.constant 0 : i32
    %c0_i32_1 = arith.constant 0 : i32
    return %arg0, %c0_i32, %c0_i32_0 : i32, i32, i32
  }
}

</mosaic_0001>

<bundles_post_ra>
// kernel: conformer_encoder_layer.7
= control target key start
LH: loop header
LB: loop body
LE: loop exit
PB: predicated region body
PF: predicated region fallthrough
CT: control target
= control target key end

     0   :  { %s318_s12 = smov 0   ;;  %s338_s0 = inlined_call_operand.vmem [shape: bf16[2,8,32], index: 0, kind: input, shape index: {}]   ;;  %s339_s1 = inlined_call_operand.vmem [shape: bf16[32,96], index: 1, kind: input, shape index: {}]   ;;  %s340_s2 = inlined_call_operand.vmem [shape: f32[1,96], index: 2, kind: input, shape index: {}]   ;;  %s341_s3 = inlined_call_operand.vmem [shape: bf16[2,8,96], index: 3, kind: output, shape index: {}]  }
   0x1 LB: > { %s261_s13 = sadd.s32 4294967295, %s296_s12   ;;  %p265_p0 = scmp.ge.s32.totalorder %s296_s12, 1  ;;  %s296_s12 = sphi %s318_s12, %s13_s12  }
   0x2   : > { %p136_p1 = scmp.lt.s32.totalorder %s296_s12, 3 }
   0x4   : > { %p137_p2 = pnand %p265_p0, %p136_p1 }
   0x5   : > { %p158_p3 = scmp.lt.s32.totalorder (!%p137_p2), %s261_s13, 1 }
   0x6   : > { %140 = sbr.rel (%p137_p2) target bundleno = 153 (0x99), region = 32 }
   0xb   : > { %v280_v0 = vld [vmem:[%s339_s1 + $0x8] sm:$0xff]  ;;  %v279_v1 = vld [vmem:[%s339_s1] sm:$0xff]  ;;  %s343_s13 = smov (!%p158_p3, %s261_s13), 1  ;;  %vm188_vm0 = vcmask 261120   ;;  %vm206_vm1 = vcmask 781312  }
   0xc   : > { %198 = vmatpush.bf16.msra.mxu0 %v280_v0  ;;  %s266_s18 = sshll.u32 %s343_s13, 2  ;;  %v289_v3 = vld [vmem:[%s340_s2] ss:$0 sm:$0xff] }
   0xd   : > { %s161_s21 = scalar_lea.vmem %s338_s0, %s266_s18  ;;  %s165_s26 = scalar_lea.vmem %s341_s3, %s266_s18 }
   0xe   : > { %v167_v2 = vld [vmem:[%s161_s21] sm:$0xf] }
  0x10   : > { %199 = vmatpush.bf16.msra.mxu0 %v279_v1 }
  0x13   : > { %276 = vmatmul.msk.bf16.vlgmr.msra.gmra.mxu0 %vm188_vm0, %v167_v2 }
  0x90   : > { %v201_v4 = vpop.f32.mrf.mxu0 }
  0x91   : > { %v202_v5 = vadd.f32 %v289_v3, %v201_v4 }
  0x93   : > { %v205_v6 = vpack.c.bf16 %v202_v5, %v202_v5 }
  0x95   : > { %207 = vst.msk [vmem:[%s165_s26] sm:$0xf] %vm206_vm1, %v205_v6 }
  0x98   : > { %v203_v7 = vpop.f32.mrf.mxu0 }
  0x99 PF: > { %s13_s12 = sadd.s32 1, %s296_s12  }
  0x9a   : > { %p10_p4 = scmp.ge.s32.totalorder %s13_s12, 4  }
  0x9c   :  { %12 = sbr.rel (!%p10_p4) target bundleno = 1 (0x1), region = 62 }

// kernel: conformer_encoder_layer.6
= control target key start
LH: loop header
LB: loop body
LE: loop exit
PB: predicated region body
PF: predicated region fallthrough
CT: control target
= control target key end

     0   :  { %s902_s25 = smov 0   ;;  %s997_s0 = inlined_call_operand.vmem [shape: bf16[2,8,32], index: 0, kind: input, shape index: {}]   ;;  %s998_s1 = inlined_call_operand.vmem [shape: f32[1,32], index: 1, kind: input, shape index: {}]   ;;  %s999_s2 = inlined_call_operand.vmem [shape: f32[1,32], index: 2, kind: input, shape index: {}]   ;;  %s1000_s3 = inlined_call_operand.vmem [shape: f32[1,32], index: 3, kind: input, shape index: {}]   ;;  %s1001_s4 = inlined_call_operand.vmem [shape: f32[1,32], index: 4, kind: input, shape index: {}]   ;;  %s1002_s5 = inlined_call_operand.vmem [shape: bf16[32,64], index: 5, kind: input, shape index: {}]   ;;  %s1003_s6 = inlined_call_operand.vmem [shape: f32[1,64], index: 6, kind: input, shape index: {}]   ;;  %s1004_s7 = inlined_call_operand.vmem [shape: f32[7,32], index: 7, kind: input, shape index: {}]   ;;  %s1005_s8 = inlined_call_operand.vmem [shape: f32[1,32], index: 8, kind: input, shape index: {}]   ;;  %s1006_s9 = inlined_call_operand.vmem [shape: f32[1,32], index: 9, kind: input, shape index: {}]   ;;  %s1007_s10 = inlined_call_operand.vmem [shape: f32[1,32], index: 10, kind: input, shape index: {}]   ;;  %s1008_s11 = inlined_call_operand.vmem [shape: bf16[32,32], index: 11, kind: input, shape index: {}]   ;;  %s1009_s12 = inlined_call_operand.vmem [shape: f32[1,32], index: 12, kind: input, shape index: {}]   ;;  %s1010_s13 = inlined_call_operand.vmem [shape: bf16[2,8,32], index: 13, kind: output, shape index: {}]  }
   0x1 LB: > { %s749_s26 = sadd.s32 4294967295, %s828_s25   ;;  %p753_p0 = scmp.ge.s32.totalorder %s828_s25, 1  ;;  %s828_s25 = sphi %s902_s25, %s23_s25  }
   0x2   : > { %p386_p1 = scmp.lt.s32.totalorder %s828_s25, 3 }
   0x4   : > { %p387_p2 = pnand %p753_p0, %p386_p1 }
   0x5   : > { %p428_p3 = scmp.lt.s32.totalorder (!%p387_p2), %s749_s26, 1  ;;  %s831_s14 = smov (!%p387_p2), 96  }
   0x6   : > { %390 = sbr.rel (%p387_p2) target bundleno = 993 (0x3e1), region = 72 }
   0xb   : > { %s1012_s26 = smov (!%p428_p3, %s749_s26), 1  ;;  %vm441_vm0 = vcmask 261120   ;;  %v830_v3 = vmov 32.0   ;;  %v792_v24 = vld [vmem:[%s998_s1] ss:$0 sm:$0xff]  ;;  %v779_v36 = vld [vmem:[%s1002_s5 + $0x8] sm:$0xff] }
   0xc   : > { %s754_s27 = sshll.u32 %s1012_s26, 2  ;;  %808 = vrcp.f32 %v830_v3  ;;  %v793_v27 = vld [vmem:[%s999_s2] ss:$0 sm:$0xff]  ;;  %541 = vmatpush.bf16.msra.mxu0 %v779_v36 }
   0xd   : > { %s431_s30 = scalar_lea.vmem %s997_s0, %s754_s27  ;;  %v778_v37 = vld [vmem:[%s1002_s5] sm:$0xff]  ;;  %s435_s15 = scalar_lea.vmem %s1010_s13, %s754_s27 }
   0xe   : > { %v437_v0 = vld [vmem:[%s431_s30] sm:$0xf] }
   0xf   : > { %v438_v1 = vunpack.c.l.bf16 %v437_v0  ;;  %v794_v47 = vld [vmem:[%s1000_s3] ss:$0 sm:$0xff] }
  0x10   : > { %542 = vmatpush.bf16.msra.mxu0 %v778_v37  ;;  %v795_v50 = vld [vmem:[%s1001_s4] ss:$0 sm:$0xff] }
  0x11   : > { %v442_v2 = vsel %vm441_vm0, %v438_v1, 0.0  ;;  %v796_v54 = vld [vmem:[%s1003_s6] ss:$0 sm:$0xff] }
  0x12   : > { %443 = vadd.xlane.f32.xlu0 %v442_v2  ;;  %v809_v4 = vpop.eup %808 }
  0x13   : > { %v446_v5 = vmul.f32 32.0, %v809_v4  ;;  %vm450_vm1 = vweird.f32 %v809_v4 }
  0x15   : > { %v447_v6 = vsub.f32 1.0, %v446_v5 }
  0x17   : > { %v448_v7 = vmul.f32 %v809_v4, %v447_v6 }
  0x19   : > { %v449_v8 = vadd.f32 %v809_v4, %v448_v7  ;;  %v781_v7 = vld [vmem:[%s1008_s11 + $0x8] sm:$0xff] }
  0x1a   : > { %685 = vmatpush.bf16.msra.mxu1 %v781_v7 }
  0x1b   : > { %v451_v9 = vsel %vm450_vm1, %v809_v4, %v449_v8  ;;  %v780_v8 = vld [vmem:[%s1008_s11] sm:$0xff] }
  0x1e   : > { %686 = vmatpush.bf16.msra.mxu1 %v780_v8 }
  0x85   : > { %v444_v10 = vpop.xlane.xlu0 %443 }
  0x86   : > { %v452_v11 = vmul.f32 %v451_v9, %v444_v10 }
  0x88   : > { %v453_v12 = vsub.f32 %v438_v1, %v452_v11 }
  0x8a   : > { %v454_v13 = vmul.f32 %v453_v12, %v453_v12 }
  0x8c   : > { %v455_v14 = vsel %vm441_vm0, %v454_v13, 0.0  ;;  %v797_v13 = vld [vmem:[%s1004_s7] ss:$0 sm:$0xff] }
  0x8d   : > { %456 = vadd.xlane.f32.xlu0 %v455_v14  ;;  %v798_v14 = vld [vmem:[%s1004_s7 + $0x1] ss:$0 sm:$0xff] }
 0x100   : > { %v457_v15 = vpop.xlane.xlu0 %456 }
 0x101   : > { %v458_v16 = vmul.f32 %v457_v15, %v451_v9 }
 0x103   : > { %v459_v17 = vadd.f32 1e-05, %v458_v16 }
 0x105   : > { %810 = vrsqrt.f32 %v459_v17  ;;  %vm466_vm3 = vweird.f32 %v459_v17 }
 0x10b   : > { %v811_v18 = vpop.eup %810 }
 0x10c   : > { %v461_v19 = vmul.f32 %v811_v18, %v459_v17  ;;  %vm467_vm2 = vweird.f32 %v811_v18 }
 0x10d   : > { %vm468_vm4 = vmor %vm466_vm3, %vm467_vm2 }
 0x10e   : > { %v462_v20 = vmul.f32 %v811_v18, %v461_v19 }
 0x110   : > { %v463_v21 = vmul.f32 0.5, %v462_v20 }
 0x112   : > { %v464_v22 = vsub.f32 1.5, %v463_v21 }
 0x114   : > { %v465_v23 = vmul.f32 %v811_v18, %v464_v22 }
 0x116   : > { %v469_v25 = vsel %vm468_vm4, %v811_v18, %v465_v23  ;;  %v799_v18 = vld [vmem:[%s1004_s7 + $0x2] ss:$0 sm:$0xff] }
 0x117   : > { %v470_v26 = vmul.f32 %v469_v25, %v453_v12  ;;  %v800_v25 = vld [vmem:[%s1004_s7 + $0x3] ss:$0 sm:$0xff] }
 0x119   : > { %v474_v28 = vmul.f32 %v792_v24, %v470_v26 }
 0x11b   : > { %v926_v29 = vadd.f32 %v793_v27, %v474_v28 }
 0x11d   : > { %v481_v30 = vsel %vm441_vm0, %v926_v29, 0.0 }
 0x11e   : > { %482 = vadd.xlane.f32.xlu1 %v481_v30  ;;  %v801_v30 = vld [vmem:[%s1004_s7 + $0x4] ss:$0 sm:$0xff] }
 0x191   : > { %v483_v31 = vpop.xlane.xlu1 %482 }
 0x192   : > { %v484_v32 = vmul.f32 %v483_v31, %v451_v9 }
 0x194   : > { %v485_v33 = vsub.f32 %v926_v29, %v484_v32 }
 0x196   : > { %v486_v34 = vmul.f32 %v485_v33, %v485_v33 }
 0x198   : > { %v487_v35 = vsel %vm441_vm0, %v486_v34, 0.0 }
 0x199   : > { %488 = vadd.xlane.f32.xlu1 %v487_v35  ;;  %v802_v35 = vld [vmem:[%s1004_s7 + $0x5] ss:$0 sm:$0xff] }
 0x20c   : > { %v489_v38 = vpop.xlane.xlu1 %488 }
 0x20d   : > { %v490_v39 = vmul.f32 %v489_v38, %v451_v9  ;;  %v573_v9 = vlaneseq }
 0x20f   : > { %v491_v40 = vadd.f32 1e-05, %v490_v39  ;;  %v574_v10 = vshrl.u32 %v573_v9, 7  ;;  %v803_v39 = vld [vmem:[%s1004_s7 + $0x6] ss:$0 sm:$0xff] }
 0x211   : > { %812 = vrsqrt.f32 %v491_v40  ;;  %vm498_vm6 = vweird.f32 %v491_v40  ;;  %vm575_vm12 = vcmp.ge.s32.totalorder %v574_v10, 3  ;;  %vm582_vm13 = vcmp.ge.s32.totalorder %v574_v10, 2 }
 0x212   : > { %vm589_vm14 = vcmp.ge.s32.totalorder %v574_v10, 1  ;;  %vm600_vm15 = vcmp.lt.s32.totalorder %v574_v10, 7  ;;  %vm607_vm1 = vcmp.lt.s32.totalorder %v574_v10, 6  ;;  %vm614_vm2 = vcmp.lt.s32.totalorder %v574_v10, 5 }
 0x217   : > { %v813_v41 = vpop.eup %812 }
 0x218   : > { %v493_v42 = vmul.f32 %v813_v41, %v491_v40  ;;  %vm499_vm5 = vweird.f32 %v813_v41 }
 0x219   : > { %vm500_vm7 = vmor %vm498_vm6, %vm499_vm5 }
 0x21a   : > { %v494_v43 = vmul.f32 %v813_v41, %v493_v42 }
 0x21c   : > { %v495_v44 = vmul.f32 0.5, %v494_v43 }
 0x21e   : > { %v496_v45 = vsub.f32 1.5, %v495_v44 }
 0x220   : > { %v497_v46 = vmul.f32 %v813_v41, %v496_v45  ;;  %v804_v45 = vld [vmem:[%s1005_s8] ss:$0 sm:$0xff] }
 0x222   : > { %v501_v48 = vsel %vm500_vm7, %v813_v41, %v497_v46  ;;  %vm694_vm7 = vcmask 257024  }
 0x223   : > { %v502_v49 = vmul.f32 %v501_v48, %v485_v33 }
 0x225   : > { %v506_v51 = vmul.f32 %v794_v47, %v502_v49  ;;  %v805_v47 = vld [vmem:[%s1006_s9] ss:$0 sm:$0xff] }
 0x226   : > { %v806_v49 = vld [vmem:[%s1007_s10] ss:$0 sm:$0xff] }
 0x227   : > { %v510_v52 = vadd.f32 %v795_v50, %v506_v51 }
 0x229   : > { %v511_v53 = vpack.c.bf16 %v510_v52, %v510_v52 }
 0x22b   : > { %764 = vmatmul.msk.bf16.vlgmr.msra.gmra.mxu0 %vm441_vm0, %v511_v53 }
 0x2a8   : > { %v544_v55 = vpop.f32.mrf.mxu0 }
 0x2a9   : > { %v545_v56 = vadd.f32 %v796_v54, %v544_v55 }
 0x2ab   : > { %v765_v57 = vmul.f32 -1.442695, %v545_v56 }
 0x2ad   : > { %814 = vpow2.f32 %v765_v57 }
 0x2b0   : > { %v546_v58 = vpop.f32.mrf.mxu0 }
 0x2b3   : > { %v815_v59 = vpop.eup %814 }
 0x2b4   : > { %v551_v60 = vadd.f32 1.0, %v815_v59 }
 0x2b6   : > { %816 = vrcp.f32 %v551_v60  ;;  %v563_v0 = vand.u32 2147483648, %v551_v60  ;;  %v561_v2 = vand.u32 2147483647, %v551_v60  ;;  %vm557_vm9 = vweird.f32 %v551_v60 }
 0x2b8   : > { %v564_v4 = vor.u32 1.1754944e-38, %v563_v0  ;;  %vm562_vm11 = vcmp.eq.f32.partialorder %v561_v2, 8.507059e+37 }
 0x2bc   : > { %v817_v61 = vpop.eup %816 }
 0x2bd   : > { %v553_v62 = vmul.f32 %v817_v61, %v551_v60  ;;  %vm558_vm8 = vweird.f32 %v817_v61 }
 0x2be   : > { %vm559_vm10 = vmor %vm557_vm9, %vm558_vm8 }
 0x2bf   : > { %v554_v63 = vsub.f32 1.0, %v553_v62 }
 0x2c1   : > { %v555_v1 = vmul.f32 %v817_v61, %v554_v63 }
 0x2c3   : > { %v556_v3 = vadd.f32 %v817_v61, %v555_v1 }
 0x2c5   : > { %v560_v5 = vsel %vm559_vm10, %v817_v61, %v556_v3  ;;  %v807_v3 = vld [vmem:[%s1009_s12] ss:$0 sm:$0xff] }
 0x2c6   : > { %v565_v6 = vsel %vm562_vm11, %v564_v4, %v560_v5 }
 0x2c7   : > { %568 = vrot.lane.b32.xlu2 %v565_v6, %s831_s14 }
 0x321   : > { %v569_v11 = vpop.permute.xlu2 %568 }
 0x322   : > { %v571_v12 = vmul.f32 %v569_v11, %v545_v56 }
 0x324   : > { %v572_v15 = vrot.slane %v571_v12, 5  ;;  %v581_v16 = vrot.slane %v571_v12, 6  ;;  %v588_v17 = vrot.slane %v571_v12, 7  ;;  %v599_v22 = vrot.slane %v571_v12, 1 }
 0x325   : > { %v606_v26 = vrot.slane %v571_v12, 2  ;;  %v613_v32 = vrot.slane %v571_v12, 3  ;;  %v597_v34 = vmul.f32 %v800_v25, %v571_v12 }
 0x326   : > { %v576_v19 = vsel %vm575_vm12, %v572_v15, 0.0  ;;  %v583_v20 = vsel %vm582_vm13, %v581_v16, 0.0  ;;  %v590_v21 = vsel %vm589_vm14, %v588_v17, 0.0  ;;  %v601_v31 = vsel %vm600_vm15, %v599_v22, 0.0 }
 0x327   : > { %v579_v23 = vmul.f32 %v797_v13, %v576_v19  ;;  %v586_v24 = vmul.f32 %v798_v14, %v583_v20  ;;  %v593_v28 = vmul.f32 %v799_v18, %v590_v21  ;;  %v608_v36 = vsel %vm607_vm1, %v606_v26, 0.0 }
 0x328   : > { %v604_v38 = vmul.f32 %v801_v30, %v601_v31  ;;  %v615_v40 = vsel %vm614_vm2, %v613_v32, 0.0  ;;  %v611_v42 = vmul.f32 %v802_v35, %v608_v36 }
 0x329   : > { %v587_v27 = vadd.f32 %v586_v24, %v579_v23  ;;  %v618_v44 = vmul.f32 %v803_v39, %v615_v40 }
 0x32b   : > { %v594_v33 = vadd.f32 %v593_v28, %v587_v27 }
 0x32d   : > { %v598_v37 = vadd.f32 %v597_v34, %v594_v33 }
 0x32f   : > { %v605_v41 = vadd.f32 %v604_v38, %v598_v37 }
 0x331   : > { %v612_v43 = vadd.f32 %v611_v42, %v605_v41 }
 0x333   : > { %v619_v46 = vadd.f32 %v618_v44, %v612_v43 }
 0x335   : > { %v624_v48 = vadd.f32 %v804_v45, %v619_v46 }
 0x337   : > { %v629_v50 = vmul.f32 %v805_v47, %v624_v48 }
 0x339   : > { %v634_v51 = vadd.f32 %v806_v49, %v629_v50 }
 0x33b   : > { %v766_v52 = vmul.f32 -1.442695, %v634_v51 }
 0x33d   : > { %818 = vpow2.f32 %v766_v52 }
 0x343   : > { %v819_v53 = vpop.eup %818 }
 0x344   : > { %v638_v54 = vadd.f32 1.0, %v819_v53 }
 0x346   : > { %820 = vrcp.f32 %v638_v54  ;;  %v650_v58 = vand.u32 2147483648, %v638_v54  ;;  %v648_v60 = vand.u32 2147483647, %v638_v54  ;;  %vm644_vm4 = vweird.f32 %v638_v54 }
 0x348   : > { %v651_v62 = vor.u32 1.1754944e-38, %v650_v58  ;;  %vm649_vm6 = vcmp.eq.f32.partialorder %v648_v60, 8.507059e+37 }
 0x34c   : > { %v821_v55 = vpop.eup %820 }
 0x34d   : > { %v640_v56 = vmul.f32 %v821_v55, %v638_v54  ;;  %vm645_vm3 = vweird.f32 %v821_v55 }
 0x34e   : > { %vm646_vm5 = vmor %vm644_vm4, %vm645_vm3 }
 0x34f   : > { %v641_v57 = vsub.f32 1.0, %v640_v56 }
 0x351   : > { %v642_v59 = vmul.f32 %v821_v55, %v641_v57 }
 0x353   : > { %v643_v61 = vadd.f32 %v821_v55, %v642_v59 }
 0x355   : > { %v647_v63 = vsel %vm646_vm5, %v821_v55, %v643_v61 }
 0x356   : > { %v652_v0 = vsel %vm649_vm6, %v651_v62, %v647_v63 }
 0x357   : > { %v654_v1 = vmul.f32 %v652_v0, %v634_v51 }
 0x359   : > { %v655_v2 = vpack.c.bf16 %v654_v1, %v654_v1 }
 0x35b   : > { %775 = vmatmul.msk.bf16.vlgmr.msra.gmra.mxu1 %vm441_vm0, %v655_v2 }
 0x3d8   : > { %v688_v4 = vpop.f32.mrf.mxu1 }
 0x3d9   : > { %v689_v5 = vadd.f32 %v807_v3, %v688_v4 }
 0x3db   : > { %v692_v6 = vadd.f32 %v689_v5, %v926_v29 }
 0x3dd   : > { %v693_v7 = vpack.c.bf16 %v692_v6, %v692_v6 }
 0x3df   : > { %695 = vst.msk [vmem:[%s435_s15] sm:$0xf] %vm694_vm7, %v693_v7 }
 0x3e0   : > { %v690_v8 = vpop.f32.mrf.mxu1 }
 0x3e1 PF: > { %s23_s25 = sadd.s32 1, %s828_s25  }
 0x3e2   : > { %p20_p4 = scmp.ge.s32.totalorder %s23_s25, 4  }
 0x3e4   :  { %22 = sbr.rel (!%p20_p4) target bundleno = 1 (0x1), region = 102 }

// kernel: conformer_encoder_layer.5
= control target key start
LH: loop header
LB: loop body
LE: loop exit
PB: predicated region body
PF: predicated region fallthrough
CT: control target
= control target key end

     0   :  { %s863_s24 = smov 0   ;;  %s972_s0 = inlined_call_operand.vmem [shape: f32[2,8,32], index: 0, kind: input, shape index: {}]   ;;  %s973_s1 = inlined_call_operand.vmem [shape: f32[1,32], index: 1, kind: input, shape index: {}]   ;;  %s974_s2 = inlined_call_operand.vmem [shape: f32[1,32], index: 2, kind: input, shape index: {}]   ;;  %s975_s3 = inlined_call_operand.vmem [shape: bf16[3,32,64], index: 3, kind: input, shape index: {}]   ;;  %s976_s4 = inlined_call_operand.vmem [shape: f32[1,64], index: 4, kind: input, shape index: {}]   ;;  %s977_s5 = inlined_call_operand.vmem [shape: bf16[3,64,32], index: 5, kind: input, shape index: {}]   ;;  %s978_s6 = inlined_call_operand.vmem [shape: f32[1,32], index: 6, kind: input, shape index: {}]   ;;  %s979_s7 = inlined_call_operand.vmem [shape: bf16[2,8,32], index: 7, kind: output, shape index: {}]  }
   0x1 LB: > { %s663_s25 = sadd.s32 4294967295, %s820_s24   ;;  %p667_p0 = scmp.ge.s32.totalorder %s820_s24, 1  ;;  %s820_s24 = sphi %s863_s24, %s17_s24  }
   0x2   : > { %p236_p1 = scmp.lt.s32.totalorder %s820_s24, 3 }
   0x4   : > { %p237_p2 = pnand %p667_p0, %p236_p1 }
   0x5   : > { %p266_p3 = scmp.lt.s32.totalorder (!%p237_p2), %s663_s25, 1 }
   0x6   : > { %240 = sbr.rel (%p237_p2) target bundleno = 604 (0x25c), region = 48 }
   0xb   : > { %s981_s25 = smov (!%p266_p3, %s663_s25), 1  ;;  %vm278_vm0 = vcmask 261120   ;;  %v822_v2 = vmov 32.0   ;;  %v778_v14 = vld [vmem:[%s975_s3 + $0x18] sm:$0xff]  ;;  %v776_v15 = vld [vmem:[%s975_s3 + $0x8] sm:$0xff]  ;;  %v777_v17 = vld [vmem:[%s975_s3 + $0x10] sm:$0xff]  ;;  %v317_v29 = vlaneseq }
   0xc   : > { %s668_s26 = sshll.u32 %s981_s25, 3  ;;  %806 = vrcp.f32 %v822_v2  ;;  %v780_v16 = vld [vmem:[%s975_s3 + $0x28] sm:$0xff]  ;;  %353 = vmatpush.bf16.msra.mxu0 %v778_v14  ;;  %381 = vmatpush.bf16.msra.mxu1 %v776_v15  ;;  %v775_v18 = vld [vmem:[%s975_s3] sm:$0xff]  ;;  %v784_v44 = vld [vmem:[%s977_s5 + $0x18] sm:$0xff]  ;;  %vm484_vm11 = vcmask 523264   ;;  %s669_s9 = sshll.u32 %s981_s25, 2 }
   0xd   : > { %s269_s29 = scalar_lea.vmem %s972_s0, %s668_s26  ;;  %418 = vmatpush.bf16.msra.mxu2 %v780_v16  ;;  %v779_v19 = vld [vmem:[%s975_s3 + $0x20] sm:$0xff]  ;;  %v907_v34 = vshrl.u32 %v317_v29, 7  ;;  %v788_v45 = vld [vmem:[%s977_s5 + $0x38] sm:$0xff]  ;;  %492 = vmatpush.bf16.msra.mxu3 %v784_v44  ;;  %v783_v47 = vld [vmem:[%s977_s5 + $0x10] sm:$0xff]  ;;  %s273_s12 = scalar_lea.vmem %s979_s7, %s669_s9  ;;  %vm608_vm12 = vcmask 257024  }
   0xe   : > { %v877_v0 = vld [vmem:[%s269_s29] sm:$0xff]  ;;  %v792_v46 = vld [vmem:[%s977_s5 + $0x58] sm:$0xff]  ;;  %v787_v48 = vld [vmem:[%s977_s5 + $0x30] sm:$0xff] }
   0xf   : > { %v279_v1 = vsel %vm278_vm0, %v877_v0, 0.0  ;;  %v802_v30 = vld [vmem:[%s973_s1] ss:$0 sm:$0xff]  ;;  %vm319_vm5 = vcmp.ge.s32.totalorder %v907_v34, 1  ;;  %vm389_vm6 = vcmp.lt.s32.totalorder %v907_v34, 7  ;;  %v791_v49 = vld [vmem:[%s977_s5 + $0x50] sm:$0xff] }
  0x10   : > { %280 = vadd.xlane.f32.xlu0 %v279_v1  ;;  %354 = vmatpush.bf16.msra.mxu0 %v777_v17  ;;  %v803_v33 = vld [vmem:[%s974_s2] ss:$0 sm:$0xff]  ;;  %v782_v50 = vld [vmem:[%s977_s5 + $0x8] sm:$0xff] }
  0x11   : > { %382 = vmatpush.bf16.msra.mxu1 %v775_v18  ;;  %419 = vmatpush.bf16.msra.mxu2 %v779_v19  ;;  %v786_v51 = vld [vmem:[%s977_s5 + $0x28] sm:$0xff]  ;;  %v781_v55 = vld [vmem:[%s977_s5] sm:$0xff] }
  0x12   : > { %v807_v3 = vpop.eup %806  ;;  %493 = vmatpush.bf16.msra.mxu3 %v783_v47  ;;  %v790_v53 = vld [vmem:[%s977_s5 + $0x48] sm:$0xff]  ;;  %v785_v56 = vld [vmem:[%s977_s5 + $0x20] sm:$0xff] }
  0x13   : > { %v283_v4 = vmul.f32 32.0, %v807_v3  ;;  %vm287_vm1 = vweird.f32 %v807_v3  ;;  %v789_v57 = vld [vmem:[%s977_s5 + $0x40] sm:$0xff] }
  0x14   : > { %541 = vmatpush.bf16.msrb.mxu0 %v788_v45  ;;  %v804_v60 = vld [vmem:[%s976_s4] ss:$0 sm:$0xff] }
  0x15   : > { %v284_v5 = vsub.f32 1.0, %v283_v4  ;;  %588 = vmatpush.bf16.msrb.mxu1 %v792_v46 }
  0x16   : > { %494 = vmatpush.bf16.msra.mxu3 %v782_v50 }
  0x17   : > { %v285_v6 = vmul.f32 %v807_v3, %v284_v5 }
  0x18   : > { %542 = vmatpush.bf16.msrb.mxu0 %v787_v48 }
  0x19   : > { %v286_v7 = vadd.f32 %v807_v3, %v285_v6  ;;  %589 = vmatpush.bf16.msrb.mxu1 %v791_v49 }
  0x1a   : > { %495 = vmatpush.bf16.msra.mxu3 %v781_v55 }
  0x1b   : > { %v288_v8 = vsel %vm287_vm1, %v807_v3, %v286_v7 }
  0x1c   : > { %543 = vmatpush.bf16.msrb.mxu0 %v786_v51 }
  0x1d   : > { %590 = vmatpush.bf16.msrb.mxu1 %v790_v53 }
  0x20   : > { %544 = vmatpush.bf16.msrb.mxu0 %v785_v56 }
  0x21   : > { %591 = vmatpush.bf16.msrb.mxu1 %v789_v57 }
  0x83   : > { %v281_v9 = vpop.xlane.xlu0 %280 }
  0x84   : > { %v289_v10 = vmul.f32 %v288_v8, %v281_v9 }
  0x86   : > { %v290_v11 = vsub.f32 %v877_v0, %v289_v10 }
  0x88   : > { %v291_v12 = vmul.f32 %v290_v11, %v290_v11 }
  0x8a   : > { %v292_v13 = vsel %vm278_vm0, %v291_v12, 0.0 }
  0x8b   : > { %293 = vadd.xlane.f32.xlu0 %v292_v13 }
  0xfe   : > { %v294_v20 = vpop.xlane.xlu0 %293 }
  0xff   : > { %v295_v21 = vmul.f32 %v294_v20, %v288_v8 }
 0x101   : > { %v296_v22 = vadd.f32 1e-05, %v295_v21 }
 0x103   : > { %808 = vrsqrt.f32 %v296_v22  ;;  %vm303_vm3 = vweird.f32 %v296_v22 }
 0x109   : > { %v809_v23 = vpop.eup %808 }
 0x10a   : > { %v298_v24 = vmul.f32 %v809_v23, %v296_v22  ;;  %vm304_vm2 = vweird.f32 %v809_v23 }
 0x10b   : > { %vm305_vm4 = vmor %vm303_vm3, %vm304_vm2 }
 0x10c   : > { %v299_v25 = vmul.f32 %v809_v23, %v298_v24 }
 0x10e   : > { %v300_v26 = vmul.f32 0.5, %v299_v25 }
 0x110   : > { %v301_v27 = vsub.f32 1.5, %v300_v26 }
 0x112   : > { %v302_v28 = vmul.f32 %v809_v23, %v301_v27  ;;  %v805_v27 = vld [vmem:[%s978_s6] ss:$0 sm:$0xff] }
 0x114   : > { %v306_v31 = vsel %vm305_vm4, %v809_v23, %v302_v28 }
 0x115   : > { %v307_v32 = vmul.f32 %v306_v31, %v290_v11 }
 0x117   : > { %v311_v35 = vmul.f32 %v802_v30, %v307_v32 }
 0x119   : > { %v315_v36 = vadd.f32 %v803_v33, %v311_v35 }
 0x11b   : > { %v326_v37 = vpack.c.bf16 %v315_v36, %v315_v36  ;;  %v316_v38 = vrot.slane %v315_v36, 7  ;;  %v388_v39 = vrot.slane %v315_v36, 1 }
 0x11d   : > { %682 = vmatmul.msk.bf16.vlgmr.msra.gmra.mxu0 %vm278_vm0, %v326_v37  ;;  %v320_v40 = vsel %vm319_vm5, %v316_v38, 0.0  ;;  %v390_v41 = vsel %vm389_vm6, %v388_v39, 0.0 }
 0x11e   : > { %v321_v42 = vpack.c.bf16 %v320_v40, %v320_v40  ;;  %v391_v43 = vpack.c.bf16 %v390_v41, %v390_v41 }
 0x120   : > { %691 = vmatmul.msk.bf16.vlgmr.msra.gmra.mxu1 %vm278_vm0, %v321_v42  ;;  %704 = vmatmul.msk.bf16.vlgmr.msra.gmra.mxu2 %vm278_vm0, %v391_v43 }
 0x19a   : > { %v356_v52 = vpop.f32.mrf.mxu0 }
 0x19d   : > { %v384_v54 = vpop.f32.mrf.mxu1 }
 0x19e   : > { %v385_v58 = vadd.f32 %v384_v54, %v356_v52 }
 0x1a2   : > { %v358_v59 = vpop.f32.mrf.mxu0 }
 0x1a3   : > { %v421_v61 = vpop.f32.mrf.mxu2 }
 0x1a4   : > { %v425_v62 = vadd.f32 %v421_v61, %v385_v58 }
 0x1a5   : > { %v386_v63 = vpop.f32.mrf.mxu1 }
 0x1a6   : > { %v430_v1 = vadd.f32 %v804_v60, %v425_v62 }
 0x1a8   : > { %v705_v2 = vmul.f32 -1.442695, %v430_v1 }
 0x1aa   : > { %810 = vpow2.f32 %v705_v2 }
 0x1ab   : > { %v423_v3 = vpop.f32.mrf.mxu2 }
 0x1b0   : > { %v811_v4 = vpop.eup %810 }
 0x1b1   : > { %v434_v5 = vadd.f32 1.0, %v811_v4 }
 0x1b3   : > { %812 = vrcp.f32 %v434_v5  ;;  %v446_v9 = vand.u32 2147483648, %v434_v5  ;;  %v444_v11 = vand.u32 2147483647, %v434_v5  ;;  %vm440_vm8 = vweird.f32 %v434_v5 }
 0x1b5   : > { %v447_v13 = vor.u32 1.1754944e-38, %v446_v9  ;;  %vm445_vm10 = vcmp.eq.f32.partialorder %v444_v11, 8.507059e+37 }
 0x1b9   : > { %v813_v6 = vpop.eup %812 }
 0x1ba   : > { %v436_v7 = vmul.f32 %v813_v6, %v434_v5  ;;  %vm441_vm7 = vweird.f32 %v813_v6 }
 0x1bb   : > { %vm442_vm9 = vmor %vm440_vm8, %vm441_vm7 }
 0x1bc   : > { %v437_v8 = vsub.f32 1.0, %v436_v7 }
 0x1be   : > { %v438_v10 = vmul.f32 %v813_v6, %v437_v8 }
 0x1c0   : > { %v439_v12 = vadd.f32 %v813_v6, %v438_v10 }
 0x1c2   : > { %v443_v14 = vsel %vm442_vm9, %v813_v6, %v439_v12 }
 0x1c3   : > { %v448_v15 = vsel %vm445_vm10, %v447_v13, %v443_v14 }
 0x1c4   : > { %v450_v16 = vmul.f32 %v448_v15, %v430_v1 }
 0x1c6   : > { %v451_v17 = vpack.c.bf16 %v450_v16, %v450_v16 }
 0x1c8   : > { %722 = vmatmul.msk.bf16.vlgmr.msra.gmra.mxu3 %vm484_vm11, %v451_v17  ;;  %747 = vmatmul.msk.bf16.vlgmr.msrb.gmra.mxu0 %vm484_vm11, %v451_v17 }
 0x1c9   : > { %772 = vmatmul.msk.bf16.vlgmr.msrb.gmra.mxu1 %vm484_vm11, %v451_v17 }
 0x245   : > { %v546_v18 = vpop.f32.mrf.mxu0 }
 0x246   : > { %v593_v19 = vpop.f32.mrf.mxu1 }
 0x247   : > { %v597_v21 = vrot.slane %v593_v19, 1 }
 0x249   : > { %v598_v28 = vsel %vm389_vm6, %v597_v21, 0.0 }
 0x24b   : > { %v497_v20 = vpop.f32.mrf.mxu3 }
 0x24c   : > { %v501_v22 = vrot.slane %v497_v20, 7 }
 0x24d   : > { %v548_v23 = vpop.f32.mrf.mxu0 }
 0x24e   : > { %v502_v24 = vsel %vm319_vm5, %v501_v22, 0.0  ;;  %v595_v25 = vpop.f32.mrf.mxu1 }
 0x24f   : > { %v550_v26 = vadd.f32 %v546_v18, %v502_v24 }
 0x251   : > { %v599_v29 = vadd.f32 %v598_v28, %v550_v26 }
 0x253   : > { %v604_v30 = vadd.f32 %v805_v27, %v599_v29  ;;  %v499_v31 = vpop.f32.mrf.mxu3 }
 0x255   : > { %v605_v32 = vmul.f32 0.5, %v604_v30 }
 0x257   : > { %v606_v33 = vadd.f32 %v605_v32, %v877_v0 }
 0x259   : > { %v607_v35 = vpack.c.bf16 %v606_v33, %v606_v33 }
 0x25b   : > { %609 = vst.msk [vmem:[%s273_s12] sm:$0xf] %vm608_vm12, %v607_v35 }
 0x25c PF: > { %s17_s24 = sadd.s32 1, %s820_s24  }
 0x25d   : > { %p14_p4 = scmp.ge.s32.totalorder %s17_s24, 4  }
 0x25f   :  { %16 = sbr.rel (!%p14_p4) target bundleno = 1 (0x1), region = 82 }

// kernel: conformer_encoder_layer.8
= control target key start
LH: loop header
LB: loop body
LE: loop exit
PB: predicated region body
PF: predicated region fallthrough
CT: control target
= control target key end

     0   :  { %s1945_s0 = inlined_call_operand.vmem [shape: bf16[2,8,96], index: 0, kind: input, shape index: {}]   ;;  %s1946_s1 = inlined_call_operand.vmem [shape: bf16[1,128,32], index: 1, kind: input, shape index: {}]   ;;  %s1947_s2 = inlined_call_operand.vmem [shape: bf16[32,32], index: 2, kind: input, shape index: {}]   ;;  %s1948_s3 = inlined_call_operand.vmem [shape: f32[1,32], index: 3, kind: input, shape index: {}]   ;;  %s1949_s4 = inlined_call_operand.vmem [shape: f32[1,32], index: 4, kind: input, shape index: {}]   ;;  %s1950_s5 = inlined_call_operand.vmem [shape: f32[2,1,8], index: 5, kind: input, shape index: {}]   ;;  %s1951_s6 = inlined_call_operand.vmem [shape: bf16[32,32], index: 6, kind: input, shape index: {}]   ;;  %s1952_s7 = inlined_call_operand.vmem [shape: f32[1,32], index: 7, kind: input, shape index: {}]   ;;  %s1953_s8 = inlined_call_operand.vmem [shape: bf16[2,8,32], index: 8, kind: input, shape index: {}]   ;;  %s1954_s9 = inlined_call_operand.vmem [shape: bf16[2,8,32], index: 9, kind: output, shape index: {0}]   ;;  %s1955_s10 = inlined_call_operand.hbm [shape: bf16[2,4,8,8], index: 10, kind: output, shape index: {1}]  }
   0x1   :  { %1957 = sst [smem:[#allocation5_spill]] %s1945_s0 }
   0x2   :  { %1958 = sst [smem:[#allocation6_spill]] %s1946_s1 }
   0x3   :  { %1959 = sst [smem:[#allocation7_spill]] %s1947_s2 }
   0x4   :  { %1960 = sst [smem:[#allocation8_spill]] %s1948_s3 }
   0x5   :  { %16 = vsyncpa [#allocation3], 0 }
   0x6   :  { %18 = vsyncpa [#allocation3 + $0x1], 0  ;;  %s1596_s13 = smov 0   ;;  %s1598_s14 = smov 0  }
   0x7   :  { %s1600_s15 = smov 0   ;;  %s1602_s16 = smov 0  }
   0x8 LB: > { %s1617_s17 = sadd.s32 4294967295, %s1522_s16   ;;  %s1285_s18 = sadd.s32 4294967294, %s1522_s16   ;;  %s1522_s16 = sphi %s1602_s16, %s1971_s16   ;;  %s1518_s15 = sphi %s1600_s15, %s1970_s15   ;;  %s1514_s14 = sphi %s1598_s14, %s1969_s14   ;;  %s1510_s13 = sphi %s1596_s13, %s1968_s13  }
   0x9   : > { %s1621_s19 = sadd.s32 1, %s1522_s16   ;;  %s261_s20 = sadd.s32 1, %s1518_s15 }
   0xa   : > { %s258_s21 = ssub.s32 %s1522_s16, %s1621_s19  ;;  %p271_p0 = scmp.ne.s32.totalorder %s1518_s15, %s1514_s14 }
   0xb   : > { %p259_p1 = scmp.eq.s32.totalorder %s258_s21, 0  ;;  %p272_p2 = scmp.eq.s32.totalorder %s1617_s17, 1 }
   0xc   : > { %p277_p3 = scmp.ne.s32.totalorder %s1514_s14, %s1510_s13  ;;  %p278_p4 = scmp.eq.s32.totalorder %s1285_s18, 1 }
   0xd   : > { %s1632_s22 = scalar_select %p259_p1, %s1518_s15, %s261_s20  }
   0xe   : > { %p1634_p5 = por %p272_p2, %p271_p0  ;;  %p1638_p6 = por %p278_p4, %p277_p3 }
   0xf   : > { %p1288_p7 = scmp.ge.s32.totalorder %s1522_s16, 1  ;;  %p334_p8 = scmp.lt.s32.totalorder %s1522_s16, 3 }
  0x11   : > { %p335_p9 = pnand %p1288_p7, %p334_p8 }
  0x12   : > { %s1963_s2 = sld [smem:[#allocation7_spill]] (!%p335_p9)  ;;  %p382_p10 = scmp.lt.s32.totalorder (!%p335_p9), %s1617_s17, 1 }
  0x13   : > { %338 = sbr.rel (%p335_p9) target bundleno = 2253 (0x8cd), region = 56  ;;  %s1964_s1 = sld [smem:[#allocation6_spill]] (!%p335_p9) }
  0x14   : > { %s1965_s0 = sld [smem:[#allocation5_spill]] (!%p335_p9)  ;;  %s1524_s28 = smov (!%p335_p9), 96  }
  0x15   : > { %s1525_s29 = smov (!%p335_p9), 120   ;;  %s1956_s30 = smov (!%p335_p9), 64  }
  0x16   : > { %s1966_s3 = sld [smem:[#allocation8_spill]] (!%p335_p9)  ;;  %s1527_s26 = smov (!%p335_p9), 257  }
  0x17   : > { %s1531_s12 = smov (!%p335_p9), 56   ;;  %s1532_s18 = smov (!%p335_p9), 104  }
  0x18   : > { %v1379_v0 = vld [vmem:[%s1963_s2 + $0x8] sm:$0xff]  ;;  %v1378_v1 = vld [vmem:[%s1963_s2] sm:$0xff]  ;;  %vm471_vm0 = vcmask 261120   ;;  %vm617_vm1 = vcmask 64512   ;;  %s1696_s20 = scalar_select %p382_p10, %s1617_s17, 1  ;;  %vm710_vm3 = vcmask 1043456  }
  0x19   : > { %502 = vmatpush.bf16.msra.mxu0 %v1379_v0  ;;  %1383 = vmatpush.bf16.msra.mxu3 %v1379_v0  ;;  %v1370_v2 = vld [vmem:[%s1964_s1] sm:$0xff]  ;;  %v1371_v3 = vld [vmem:[%s1964_s1 + $0x8] sm:$0xff]  ;;  %v1372_v4 = vld [vmem:[%s1964_s1 + $0x10] sm:$0xff]  ;;  %s379_s25 = sand.u32 1, %s1514_s14   ;;  %vm703_vm4 = vcmask 60416   ;;  %vm1108_vm5 = vcmask 130048  }
  0x1a   : > { %v1377_v5 = vld [vmem:[%s1964_s1 + $0x38] sm:$0xff]  ;;  %v1374_v7 = vld [vmem:[%s1964_s1 + $0x20] sm:$0xff]  ;;  %v1375_v8 = vld [vmem:[%s1964_s1 + $0x28] sm:$0xff]  ;;  %s1699_s21 = sshll.u32 %s1696_s20, 2  ;;  %s388_s11 = scalar_lea.vmem %s1950_s5, %s1696_s20  ;;  %vm1110_vm6 = vcmask 195584  }
  0x1b   : > { %v1373_v6 = vld [vmem:[%s1964_s1 + $0x18] sm:$0xff]  ;;  %v1376_v9 = vld [vmem:[%s1964_s1 + $0x30] sm:$0xff]  ;;  %s385_s27 = scalar_lea.vmem %s1965_s0, %s1699_s21  ;;  %s1529_s20 = smov 88  }
  0x1c   : > { %v398_v53 = vld [vmem:[%s385_s27] sm:$0xf]  ;;  %s1289_s27 = sshll.u32 %s379_s25, 4 }
  0x1d   : > { %503 = vmatpush.bf16.msra.mxu0 %v1378_v1  ;;  %1384 = vmatpush.bf16.msra.mxu3 %v1378_v1  ;;  %v663_v55 = vunpack.c.l.b16 %v398_v53 }
  0x1f   : > { %v1705_v59 = vpack.c.b16 %v663_v55, %v663_v55 }
  0x20   : > { %1333 = vmatmul.msk.bf16.vlgmr.msra.gmra.mxu0 %vm471_vm0, %v1370_v2  ;;  %1340 = vmatmul.msk.bf16.vlgmr.msra.gmra.mxu3 %vm471_vm0, %v1377_v5 }
  0x21   : > { %665 = vrot.lane.b32.xlu0 %v1705_v59, %s1524_s28  ;;  %s1805_s28 = scalar_lea.vmem [#allocation2], %s1289_s27  ;;  %s1539_s27 = smov 24  }
  0x30   : > { %1334 = vmatmul.msk.bf16.gmra.mxu0 %vm471_vm0, %v1371_v3 }
  0x40   : > { %1335 = vmatmul.msk.bf16.gmra.mxu0 %vm471_vm0, %v1372_v4 }
  0x50   : > { %1336 = vmatmul.msk.bf16.gmra.mxu0 %vm471_vm0, %v1373_v6 }
  0x60   : > { %1337 = vmatmul.msk.bf16.gmra.mxu0 %vm471_vm0, %v1374_v7 }
  0x70   : > { %1338 = vmatmul.msk.bf16.gmra.mxu0 %vm471_vm0, %v1375_v8 }
  0x80   : > { %1339 = vmatmul.msk.bf16.gmra.mxu0 %vm471_vm0, %v1376_v9 }
  0x9d   : > { %v505_v10 = vpop.f32.mrf.mxu0 }
  0x9e   : > { %v545_v11 = vpack.c.bf16 %v505_v10, %v505_v10 }
  0xa0   : > { %v593_v14 = vunpack.c.l.b16 %v545_v11 }
  0xa3   : > { %v540_v32 = vpop.f32.mrf.mxu3 }
  0xa4   : > { %v559_v33 = vpack.c.bf16 %v540_v32, %v540_v32 }
  0xa5   : > { %v507_v12 = vpop.f32.mrf.mxu0 }
  0xa6   : > { %v546_v13 = vpack.c.bf16 %v507_v12, %v507_v12  ;;  %v607_v38 = vunpack.c.l.b16 %v559_v33  ;;  %v566_v12 = vunpack.c.l.bf16 %v398_v53 }
  0xa8   : > { %v594_v15 = vunpack.c.l.b16 %v546_v13  ;;  %v1441_v13 = vld [vmem:[%s1949_s4] ss:$0 sm:$0xff] }
  0xaa   : > { %v1682_v16 = vpack.c.b16 %v594_v15, %v593_v14  ;;  %v575_v15 = vadd.f32 %v1441_v13, %v566_v12 }
  0xab   : > { %v542_v36 = vpop.f32.mrf.mxu3 }
  0xac   : > { %v560_v39 = vpack.c.bf16 %v542_v36, %v542_v36  ;;  %v622_v14 = vsel %vm617_vm1, %v1682_v16, 0 }
  0xad   : > { %v510_v17 = vpop.f32.mrf.mxu0 }
  0xae   : > { %v547_v18 = vpack.c.bf16 %v510_v17, %v510_v17  ;;  %v608_v42 = vunpack.c.l.b16 %v560_v39  ;;  %v1743_v17 = vpack.c.bf16 %v575_v15, %v575_v15 }
  0xb0   : > { %v595_v21 = vunpack.c.l.b16 %v547_v18  ;;  %v1690_v44 = vpack.c.b16 %v608_v42, %v607_v38  ;;  %v1442_v18 = vld [vmem:[%s1966_s3] ss:$0 sm:$0xff] }
  0xb2   : > { %v643_v45 = vsel %vm617_vm1, %v1690_v44, 0 }
  0xb3   : > { %645 = vmatpush.bf16.xpose.msra.mxu1 %v643_v45 }
  0xb5   : > { %v512_v19 = vpop.f32.mrf.mxu0 }
  0xb6   : > { %v548_v20 = vpack.c.bf16 %v512_v19, %v512_v19  ;;  %v666_v19 = vpop.permute.xlu0 %665 }
  0xb8   : > { %v596_v22 = vunpack.c.l.b16 %v548_v20  ;;  %v671_v20 = vsel %vm617_vm1, %v666_v19, 0 }
  0xb9   : > { %680 = vmatpush.bf16.xpose.msra.mxu2 %v671_v20 }
  0xba   : > { %v1684_v23 = vpack.c.b16 %v596_v22, %v595_v21  ;;  %v570_v21 = vadd.f32 %v1442_v18, %v566_v12 }
  0xbc   : > { %v625_v11 = vsel %vm617_vm1, %v1684_v23, 0  ;;  %v1751_v22 = vpack.c.bf16 %v570_v21, %v570_v21 }
  0xbd   : > { %v515_v24 = vpop.f32.mrf.mxu0 }
  0xbe   : > { %v549_v25 = vpack.c.bf16 %v515_v24, %v515_v24 }
  0xc0   : > { %v597_v28 = vunpack.c.l.b16 %v549_v25  ;;  %1342 = vmatmul.msk.bf16.vlgmr.msra.gmra.mxu2 %vm617_vm1, %v1751_v22 }
  0xc5   : > { %v517_v26 = vpop.f32.mrf.mxu0 }
  0xc6   : > { %v550_v27 = vpack.c.bf16 %v517_v26, %v517_v26 }
  0xc8   : > { %v598_v29 = vunpack.c.l.b16 %v550_v27 }
  0xca   : > { %v1686_v30 = vpack.c.b16 %v598_v29, %v597_v28  ;;  %v561_v28 = vld [vmem:[%s388_s11] sm:$0x1]  ;;  %v1528_v29 = vmov -1e+09   ;;  %s1533_s11 = smov 80  }
  0xcb   : > { %vm562_vm2 = vcmp.gt.f32.partialorder %v561_v28, 0.0 }
  0xcc   : > { %v628_v10 = vsel %vm617_vm1, %v1686_v30, 0 }
  0xcd   : > { %v520_v31 = vpop.f32.mrf.mxu0 }
  0xce   : > { %v551_v34 = vpack.c.bf16 %v520_v31, %v520_v31  ;;  %v563_v31 = vsel %vm562_vm2, 0.0, %v1528_v29 }
  0xd0   : > { %v599_v40 = vunpack.c.l.b16 %v551_v34  ;;  %v1762_v34 = vperm.slane %v563_v31, 0 }
  0xd5   : > { %v522_v35 = vpop.f32.mrf.mxu0 }
  0xd6   : > { %v552_v37 = vpack.c.bf16 %v522_v35, %v522_v35 }
  0xd8   : > { %v600_v41 = vunpack.c.l.b16 %v552_v37 }
  0xda   : > { %v1688_v43 = vpack.c.b16 %v600_v41, %v599_v40 }
  0xdc   : > { %v631_v9 = vsel %vm617_vm1, %v1688_v43, 0 }
  0xdd   : > { %v525_v46 = vpop.f32.mrf.mxu0 }
  0xde   : > { %v553_v3 = vpack.c.bf16 %v525_v46, %v525_v46 }
  0xe0   : > { %v601_v6 = vunpack.c.l.b16 %v553_v3 }
  0xe5   : > { %v527_v47 = vpop.f32.mrf.mxu0 }
  0xe6   : > { %v554_v1 = vpack.c.bf16 %v527_v47, %v527_v47 }
  0xe8   : > { %v602_v4 = vunpack.c.l.b16 %v554_v1 }
  0xea   : > { %v1720_v7 = vpack.c.b16 %v602_v4, %v601_v6 }
  0xec   : > { %v634_v8 = vsel %vm617_vm1, %v1720_v7, 0 }
  0xed   : > { %v530_v48 = vpop.f32.mrf.mxu0 }
  0xee   : > { %v555_v60 = vpack.c.bf16 %v530_v48, %v530_v48 }
  0xf0   : > { %v603_v0 = vunpack.c.l.b16 %v555_v60 }
  0xf5   : > { %v532_v49 = vpop.f32.mrf.mxu0 }
  0xf6   : > { %v556_v56 = vpack.c.bf16 %v532_v49, %v532_v49 }
  0xf8   : > { %v604_v62 = vunpack.c.l.b16 %v556_v56 }
  0xfa   : > { %v1714_v2 = vpack.c.b16 %v604_v62, %v603_v0 }
  0xfc   : > { %v637_v5 = vsel %vm617_vm1, %v1714_v2, 0 }
  0xfd   : > { %v535_v50 = vpop.f32.mrf.mxu0 }
  0xfe   : > { %v557_v51 = vpack.c.bf16 %v535_v50, %v535_v50 }
 0x100   : > { %v605_v57 = vunpack.c.l.b16 %v557_v51 }
 0x105   : > { %v537_v52 = vpop.f32.mrf.mxu0 }
 0x106   : > { %v558_v54 = vpack.c.bf16 %v537_v52, %v537_v52 }
 0x108   : > { %v606_v58 = vunpack.c.l.b16 %v558_v54 }
 0x10a   : > { %v1707_v61 = vpack.c.b16 %v606_v58, %v605_v57 }
 0x10c   : > { %742 = vrot.lane.b32.xlu2 %v1707_v61, %s1525_s29  ;;  %v640_v63 = vsel %vm617_vm1, %v1707_v61, 0 }
 0x10d   : > { %646 = vmatpush.bf16.xpose.msra.mxu1 %v640_v63 }
 0x114   : > { %740 = vrot.lane.b32.xlu2 %v1714_v2, %s1525_s29 }
 0x115   : > { %647 = vmatpush.bf16.xpose.msra.mxu1 %v637_v5 }
 0x11c   : > { %736 = vrot.lane.b32.xlu2 %v1688_v43, %s1525_s29 }
 0x11d   : > { %648 = vmatpush.bf16.xpose.msra.mxu1 %v634_v8 }
 0x124   : > { %734 = vrot.lane.b32.xlu2 %v1686_v30, %s1525_s29 }
 0x125   : > { %649 = vmatpush.bf16.xpose.msra.mxu1 %v631_v9 }
 0x12c   : > { %705 = vrot.lane.b32.xlu2 %v1705_v59, %s1956_s30 }
 0x12d   : > { %650 = vmatpush.bf16.xpose.msra.mxu1 %v628_v10 }
 0x134   : > { %730 = vrot.lane.b32.xlu2 %v1682_v16, %s1525_s29 }
 0x135   : > { %651 = vmatpush.bf16.xpose.msra.mxu1 %v625_v11 }
 0x13c   : > { %793 = vrot.lane.b32.xlu2 %v1705_v59, %s1529_s20  ;;  %s1534_s20 = smov 72  }
 0x13d   : > { %652 = vmatpush.bf16.xpose.msra.mxu1 %v622_v14 }
 0x143   : > { %v682_v26 = vpop.f32.mrf.mxu2 }
 0x144   : > { %1341 = vmatmul.msk.bf16.vlgmr.msra.gmra.mxu1 %vm617_vm1, %v1743_v17 }
 0x14b   : > { %v684_v27 = vpop.f32.mrf.mxu2 }
 0x166   : > { %v743_v38 = vpop.permute.xlu2 %742 }
 0x167   : > { %v768_v53 = vsel %vm617_vm1, %v743_v38, 0 }
 0x16e   : > { %v741_v39 = vpop.permute.xlu2 %740 }
 0x16f   : > { %v765_v54 = vsel %vm617_vm1, %v741_v39, 0 }
 0x176   : > { %v737_v40 = vpop.permute.xlu2 %736 }
 0x177   : > { %v759_v57 = vsel %vm617_vm1, %v737_v40, 0 }
 0x17e   : > { %v735_v41 = vpop.permute.xlu2 %734 }
 0x17f   : > { %v756_v58 = vsel %vm617_vm1, %v735_v41, 0 }
 0x186   : > { %v706_v42 = vpop.permute.xlu2 %705 }
 0x187   : > { %v712_v45 = vsel %vm710_vm3, %v706_v42, 0 }
 0x188   : > { %721 = vmatpush.bf16.msrb.mxu3 %v712_v45 }
 0x18e   : > { %v731_v63 = vpop.permute.xlu2 %730 }
 0x18f   : > { %v750_v0 = vsel %vm617_vm1, %v731_v63, 0 }
 0x196   : > { %v794_v10 = vpop.permute.xlu2 %793 }
 0x197   : > { %v799_v12 = vsel %vm617_vm1, %v794_v10, 0 }
 0x198   : > { %808 = vmatpush.bf16.xpose.msrb.mxu2 %v799_v12 }
 0x1c1   : > { %v654_v24 = vpop.f32.mrf.mxu1 }
 0x1c2   : > { %660 = vrot.lane.b32.xlu0 %v654_v24, %s1527_s26 }
 0x1c9   : > { %v656_v25 = vpop.f32.mrf.mxu1 }
 0x1ca   : > { %738 = vrot.lane.b32.xlu0 %v1720_v7, %s1525_s29 }
 0x234   : > { %v661_v32 = vpop.permute.xlu0 %660 }
 0x235   : > { %v683_v33 = vadd.f32 %v682_v26, %v661_v32 }
 0x237   : > { %v686_v35 = vmul.f32 0.35355338, %v683_v33 }
 0x239   : > { %v690_v36 = vadd.f32 %v1762_v34, %v686_v35 }
 0x23b   : > { %v691_v37 = vsel %vm617_vm1, %v690_v36, -inf }
 0x23c   : > { %692 = vmax.xlane.f32.xlu1 %v691_v37  ;;  %v739_v55 = vpop.permute.xlu0 %738 }
 0x23d   : > { %v762_v56 = vsel %vm617_vm1, %v739_v55, 0 }
 0x255   : > { %744 = vrot.lane.b32.xlu1 %v1690_v44, %s1525_s29 }
 0x25d   : > { %732 = vrot.lane.b32.xlu1 %v1684_v23, %s1525_s29 }
 0x265   : > { %728 = vrot.lane.b32.xlu1 %v1743_v17, %s1525_s29 }
 0x26d   : > { %791 = vrot.lane.b32.xlu1 %v1751_v22, %s1525_s29  ;;  %s1530_s29 = smov 112  }
 0x2af   : > { %v693_v46 = vpop.xlane.xlu1 %692 }
 0x2b0   : > { %v694_v47 = vsub.f32 %v690_v36, %v693_v46 }
 0x2b2   : > { %v695_v48 = vmul.f32 1.442695, %v694_v47 }
 0x2b4   : > { %1444 = vpow2.f32 %v695_v48 }
 0x2ba   : > { %v1445_v49 = vpop.eup %1444 }
 0x2bb   : > { %v697_v50 = vsel %vm617_vm1, %v1445_v49, 0.0 }
 0x2bc   : > { %698 = vadd.xlane.f32.xlu0 %v697_v50 }
 0x2c7   : > { %v745_v51 = vpop.permute.xlu1 %744 }
 0x2c8   : > { %v771_v52 = vsel %vm617_vm1, %v745_v51, 0 }
 0x2c9   : > { %773 = vmatpush.bf16.xpose.msra.mxu3 %v771_v52 }
 0x2cf   : > { %v733_v60 = vpop.permute.xlu1 %732 }
 0x2d0   : > { %865 = vrot.lane.b32.xlu0 %v1707_v61, %s1530_s29  ;;  %v753_v62 = vsel %vm617_vm1, %v733_v60, 0 }
 0x2d1   : > { %774 = vmatpush.bf16.xpose.msra.mxu3 %v768_v53 }
 0x2d8   : > { %861 = vrot.lane.b32.xlu0 %v1720_v7, %s1530_s29 }
 0x2d9   : > { %775 = vmatpush.bf16.xpose.msra.mxu3 %v765_v54 }
 0x2e0   : > { %859 = vrot.lane.b32.xlu0 %v1688_v43, %s1530_s29 }
 0x2e1   : > { %776 = vmatpush.bf16.xpose.msra.mxu3 %v762_v56 }
 0x2e8   : > { %857 = vrot.lane.b32.xlu0 %v1686_v30, %s1530_s29 }
 0x2e9   : > { %777 = vmatpush.bf16.xpose.msra.mxu3 %v759_v57 }
 0x2f0   : > { %830 = vrot.lane.b32.xlu0 %v1705_v59, %s1531_s12  ;;  %s1537_s12 = smov 40  }
 0x2f1   : > { %778 = vmatpush.bf16.xpose.msra.mxu3 %v756_v58 }
 0x2f8   : > { %983 = vrot.lane.b32.xlu0 %v1720_v7, %s1532_s18 }
 0x2f9   : > { %779 = vmatpush.bf16.xpose.msra.mxu3 %v753_v62 }
 0x300   : > { %981 = vrot.lane.b32.xlu0 %v1688_v43, %s1532_s18  ;;  %v729_v43 = vpop.permute.xlu1 %728 }
 0x301   : > { %780 = vmatpush.bf16.xpose.msra.mxu3 %v750_v0 }
 0x308   : > { %979 = vrot.lane.b32.xlu0 %v1686_v30, %s1532_s18  ;;  %v792_v13 = vpop.permute.xlu1 %791 }
 0x309   : > { %1345 = vmatmul.msk.bf16.vlgmr.msrb.gmra.mxu2 %vm617_vm1, %v792_v13 }
 0x310   : > { %975 = vrot.lane.b32.xlu0 %v1682_v16, %s1532_s18 }
 0x318   : > { %915 = vrot.lane.b32.xlu0 %v1705_v59, %s1533_s11 }
 0x320   : > { %1037 = vrot.lane.b32.xlu0 %v1705_v59, %s1534_s20  ;;  %s1175_s20 = sshll.u32 %s1805_s28, 4  ;;  %s1176_s20 = int_to_ptr.vmem [resolvable:$true] %s1175_s20 }
 0x32f   : > { %v699_v1 = vpop.xlane.xlu0 %698 }
 0x330   : > { %1446 = vrcp.f32 %v699_v1 }
 0x336   : > { %v1447_v3 = vpop.eup %1446 }
 0x337   : > { %v701_v4 = vmul.f32 %v1447_v3, %v1445_v49 }
 0x339   : > { %v702_v5 = vpack.c.bf16 %v701_v4, %v701_v4 }
 0x33b   : > { %704 = vst.msk [vmem:[%s1805_s28] sm:$0xf] %vm703_vm4, %v702_v5  ;;  %1343 = vmatmul.msk.bf16.vlgmr.msrb.gmra.mxu3 %vm617_vm1, %v702_v5 }
 0x342   : > { %v866_v30 = vpop.permute.xlu0 %865 }
 0x34a   : > { %v862_v6 = vpop.permute.xlu0 %861 }
 0x34b   : > { %1344 = vmatmul.msk.bf16.vlgmr.msra.gmra.mxu3 %vm617_vm1, %v729_v43  ;;  %v885_v37 = vsel %vm617_vm1, %v862_v6, 0 }
 0x352   : > { %v860_v7 = vpop.permute.xlu0 %859 }
 0x353   : > { %v882_v39 = vsel %vm617_vm1, %v860_v7, 0 }
 0x35a   : > { %v858_v8 = vpop.permute.xlu0 %857 }
 0x35b   : > { %v879_v40 = vsel %vm617_vm1, %v858_v8, 0 }
 0x362   : > { %v831_v9 = vpop.permute.xlu0 %830 }
 0x363   : > { %v836_v11 = vsel %vm710_vm3, %v831_v9, 0 }
 0x364   : > { %845 = vmatpush.bf16.msra.mxu2 %v836_v11 }
 0x36a   : > { %v984_v47 = vpop.permute.xlu0 %983 }
 0x36b   : > { %v1007_v50 = vsel %vm617_vm1, %v984_v47, 0 }
 0x372   : > { %v982_v51 = vpop.permute.xlu0 %981 }
 0x373   : > { %v1004_v54 = vsel %vm617_vm1, %v982_v51, 0 }
 0x37a   : > { %v980_v55 = vpop.permute.xlu0 %979 }
 0x37b   : > { %v1001_v56 = vsel %vm617_vm1, %v980_v55, 0 }
 0x382   : > { %v976_v60 = vpop.permute.xlu0 %975 }
 0x38a   : > { %v916_v63 = vpop.permute.xlu0 %915 }
 0x38b   : > { %v921_v0 = vsel %vm617_vm1, %v916_v63, 0 }
 0x38c   : > { %v810_v20 = vpop.f32.mrf.mxu2  ;;  %930 = vmatpush.bf16.xpose.msrb.mxu1 %v921_v0 }
 0x392   : > { %v1038_v3 = vpop.permute.xlu0 %1037 }
 0x393   : > { %v1043_v4 = vsel %vm617_vm1, %v1038_v3, 0 }
 0x394   : > { %v812_v21 = vpop.f32.mrf.mxu2  ;;  %1052 = vmatpush.bf16.xpose.msra.mxu1 %v1043_v4 }
 0x3be   : > { %v1814_v14 = vpop.f32.mrf.mxu3 }
 0x3c6   : > { %v725_v15 = vpop.f32.mrf.mxu3 }
 0x3ce   : > { %v782_v18 = vpop.f32.mrf.mxu3 }
 0x3cf   : > { %788 = vrot.lane.b32.xlu2 %v782_v18, %s1527_s26 }
 0x3d6   : > { %v784_v19 = vpop.f32.mrf.mxu3 }
 0x3d7   : > { %867 = vrot.lane.b32.xlu2 %v1690_v44, %s1530_s29 }
 0x3df   : > { %863 = vrot.lane.b32.xlu2 %v1714_v2, %s1530_s29 }
 0x3e7   : > { %989 = vrot.lane.b32.xlu2 %v1690_v44, %s1532_s18  ;;  %v891_v44 = vsel %vm617_vm1, %v866_v30, 0 }
 0x3ef   : > { %987 = vrot.lane.b32.xlu2 %v1707_v61, %s1532_s18 }
 0x429   : > { %v789_v24 = vpop.permute.xlu2 %788 }
 0x42a   : > { %v811_v25 = vadd.f32 %v810_v20, %v789_v24 }
 0x42c   : > { %v814_v26 = vmul.f32 0.35355338, %v811_v25 }
 0x42e   : > { %v815_v27 = vadd.f32 %v814_v26, %v1762_v34 }
 0x430   : > { %v816_v28 = vsel %vm617_vm1, %v815_v27, -inf }
 0x431   : > { %v868_v29 = vpop.permute.xlu2 %867  ;;  %817 = vmax.xlane.f32.xlu1 %v816_v28 }
 0x432   : > { %v894_v31 = vsel %vm617_vm1, %v868_v29, 0 }
 0x433   : > { %896 = vmatpush.bf16.xpose.msrb.mxu2 %v894_v31 }
 0x439   : > { %v864_v32 = vpop.permute.xlu2 %863 }
 0x43a   : > { %v888_v61 = vsel %vm617_vm1, %v864_v32, 0 }
 0x43b   : > { %897 = vmatpush.bf16.xpose.msrb.mxu2 %v891_v44 }
 0x441   : > { %v990_v33 = vpop.permute.xlu2 %989 }
 0x442   : > { %v1016_v35 = vsel %vm617_vm1, %v990_v33, 0 }
 0x443   : > { %898 = vmatpush.bf16.xpose.msrb.mxu2 %v888_v61  ;;  %1018 = vmatpush.bf16.xpose.msrb.mxu0 %v1016_v35 }
 0x449   : > { %v988_v36 = vpop.permute.xlu2 %987 }
 0x44a   : > { %985 = vrot.lane.b32.xlu1 %v1714_v2, %s1532_s18  ;;  %v1013_v38 = vsel %vm617_vm1, %v988_v36, 0 }
 0x44b   : > { %899 = vmatpush.bf16.xpose.msrb.mxu2 %v885_v37  ;;  %1019 = vmatpush.bf16.xpose.msrb.mxu0 %v1013_v38 }
 0x452   : > { %855 = vrot.lane.b32.xlu1 %v1684_v23, %s1530_s29 }
 0x453   : > { %900 = vmatpush.bf16.xpose.msrb.mxu2 %v882_v39 }
 0x45a   : > { %853 = vrot.lane.b32.xlu1 %v1682_v16, %s1530_s29 }
 0x45b   : > { %901 = vmatpush.bf16.xpose.msrb.mxu2 %v879_v40 }
 0x462   : > { %977 = vrot.lane.b32.xlu1 %v1684_v23, %s1532_s18 }
 0x46a   : > { %973 = vrot.lane.b32.xlu1 %v1743_v17, %s1532_s18 }
 0x472   : > { %913 = vrot.lane.b32.xlu1 %v1751_v22, %s1530_s29 }
 0x4a4   : > { %v818_v2 = vpop.xlane.xlu1 %817 }
 0x4a5   : > { %v819_v41 = vsub.f32 %v815_v27, %v818_v2 }
 0x4a7   : > { %v820_v42 = vmul.f32 1.442695, %v819_v41 }
 0x4a9   : > { %1448 = vpow2.f32 %v820_v42 }
 0x4af   : > { %v1449_v45 = vpop.eup %1448 }
 0x4b0   : > { %v822_v16 = vsel %vm617_vm1, %v1449_v45, 0.0 }
 0x4b1   : > { %823 = vadd.xlane.f32.xlu2 %v822_v16 }
 0x4bc   : > { %v986_v46 = vpop.permute.xlu1 %985 }
 0x4bd   : > { %v1010_v23 = vsel %vm617_vm1, %v986_v46, 0 }
 0x4be   : > { %1020 = vmatpush.bf16.xpose.msrb.mxu0 %v1010_v23 }
 0x4c4   : > { %v856_v48 = vpop.permute.xlu1 %855 }
 0x4c5   : > { %v876_v49 = vsel %vm617_vm1, %v856_v48, 0 }
 0x4c6   : > { %902 = vmatpush.bf16.xpose.msrb.mxu2 %v876_v49  ;;  %1021 = vmatpush.bf16.xpose.msrb.mxu0 %v1007_v50 }
 0x4c9   : > { %851 = vrot.lane.b32.xlu2 %v1743_v17, %s1530_s29  ;;  %v995_v17 = vsel %vm617_vm1, %v976_v60, 0  ;;  %s1535_s29 = smov 48  }
 0x4cc   : > { %v854_v52 = vpop.permute.xlu1 %853 }
 0x4cd   : > { %v873_v53 = vsel %vm617_vm1, %v854_v52, 0 }
 0x4ce   : > { %903 = vmatpush.bf16.xpose.msrb.mxu2 %v873_v53  ;;  %1022 = vmatpush.bf16.xpose.msrb.mxu0 %v1004_v54 }
 0x4d1   : > { %1035 = vrot.lane.b32.xlu2 %v1751_v22, %s1532_s18  ;;  %s1538_s18 = smov 16  }
 0x4d4   : > { %v978_v57 = vpop.permute.xlu1 %977 }
 0x4d5   : > { %v998_v58 = vsel %vm617_vm1, %v978_v57, 0  ;;  %v1380_v57 = vld [vmem:[%s1951_s6] sm:$0xff] }
 0x4d6   : > { %1023 = vmatpush.bf16.xpose.msrb.mxu0 %v1001_v56  ;;  %v1381_v56 = vld [vmem:[%s1951_s6 + $0x8] sm:$0xff] }
 0x4dc   : > { %v974_v62 = vpop.permute.xlu1 %973 }
 0x4de   : > { %1024 = vmatpush.bf16.xpose.msrb.mxu0 %v998_v58 }
 0x4e4   : > { %v914_v1 = vpop.permute.xlu1 %913 }
 0x4e5   : > { %1349 = vmatmul.msk.bf16.vlgmr.msrb.gmra.mxu1 %vm617_vm1, %v914_v1 }
 0x4e6   : > { %1025 = vmatpush.bf16.xpose.msrb.mxu0 %v995_v17  ;;  %1142 = vmatpush.bf16.msrb.mxu1 %v1381_v56 }
 0x4ea   : > { %1143 = vmatpush.bf16.msrb.mxu1 %v1380_v57 }
 0x4ed   : > { %1352 = vmatmul.msk.bf16.vlgmr.msrb.gmra.mxu0 %vm617_vm1, %v974_v62 }
 0x524   : > { %v824_v22 = vpop.xlane.xlu2 %823 }
 0x525   : > { %1450 = vrcp.f32 %v824_v22 }
 0x52b   : > { %v1451_v5 = vpop.eup %1450 }
 0x52c   : > { %v826_v30 = vmul.f32 %v1451_v5, %v1449_v45  ;;  %v852_v6 = vpop.permute.xlu2 %851 }
 0x52e   : > { %v827_v43 = vpack.c.bf16 %v826_v30, %v826_v30 }
 0x530   : > { %1346 = vst.msk [vmem:[%s1805_s28 + $0x4] sm:$0xf] %vm703_vm4, %v827_v43  ;;  %1347 = vmatmul.msk.bf16.vlgmr.msra.gmra.mxu2 %vm617_vm1, %v827_v43 }
 0x534   : > { %v1036_v7 = vpop.permute.xlu2 %1035 }
 0x535   : > { %1353 = vmatmul.msk.bf16.vlgmr.msra.gmra.mxu1 %vm617_vm1, %v1036_v7 }
 0x540   : > { %1348 = vmatmul.msk.bf16.vlgmr.msrb.gmra.mxu2 %vm617_vm1, %v852_v6 }
 0x562   : > { %v932_v10 = vpop.f32.mrf.mxu1 }
 0x56a   : > { %v1027_v8 = vpop.f32.mrf.mxu0  ;;  %v934_v12 = vpop.f32.mrf.mxu1 }
 0x56b   : > { %1033 = vrot.lane.b32.xlu0 %v1027_v8, %s1527_s26 }
 0x572   : > { %v1029_v9 = vpop.f32.mrf.mxu0 }
 0x5b2   : > { %v1054_v15 = vpop.f32.mrf.mxu1 }
 0x5b3   : > { %v847_v11 = vpop.f32.mrf.mxu2 }
 0x5ba   : > { %v1056_v19 = vpop.f32.mrf.mxu1 }
 0x5bb   : > { %v849_v13 = vpop.f32.mrf.mxu2 }
 0x5c3   : > { %v905_v18 = vpop.f32.mrf.mxu2 }
 0x5c4   : > { %911 = vrot.lane.b32.xlu1 %v905_v18, %s1527_s26  ;;  %s1536_s26 = smov 8  }
 0x5cb   : > { %v907_v20 = vpop.f32.mrf.mxu2 }
 0x5dd   : > { %v1034_v21 = vpop.permute.xlu0 %1033 }
 0x5de   : > { %v1055_v24 = vadd.f32 %v1054_v15, %v1034_v21 }
 0x5e0   : > { %v1058_v25 = vmul.f32 0.35355338, %v1055_v24 }
 0x5e2   : > { %v1059_v26 = vadd.f32 %v1058_v25, %v1762_v34 }
 0x5e4   : > { %v1060_v27 = vsel %vm617_vm1, %v1059_v26, -inf }
 0x5ee   : > { %1061 = vmax.xlane.f32.xlu1 %v1060_v27 }
 0x636   : > { %v912_v28 = vpop.permute.xlu1 %911 }
 0x637   : > { %v933_v29 = vadd.f32 %v932_v10, %v912_v28 }
 0x639   : > { %v936_v31 = vmul.f32 0.35355338, %v933_v29 }
 0x63b   : > { %v937_v32 = vadd.f32 %v936_v31, %v1762_v34 }
 0x63d   : > { %v938_v44 = vsel %vm617_vm1, %v937_v32, -inf }
 0x63e   : > { %939 = vmax.xlane.f32.xlu2 %v938_v44 }
 0x656   : > { %952 = vrot.lane.b32.xlu2 %v1705_v59, %s1535_s29 }
 0x661   : > { %v1062_v33 = vpop.xlane.xlu1 %1061 }
 0x662   : > { %v1063_v61 = vsub.f32 %v1059_v26, %v1062_v33 }
 0x664   : > { %v1064_v35 = vmul.f32 1.442695, %v1063_v61 }
 0x666   : > { %1452 = vpow2.f32 %v1064_v35 }
 0x66c   : > { %v1453_v36 = vpop.eup %1452 }
 0x66d   : > { %v1066_v37 = vsel %vm617_vm1, %v1453_v36, 0.0 }
 0x66e   : > { %1067 = vadd.xlane.f32.xlu1 %v1066_v37 }
 0x687   : > { %1096 = vrot.lane.b32.xlu1 %v847_v11, %s1536_s26  ;;  %s1160_s26 = scalar_lea.sflag [#allocation3], %s379_s25 }
 0x6b1   : > { %v940_v38 = vpop.xlane.xlu2 %939 }
 0x6b2   : > { %v941_v39 = vsub.f32 %v937_v32, %v940_v38 }
 0x6b4   : > { %v942_v34 = vmul.f32 1.442695, %v941_v39 }
 0x6b6   : > { %1454 = vpow2.f32 %v942_v34 }
 0x6b9   : > { %v953_v46 = vpop.permute.xlu2 %952 }
 0x6ba   : > { %v958_v23 = vsel %vm710_vm3, %v953_v46, 0 }
 0x6bb   : > { %967 = vmatpush.bf16.msrb.mxu3 %v958_v23 }
 0x6bc   : > { %v1455_v40 = vpop.eup %1454 }
 0x6bd   : > { %v944_v2 = vsel %vm617_vm1, %v1455_v40, 0.0 }
 0x6be   : > { %945 = vadd.xlane.f32.xlu0 %v944_v2 }
 0x6d2   : > { %1074 = vrot.lane.b32.xlu0 %v1705_v59, %s1537_s12  ;;  %s1382_s12 = sshll.u32 %s1617_s17, 4  ;;  %s1480_s17 = scalar_lea.hbm %s1955_s10, 32 }
 0x6d3   : > { %s1174_s11 = scalar_lea.hbm %s1955_s10, %s1382_s12 }
 0x6d4   : > { %s1177_s29 = sshll.u32 %s1174_s11, 4  ;;  %s1178_s29 = int_to_ptr.hbm [resolvable:$true] %s1177_s29 }
 0x6d5   : > { %s1474_s30 = sshra.s32 %s1178_s29, 4  ;;  %s1475_s30 = int_to_ptr.hbm [resolvable:$true] %s1474_s30 }
 0x6d6   : > { %s1476_s0 = scalar_lea.hbm %s1475_s30, 16  ;;  %p1481_p0 = scmp.lt.s32.totalorder %s1475_s30, %s1955_s10 }
 0x6d7   : > { %p1477_p11 = scmp.ne.s32.totalorder %s1475_s30, %s1476_s0  ;;  %p1482_p1 = scmp.lt.s32.totalorder %s1480_s17, %s1476_s0 }
 0x6d9   : > { %p1478_p12 = pnand %p1477_p11, %p1634_p5  ;;  %p1483_p2 = por %p1482_p1, %p1481_p0 }
 0x6db   : > { %p1479_p13 = pneg %p1478_p12 }
 0x6dd   : > { %p1484_p3 = pnand %p1483_p2, %p1479_p13 }
 0x6e1   : > { %v1068_v41 = vpop.xlane.xlu1 %1067 }
 0x6e2   : > { %1456 = vrcp.f32 %v1068_v41 }
 0x6e8   : > { %v1457_v42 = vpop.eup %1456 }
 0x6e9   : > { %v1070_v45 = vmul.f32 %v1457_v42, %v1453_v36 }
 0x6eb   : > { %v1071_v16 = vpack.c.bf16 %v1070_v45, %v1070_v45 }
 0x6ed   : > { %1354 = vst.msk [vmem:[%s1805_s28 + $0xc] sm:$0xf] %vm703_vm4, %v1071_v16 }
 0x6f9   : > { %v1097_v58 = vpop.permute.xlu1 %1096 }
 0x6fa   : > { %v1107_v17 = vsel %vm617_vm1, %v1814_v14, %v1097_v58 }
 0x731   : > { %v946_v47 = vpop.xlane.xlu0 %945 }
 0x732   : > { %1458 = vrcp.f32 %v946_v47 }
 0x738   : > { %v1459_v48 = vpop.eup %1458 }
 0x739   : > { %v948_v49 = vmul.f32 %v1459_v48, %v1455_v40 }
 0x73b   : > { %v949_v50 = vpack.c.bf16 %v948_v49, %v948_v49 }
 0x73d   : > { %1350 = vst.msk [vmem:[%s1805_s28 + $0x8] sm:$0xf] %vm703_vm4, %v949_v50  ;;  %1351 = vmatmul.msk.bf16.vlgmr.msrb.gmra.mxu3 %vm617_vm1, %v949_v50 }
 0x744   : > { %v1075_v59 = vpop.permute.xlu0 %1074 }
 0x745   : > { %v1080_v51 = vsel %vm710_vm3, %v1075_v59, 0 }
 0x746   : > { %1089 = vmatpush.bf16.msra.mxu3 %v1080_v51 }
 0x74d   : > { %1355 = vmatmul.msk.bf16.vlgmr.msra.gmra.mxu3 %vm617_vm1, %v1071_v16 }
 0x7c0   : > { %v969_v52 = vpop.f32.mrf.mxu3 }
 0x7c1   : > { %1100 = vrot.lane.b32.xlu2 %v969_v52, %s1538_s18 }
 0x7c8   : > { %v971_v53 = vpop.f32.mrf.mxu3 }
 0x7d0   : > { %v1091_v54 = vpop.f32.mrf.mxu3 }
 0x7d1   : > { %1104 = vrot.lane.b32.xlu0 %v1091_v54, %s1539_s27 }
 0x7d8   : > { %v1093_v55 = vpop.f32.mrf.mxu3 }
 0x81b   : > { %v1101_v60 = vpop.permute.xlu2 %1100 }
 0x81c   : > { %v1109_v62 = vsel %vm1108_vm5, %v1107_v17, %v1101_v60 }
 0x843   : > { %v1105_v63 = vpop.permute.xlu0 %1104 }
 0x844   : > { %v1111_v0 = vsel %vm1110_vm6, %v1109_v62, %v1105_v63 }
 0x845   : > { %v1112_v22 = vpack.c.bf16 %v1111_v0, %v1111_v0 }
 0x847   : > { %1364 = vmatmul.msk.bf16.vlgmr.msrb.gmra.mxu1 %vm471_vm0, %v1112_v22 }
 0x848   : > { %1487 = shalt.err (!%p1484_p3)
}
 0x849   : > { %s1540_s25 = smov 4   ;;  %s1967_s28 = smov 64   ;;  %v1443_v1 = vld [vmem:[%s1952_s7] ss:$0 sm:$0xff]  ;;  %vm1153_vm7 = vcmask 257024  }
 0x84a   : > { %1385 = dma.vmem_to_hbm [thread:$0]  (%p1634_p5), %s1176_s20, 256, %s1178_s29, %s1160_s26, %s1967_s28, %s1967_s28, %s1540_s25  }
 0x84b   : > { %s392_s1 = scalar_lea.vmem %s1953_s8, %s1699_s21  ;;  %s396_s30 = scalar_lea.vmem %s1954_s9, %s1699_s21 }
 0x84c   : > { %v1149_v14 = vld [vmem:[%s392_s1] sm:$0xf] }
 0x84d   : > { %v1150_v3 = vunpack.c.l.bf16 %v1149_v14 }
 0x8c4   : > { %v1145_v4 = vpop.f32.mrf.mxu1 }
 0x8c5   : > { %v1146_v5 = vadd.f32 %v1443_v1, %v1145_v4 }
 0x8c7   : > { %v1151_v30 = vadd.f32 %v1150_v3, %v1146_v5 }
 0x8c9   : > { %v1152_v43 = vpack.c.bf16 %v1151_v30, %v1151_v30 }
 0x8cb   : > { %1154 = vst.msk [vmem:[%s396_s30] sm:$0xf] %vm1153_vm7, %v1152_v43 }
 0x8cc   : > { %v1147_v6 = vpop.f32.mrf.mxu1 }
 0x8cd PF: > { %p1391_p4 = scmp.ge.s32.totalorder %s1522_s16, 2  ;;  %s1199_s11 = sand.u32 1, %s1510_s13  }
 0x8ce   : > { %s1200_s20 = scalar_lea.sflag [#allocation3], %s1199_s11 }
 0x8cf   : > { %p1388_p5 = pnand %p1391_p4, %p1638_p6 }
 0x8d1   : > { %p1389_p7 = pneg %p1388_p5 }
 0x8d3   : > { %1505 = dma.done.wait (%p1389_p7), %s1200_s20, 256  }
 0x8d4   : > { %1507 = vsyncadd (%p1389_p7), %s1200_s20, 4294967040  ;;  %p21_p8 = scmp.ge.s32.totalorder %s1621_s19, 4   ;;  %s1968_s13 = smov %s1514_s14 }
 0x8d5   : > { %s1969_s14 = smov %s1518_s15  ;;  %s1970_s15 = smov %s1632_s22 }
 0x8d6   : > { %s1971_s16 = smov %s1621_s19  ;;  %23 = sbr.rel (!%p21_p8) target bundleno = 8 (0x8), region = 112 }
 0x8db   :  { %1206 = vsyncpa [#allocation3], 1 }
 0x8dc   :  { %1208 = vsyncpa [#allocation3 + $0x1], 1 }

// kernel: conformer_encoder_layer.9
= control target key start
LH: loop header
LB: loop body
LE: loop exit
PB: predicated region body
PF: predicated region fallthrough
CT: control target
= control target key end

     0   :  { %12 = vsyncpa [#allocation3], 0  ;;  %s1145_s0 = inlined_call_operand.vmem [shape: bf16[2,8,32], index: 0, kind: input, shape index: {}]   ;;  %s1146_s1 = inlined_call_operand.vmem [shape: f32[1,32], index: 1, kind: input, shape index: {}]   ;;  %s1147_s2 = inlined_call_operand.vmem [shape: f32[1,32], index: 2, kind: input, shape index: {}]   ;;  %s1148_s3 = inlined_call_operand.vmem [shape: bf16[3,32,64], index: 3, kind: input, shape index: {}]   ;;  %s1149_s4 = inlined_call_operand.vmem [shape: f32[1,64], index: 4, kind: input, shape index: {}]   ;;  %s1150_s5 = inlined_call_operand.vmem [shape: bf16[3,64,32], index: 5, kind: input, shape index: {}]   ;;  %s1151_s6 = inlined_call_operand.vmem [shape: f32[1,32], index: 6, kind: input, shape index: {}]   ;;  %s1152_s7 = inlined_call_operand.hbm [shape: f32[2,8,32], index: 7, kind: output, shape index: {}]  }
   0x1   :  { %14 = vsyncpa [#allocation3 + $0x1], 0  ;;  %s971_s24 = smov 0   ;;  %s973_s25 = smov 0  }
   0x2   :  { %s975_s26 = smov 0   ;;  %s977_s27 = smov 0  }
   0x3 LB: > { %s992_s28 = sadd.s32 4294967295, %s928_s27   ;;  %s683_s29 = sadd.s32 4294967294, %s928_s27   ;;  %s928_s27 = sphi %s977_s27, %s1158_s27   ;;  %s924_s26 = sphi %s975_s26, %s1157_s26   ;;  %s920_s25 = sphi %s973_s25, %s1156_s25   ;;  %s916_s24 = sphi %s971_s24, %s1155_s24  }
   0x4   : > { %s996_s30 = sadd.s32 1, %s928_s27   ;;  %s179_s8 = sadd.s32 1, %s924_s26 }
   0x5   : > { %s176_s9 = ssub.s32 %s928_s27, %s996_s30  ;;  %p189_p0 = scmp.ne.s32.totalorder %s924_s26, %s920_s25 }
   0x6   : > { %p177_p1 = scmp.eq.s32.totalorder %s176_s9, 0  ;;  %p190_p2 = scmp.eq.s32.totalorder %s992_s28, 1 }
   0x7   : > { %p195_p3 = scmp.ne.s32.totalorder %s920_s25, %s916_s24  ;;  %p196_p4 = scmp.eq.s32.totalorder %s683_s29, 1 }
   0x8   : > { %s1007_s10 = scalar_select %p177_p1, %s924_s26, %s179_s8  }
   0x9   : > { %p1009_p5 = por %p190_p2, %p189_p0  ;;  %p1013_p6 = por %p196_p4, %p195_p3 }
   0xa   : > { %p686_p7 = scmp.ge.s32.totalorder %s928_s27, 1  ;;  %p239_p8 = scmp.lt.s32.totalorder %s928_s27, 3 }
   0xc   : > { %p240_p9 = pnand %p686_p7, %p239_p8 }
   0xd   : > { %p270_p10 = scmp.lt.s32.totalorder (!%p240_p9), %s992_s28, 1  ;;  %s267_s18 = sand.u32 (!%p240_p9), 1, %s920_s25  }
   0xe   : > { %243 = sbr.rel (%p240_p9) target bundleno = 613 (0x265), region = 48  ;;  %s687_s19 = sshll.u32 (!%p240_p9), %s267_s18, 3 }
   0xf   : > { %s793_s20 = sshll.u32 (!%p240_p9), %s992_s28, 3 }
  0x10   : > { %s619_s8 = scalar_lea.hbm (!%p240_p9), %s1152_s7, %s793_s20  ;;  %s886_s20 = scalar_lea.hbm (!%p240_p9), %s1152_s7, 16 }
  0x13   : > { %s271_s13 = scalar_select %p270_p10, %s992_s28, 1  ;;  %vm279_vm0 = vcmask 261120   ;;  %v930_v3 = vmov 32.0   ;;  %v799_v15 = vld [vmem:[%s1148_s3 + $0x18] sm:$0xff]  ;;  %v797_v16 = vld [vmem:[%s1148_s3 + $0x8] sm:$0xff]  ;;  %v798_v18 = vld [vmem:[%s1148_s3 + $0x10] sm:$0xff]  ;;  %v318_v30 = vlaneseq }
  0x14   : > { %858 = vrcp.f32 %v930_v3  ;;  %v801_v17 = vld [vmem:[%s1148_s3 + $0x28] sm:$0xff]  ;;  %354 = vmatpush.bf16.msra.mxu0 %v799_v15  ;;  %382 = vmatpush.bf16.msra.mxu1 %v797_v16  ;;  %v796_v19 = vld [vmem:[%s1148_s3] sm:$0xff]  ;;  %v805_v45 = vld [vmem:[%s1150_s5 + $0x18] sm:$0xff]  ;;  %vm485_vm11 = vcmask 523264   ;;  %s269_s28 = scalar_lea.vmem [#allocation2], %s687_s19 }
  0x15   : > { %s688_s14 = sshll.u32 %s271_s13, 2  ;;  %419 = vmatpush.bf16.msra.mxu2 %v801_v17  ;;  %v800_v20 = vld [vmem:[%s1148_s3 + $0x20] sm:$0xff]  ;;  %v1054_v35 = vshrl.u32 %v318_v30, 7  ;;  %v809_v46 = vld [vmem:[%s1150_s5 + $0x38] sm:$0xff]  ;;  %493 = vmatpush.bf16.msra.mxu3 %v805_v45  ;;  %v804_v48 = vld [vmem:[%s1150_s5 + $0x10] sm:$0xff]  ;;  %s621_s9 = sshll.u32 %s269_s28, 4  ;;  %s622_s9 = int_to_ptr.vmem [resolvable:$true] %s621_s9 }
  0x16   : > { %s273_s17 = scalar_lea.vmem %s1145_s0, %s688_s14  ;;  %v854_v31 = vld [vmem:[%s1146_s1] ss:$0 sm:$0xff]  ;;  %v813_v47 = vld [vmem:[%s1150_s5 + $0x58] sm:$0xff]  ;;  %v808_v49 = vld [vmem:[%s1150_s5 + $0x30] sm:$0xff]  ;;  %s623_s13 = sshll.u32 %s619_s8, 4  ;;  %s624_s13 = int_to_ptr.hbm [resolvable:$true] %s623_s13 }
  0x17   : > { %v275_v0 = vld [vmem:[%s273_s17] sm:$0xf]  ;;  %vm320_vm5 = vcmp.ge.s32.totalorder %v1054_v35, 1  ;;  %vm390_vm6 = vcmp.lt.s32.totalorder %v1054_v35, 7  ;;  %v812_v50 = vld [vmem:[%s1150_s5 + $0x50] sm:$0xff]  ;;  %v803_v51 = vld [vmem:[%s1150_s5 + $0x8] sm:$0xff] }
  0x18   : > { %v1024_v1 = vunpack.c.l.bf16 %v275_v0  ;;  %355 = vmatpush.bf16.msra.mxu0 %v798_v18  ;;  %383 = vmatpush.bf16.msra.mxu1 %v796_v19  ;;  %v855_v34 = vld [vmem:[%s1147_s2] ss:$0 sm:$0xff]  ;;  %v807_v52 = vld [vmem:[%s1150_s5 + $0x28] sm:$0xff]  ;;  %s609_s14 = scalar_lea.sflag [#allocation3], %s267_s18  ;;  %s880_s15 = sshra.s32 %s624_s13, 4  ;;  %s881_s15 = int_to_ptr.hbm [resolvable:$true] %s880_s15 }
  0x19   : > { %420 = vmatpush.bf16.msra.mxu2 %v800_v20  ;;  %494 = vmatpush.bf16.msra.mxu3 %v804_v48  ;;  %v811_v54 = vld [vmem:[%s1150_s5 + $0x48] sm:$0xff]  ;;  %v802_v56 = vld [vmem:[%s1150_s5] sm:$0xff]  ;;  %s882_s16 = scalar_lea.hbm %s881_s15, 8  ;;  %p887_p0 = scmp.lt.s32.totalorder %s881_s15, %s1152_s7 }
  0x1a   : > { %v280_v2 = vsel %vm279_vm0, %v1024_v1, 0.0  ;;  %v859_v4 = vpop.eup %858  ;;  %v806_v57 = vld [vmem:[%s1150_s5 + $0x20] sm:$0xff]  ;;  %p883_p11 = scmp.ne.s32.totalorder %s881_s15, %s882_s16  ;;  %p888_p1 = scmp.lt.s32.totalorder %s886_s20, %s882_s16 }
  0x1b   : > { %281 = vadd.xlane.f32.xlu0 %v280_v2  ;;  %v284_v5 = vmul.f32 32.0, %v859_v4  ;;  %vm288_vm1 = vweird.f32 %v859_v4  ;;  %v810_v58 = vld [vmem:[%s1150_s5 + $0x40] sm:$0xff] }
  0x1c   : > { %542 = vmatpush.bf16.msrb.mxu0 %v809_v46  ;;  %589 = vmatpush.bf16.msrb.mxu1 %v813_v47  ;;  %v856_v61 = vld [vmem:[%s1149_s4] ss:$0 sm:$0xff]  ;;  %p884_p12 = pnand %p883_p11, %p1009_p5  ;;  %p889_p2 = por %p888_p1, %p887_p0 }
  0x1d   : > { %v285_v6 = vsub.f32 1.0, %v284_v5  ;;  %495 = vmatpush.bf16.msra.mxu3 %v803_v51 }
  0x1e   : > { %p885_p13 = pneg %p884_p12 }
  0x1f   : > { %v286_v7 = vmul.f32 %v859_v4, %v285_v6 }
  0x20   : > { %543 = vmatpush.bf16.msrb.mxu0 %v808_v49  ;;  %590 = vmatpush.bf16.msrb.mxu1 %v812_v50  ;;  %p890_p3 = pnand %p889_p2, %p885_p13 }
  0x21   : > { %v287_v8 = vadd.f32 %v859_v4, %v286_v7  ;;  %496 = vmatpush.bf16.msra.mxu3 %v802_v56 }
  0x23   : > { %v289_v9 = vsel %vm288_vm1, %v859_v4, %v287_v8 }
  0x24   : > { %544 = vmatpush.bf16.msrb.mxu0 %v807_v52  ;;  %591 = vmatpush.bf16.msrb.mxu1 %v811_v54 }
  0x28   : > { %545 = vmatpush.bf16.msrb.mxu0 %v806_v57  ;;  %592 = vmatpush.bf16.msrb.mxu1 %v810_v58 }
  0x8e   : > { %v282_v10 = vpop.xlane.xlu0 %281 }
  0x8f   : > { %v290_v11 = vmul.f32 %v289_v9, %v282_v10 }
  0x91   : > { %v291_v12 = vsub.f32 %v1024_v1, %v290_v11 }
  0x93   : > { %v292_v13 = vmul.f32 %v291_v12, %v291_v12 }
  0x95   : > { %v293_v14 = vsel %vm279_vm0, %v292_v13, 0.0 }
  0x96   : > { %294 = vadd.xlane.f32.xlu0 %v293_v14 }
 0x109   : > { %v295_v21 = vpop.xlane.xlu0 %294 }
 0x10a   : > { %v296_v22 = vmul.f32 %v295_v21, %v289_v9 }
 0x10c   : > { %v297_v23 = vadd.f32 1e-05, %v296_v22 }
 0x10e   : > { %860 = vrsqrt.f32 %v297_v23  ;;  %vm304_vm3 = vweird.f32 %v297_v23 }
 0x114   : > { %v861_v24 = vpop.eup %860 }
 0x115   : > { %v299_v25 = vmul.f32 %v861_v24, %v297_v23  ;;  %vm305_vm2 = vweird.f32 %v861_v24 }
 0x116   : > { %vm306_vm4 = vmor %vm304_vm3, %vm305_vm2 }
 0x117   : > { %v300_v26 = vmul.f32 %v861_v24, %v299_v25 }
 0x119   : > { %v301_v27 = vmul.f32 0.5, %v300_v26 }
 0x11b   : > { %v302_v28 = vsub.f32 1.5, %v301_v27 }
 0x11d   : > { %v303_v29 = vmul.f32 %v861_v24, %v302_v28  ;;  %v857_v28 = vld [vmem:[%s1151_s6] ss:$0 sm:$0xff] }
 0x11f   : > { %v307_v32 = vsel %vm306_vm4, %v861_v24, %v303_v29 }
 0x120   : > { %v308_v33 = vmul.f32 %v307_v32, %v291_v12 }
 0x122   : > { %v312_v36 = vmul.f32 %v854_v31, %v308_v33 }
 0x124   : > { %v316_v37 = vadd.f32 %v855_v34, %v312_v36 }
 0x126   : > { %v327_v38 = vpack.c.bf16 %v316_v37, %v316_v37  ;;  %v317_v39 = vrot.slane %v316_v37, 7  ;;  %v389_v40 = vrot.slane %v316_v37, 1 }
 0x128   : > { %701 = vmatmul.msk.bf16.vlgmr.msra.gmra.mxu0 %vm279_vm0, %v327_v38  ;;  %v321_v41 = vsel %vm320_vm5, %v317_v39, 0.0  ;;  %v391_v42 = vsel %vm390_vm6, %v389_v40, 0.0 }
 0x129   : > { %v322_v43 = vpack.c.bf16 %v321_v41, %v321_v41  ;;  %v392_v44 = vpack.c.bf16 %v391_v42, %v391_v42 }
 0x12b   : > { %710 = vmatmul.msk.bf16.vlgmr.msra.gmra.mxu1 %vm279_vm0, %v322_v43  ;;  %723 = vmatmul.msk.bf16.vlgmr.msra.gmra.mxu2 %vm279_vm0, %v392_v44 }
 0x1a5   : > { %v357_v53 = vpop.f32.mrf.mxu0 }
 0x1a8   : > { %v385_v55 = vpop.f32.mrf.mxu1 }
 0x1a9   : > { %v386_v59 = vadd.f32 %v385_v55, %v357_v53 }
 0x1ad   : > { %v359_v60 = vpop.f32.mrf.mxu0 }
 0x1ae   : > { %v422_v62 = vpop.f32.mrf.mxu2 }
 0x1af   : > { %v426_v63 = vadd.f32 %v422_v62, %v386_v59 }
 0x1b0   : > { %v387_v0 = vpop.f32.mrf.mxu1 }
 0x1b1   : > { %v431_v2 = vadd.f32 %v856_v61, %v426_v63 }
 0x1b3   : > { %v724_v3 = vmul.f32 -1.442695, %v431_v2 }
 0x1b5   : > { %862 = vpow2.f32 %v724_v3 }
 0x1b6   : > { %v424_v4 = vpop.f32.mrf.mxu2 }
 0x1bb   : > { %v863_v5 = vpop.eup %862 }
 0x1bc   : > { %v435_v6 = vadd.f32 1.0, %v863_v5 }
 0x1be   : > { %864 = vrcp.f32 %v435_v6  ;;  %v447_v10 = vand.u32 2147483648, %v435_v6  ;;  %v445_v12 = vand.u32 2147483647, %v435_v6  ;;  %vm441_vm8 = vweird.f32 %v435_v6 }
 0x1c0   : > { %v448_v14 = vor.u32 1.1754944e-38, %v447_v10  ;;  %vm446_vm10 = vcmp.eq.f32.partialorder %v445_v12, 8.507059e+37 }
 0x1c4   : > { %v865_v7 = vpop.eup %864 }
 0x1c5   : > { %v437_v8 = vmul.f32 %v865_v7, %v435_v6  ;;  %vm442_vm7 = vweird.f32 %v865_v7 }
 0x1c6   : > { %vm443_vm9 = vmor %vm441_vm8, %vm442_vm7 }
 0x1c7   : > { %v438_v9 = vsub.f32 1.0, %v437_v8 }
 0x1c9   : > { %v439_v11 = vmul.f32 %v865_v7, %v438_v9 }
 0x1cb   : > { %v440_v13 = vadd.f32 %v865_v7, %v439_v11 }
 0x1cd   : > { %v444_v15 = vsel %vm443_vm9, %v865_v7, %v440_v13 }
 0x1ce   : > { %v449_v16 = vsel %vm446_vm10, %v448_v14, %v444_v15 }
 0x1cf   : > { %v451_v17 = vmul.f32 %v449_v16, %v431_v2 }
 0x1d1   : > { %v452_v18 = vpack.c.bf16 %v451_v17, %v451_v17 }
 0x1d3   : > { %741 = vmatmul.msk.bf16.vlgmr.msra.gmra.mxu3 %vm485_vm11, %v452_v18  ;;  %766 = vmatmul.msk.bf16.vlgmr.msrb.gmra.mxu0 %vm485_vm11, %v452_v18 }
 0x1d4   : > { %791 = vmatmul.msk.bf16.vlgmr.msrb.gmra.mxu1 %vm485_vm11, %v452_v18 }
 0x250   : > { %v547_v19 = vpop.f32.mrf.mxu0 }
 0x251   : > { %v594_v20 = vpop.f32.mrf.mxu1 }
 0x252   : > { %v598_v22 = vrot.slane %v594_v20, 1 }
 0x254   : > { %v599_v29 = vsel %vm390_vm6, %v598_v22, 0.0 }
 0x256   : > { %v498_v21 = vpop.f32.mrf.mxu3 }
 0x257   : > { %v502_v23 = vrot.slane %v498_v21, 7 }
 0x258   : > { %v549_v24 = vpop.f32.mrf.mxu0 }
 0x259   : > { %v503_v25 = vsel %vm320_vm5, %v502_v23, 0.0  ;;  %v596_v26 = vpop.f32.mrf.mxu1 }
 0x25a   : > { %v551_v27 = vadd.f32 %v547_v19, %v503_v25 }
 0x25c   : > { %v600_v30 = vadd.f32 %v599_v29, %v551_v27 }
 0x25e   : > { %v605_v31 = vadd.f32 %v857_v28, %v600_v30  ;;  %v500_v32 = vpop.f32.mrf.mxu3 }
 0x260   : > { %v606_v33 = vadd.f32 %v605_v31, %v1024_v1 }
 0x262   : > { %607 = vst.msk [vmem:[%s269_s28] sm:$0xff] %vm279_vm0, %v606_v33 }
 0x263   : > { %893 = shalt.err (!%p890_p3)
}
 0x264   : > { %814 = dma.vmem_to_hbm [thread:$0]  (%p1009_p5), %s622_s9, 128, %s624_s13, %s609_s14  }
 0x265 PF: > { %p820_p4 = scmp.ge.s32.totalorder %s928_s27, 2  ;;  %s635_s18 = sand.u32 1, %s916_s24  }
 0x266   : > { %s636_s23 = scalar_lea.sflag [#allocation3], %s635_s18 }
 0x267   : > { %p817_p7 = pnand %p820_p4, %p1013_p6 }
 0x269   : > { %p818_p8 = pneg %p817_p7 }
 0x26b   : > { %911 = dma.done.wait (%p818_p8), %s636_s23, 128  }
 0x26c   : > { %913 = vsyncadd (%p818_p8), %s636_s23, 4294967168  ;;  %p17_p9 = scmp.ge.s32.totalorder %s996_s30, 4   ;;  %s1155_s24 = smov %s920_s25 }
 0x26d   : > { %s1156_s25 = smov %s924_s26  ;;  %s1157_s26 = smov %s1007_s10 }
 0x26e   : > { %s1158_s27 = smov %s996_s30  ;;  %19 = sbr.rel (!%p17_p9) target bundleno = 3 (0x3), region = 87 }
 0x273   :  { %642 = vsyncpa [#allocation3], 1 }
 0x274   :  { %644 = vsyncpa [#allocation3 + $0x1], 1 }

</bundles_post_ra>
